<compile_context>
chip_gen: v7x
topology: tpu7x:2x2x1
jax: 0.10.0
libtpu: 0.0.40
codegen_flags: <defaults>
</compile_context>

<pallas_src>
import functools

import jax
import jax.numpy as jnp
from jax.experimental import pallas as pl
from jax.experimental.pallas import tpu as pltpu


_PARALLEL = pltpu.CompilerParams(dimension_semantics=("parallel",))


# ----------------------------------------------------------------------------
# Pallas kernels
# ----------------------------------------------------------------------------
def _conv1x1_bn_silu_kernel(x_ref, w_ref, s_ref, b_ref, o_ref):
    # (TM, Cin) @ (Cin, Cout) -> folded BN -> SiLU
    y = jnp.dot(x_ref[...], w_ref[...], preferred_element_type=jnp.float32)
    y = y * s_ref[...] + b_ref[...]
    y = y * jax.nn.sigmoid(y)
    o_ref[...] = y.astype(o_ref.dtype)


def _conv3x3_body(xp, w_ref, s_ref, b_ref, H, W):
    # xp: (H+2, W+2, Cin) halo-padded block; w_ref: (3, 3, Cin, Cout)
    cin = xp.shape[-1]
    cout = w_ref.shape[-1]
    acc = jnp.zeros((H * W, cout), jnp.float32)
    for kh in range(3):
        for kw in range(3):
            xs = xp[kh:kh + H, kw:kw + W, :].reshape(H * W, cin)
            acc = acc + jnp.dot(xs, w_ref[kh, kw, :, :],
                                preferred_element_type=jnp.float32)
    y = acc * s_ref[...] + b_ref[...]
    return y * jax.nn.sigmoid(y)


def _conv3x3_bn_silu_res_kernel(xp_ref, w_ref, s_ref, b_ref, r_ref, o_ref, *, H, W):
    y = _conv3x3_body(xp_ref[...], w_ref, s_ref, b_ref, H, W)
    y = y + r_ref[...].astype(jnp.float32)          # fused Bottleneck shortcut
    o_ref[...] = y.astype(o_ref.dtype)


def _conv3x3_bn_silu_kernel(xp_ref, w_ref, s_ref, b_ref, o_ref, *, H, W):
    y = _conv3x3_body(xp_ref[...], w_ref, s_ref, b_ref, H, W)
    o_ref[...] = y.astype(o_ref.dtype)


def _csp_tail_kernel(y_ref, x_ref, w3_ref, w2_ref, s1a_ref, b1a_ref, s1b_ref,
                     b1b_ref, w4a_ref, w4b_ref, s4_ref, b4_ref, o_ref):
    # Fused: y1=cv3(y), y2=cv2(x), [concat -> BN -> SiLU] done per-half,
    # cv4 split into its two concat halves, final BN + SiLU.
    z1 = jnp.dot(y_ref[...], w3_ref[...], preferred_element_type=jnp.float32)
    z1 = z1 * s1a_ref[...] + b1a_ref[...]
    z1 = z1 * jax.nn.sigmoid(z1)
    z2 = jnp.dot(x_ref[...], w2_ref[...], preferred_element_type=jnp.float32)
    z2 = z2 * s1b_ref[...] + b1b_ref[...]
    z2 = z2 * jax.nn.sigmoid(z2)
    out = jnp.dot(z1.astype(w4a_ref.dtype), w4a_ref[...],
                  preferred_element_type=jnp.float32)
    out = out + jnp.dot(z2.astype(w4b_ref.dtype), w4b_ref[...],
                        preferred_element_type=jnp.float32)
    out = out * s4_ref[...] + b4_ref[...]
    out = out * jax.nn.sigmoid(out)
    o_ref[...] = out.astype(o_ref.dtype)


# ----------------------------------------------------------------------------
# pallas_call wrappers (M-tiled grids, full-extent weight blocks)
# ----------------------------------------------------------------------------
def _full_spec(shape):
    nd = len(shape)
    return pl.BlockSpec(shape, lambda i, _nd=nd: (0,) * _nd)


def _pick_tile(m, target):
    # largest multiple-of-8 divisor of m that is <= target; fall back to full extent.
    best = m
    d = 8
    while d <= min(m, target):
        if m % d == 0:
            best = d
        d += 8
    return best


def conv1x1_bn_silu(x2, w, scale, bias, *, out_dtype, block_m):
    m, cin = x2.shape
    cout = w.shape[1]
    tm = _pick_tile(m, block_m)
    return pl.pallas_call(
        _conv1x1_bn_silu_kernel,
        grid=(m // tm,),
        in_specs=[
            pl.BlockSpec((tm, cin), lambda i: (i, 0)),
            _full_spec((cin, cout)),
            _full_spec((1, cout)),
            _full_spec((1, cout)),
        ],
        out_specs=pl.BlockSpec((tm, cout), lambda i: (i, 0)),
        out_shape=jax.ShapeDtypeStruct((m, cout), out_dtype),
        compiler_params=_PARALLEL,
    )(x2, w, scale, bias)


def conv3x3_bn_silu(x_nhwc, w, scale, bias, residual, *, out_dtype):
    # residual (if given): (N, H*W, Cout), same BlockSpec/index_map as the output.
    n, h, wd, cin = x_nhwc.shape
    cout = w.shape[-1]
    xp = jnp.pad(x_nhwc, ((0, 0), (1, 1), (1, 1), (0, 0)))   # halo pad only (~1.3x)
    in_specs = [
        pl.BlockSpec((None, h + 2, wd + 2, cin), lambda i: (i, 0, 0, 0)),
        _full_spec((3, 3, cin, cout)),
        _full_spec((1, cout)),
        _full_spec((1, cout)),
    ]
    args = [xp, w, scale, bias]
    if residual is not None:
        kernel = functools.partial(_conv3x3_bn_silu_res_kernel, H=h, W=wd)
        in_specs.append(pl.BlockSpec((None, h * wd, cout), lambda i: (i, 0, 0)))
        args.append(residual)
    else:
        kernel = functools.partial(_conv3x3_bn_silu_kernel, H=h, W=wd)
    return pl.pallas_call(
        kernel,
        grid=(n,),
        in_specs=in_specs,
        out_specs=pl.BlockSpec((None, h * wd, cout), lambda i: (i, 0, 0)),
        out_shape=jax.ShapeDtypeStruct((n, h * wd, cout), out_dtype),
        compiler_params=_PARALLEL,
    )(*args)


def csp_tail(y2, x2, packed, *, out_dtype, block_m):
    m, c_ = y2.shape
    c1 = x2.shape[1]
    c2 = packed["cv4_s"].shape[1]
    tm = _pick_tile(m, block_m)
    return pl.pallas_call(
        _csp_tail_kernel,
        grid=(m // tm,),
        in_specs=[
            pl.BlockSpec((tm, c_), lambda i: (i, 0)),
            pl.BlockSpec((tm, c1), lambda i: (i, 0)),
            _full_spec((c_, c_)),
            _full_spec((c1, c_)),
            _full_spec((1, c_)),
            _full_spec((1, c_)),
            _full_spec((1, c_)),
            _full_spec((1, c_)),
            _full_spec((c_, c2)),
            _full_spec((c_, c2)),
            _full_spec((1, c2)),
            _full_spec((1, c2)),
        ],
        out_specs=pl.BlockSpec((tm, c2), lambda i: (i, 0)),
        out_shape=jax.ShapeDtypeStruct((m, c2), out_dtype),
        compiler_params=_PARALLEL,
    )(y2, x2, packed["cv3_w"], packed["cv2_w"],
      packed["bn_s_a"], packed["bn_b_a"], packed["bn_s_b"], packed["bn_b_b"],
      packed["cv4_w_a"], packed["cv4_w_b"], packed["cv4_s"], packed["cv4_b"])


# ----------------------------------------------------------------------------
# Parameter init (deterministic, synthetic), BN folding and one-time packing
# ----------------------------------------------------------------------------
def fold_bn(gamma, beta, mean, var, eps=1e-5):
    scale = gamma / jnp.sqrt(var + eps)
    return scale, beta - mean * scale


def init_params(key, c1, c2, n=1, e=0.5):
    c_ = int(c2 * e)
    keys = iter(jax.random.split(key, 64))

    def conv_w(cout, cin, k):
        return jax.random.normal(next(keys), (cout, cin, k, k), jnp.float32) * 0.1

    def bn_p(c):
        gamma = jax.random.uniform(next(keys), (c,), jnp.float32, 0.5, 1.5)
        beta = jax.random.normal(next(keys), (c,), jnp.float32) * 0.1
        mean = jax.random.normal(next(keys), (c,), jnp.float32) * 0.1
        var = jax.random.uniform(next(keys), (c,), jnp.float32, 0.5, 1.5)
        return gamma, beta, mean, var

    params = {
        "cv1_w": conv_w(c_, c1, 1), "cv1_bn": bn_p(c_),
        "cv2_w": conv_w(c_, c1, 1),
        "cv3_w": conv_w(c_, c_, 1),
        "cv4_w": conv_w(c2, 2 * c_, 1), "cv4_bn": bn_p(c2),
        "bn": bn_p(2 * c_),
        "m": [],
    }
    for _ in range(n):
        params["m"].append({
            "cv1_w": conv_w(c_, c_, 1), "cv1_bn": bn_p(c_),
            "cv2_w": conv_w(c_, c_, 3), "cv2_bn": bn_p(c_),
        })
    return params, c_


def pack_params(params, compute_dtype=jnp.float32):
    """Hoisted, one-time weight repacking + BN folding (kept out of the forward)."""
    cdt = compute_dtype

    def w1x1(w):  # (Cout, Cin, 1, 1) -> (Cin, Cout)
        return jnp.transpose(w[:, :, 0, 0], (1, 0)).astype(cdt)

    def w3x3(w):  # (Cout, Cin, 3, 3) -> (3, 3, Cin, Cout)  [matches in-kernel loop]
        return jnp.transpose(w, (2, 3, 1, 0)).astype(cdt)

    def bn(p, c):
        s, b = fold_bn(*p)
        return s.reshape(1, c).astype(jnp.float32), b.reshape(1, c).astype(jnp.float32)

    c_ = params["cv1_w"].shape[0]
    c2 = params["cv4_w"].shape[0]
    s1, b1 = bn(params["cv1_bn"], c_)
    sbn, bbn = bn(params["bn"], 2 * c_)
    s4, b4 = bn(params["cv4_bn"], c2)
    w4 = w1x1(params["cv4_w"])                      # (2*c_, C2)

    packed = {
        "cv1_w": w1x1(params["cv1_w"]), "cv1_s": s1, "cv1_b": b1,
        "cv2_w": w1x1(params["cv2_w"]),              # (C1, c_)
        "cv3_w": w1x1(params["cv3_w"]),              # (c_, c_)
        # BN over the concat, split into its two halves (y1-half / y2-half):
        "bn_s_a": sbn[:, :c_], "bn_b_a": bbn[:, :c_],
        "bn_s_b": sbn[:, c_:], "bn_b_b": bbn[:, c_:],
        # cv4 weight split into the two concat halves -> concat costs zero bytes:
        "cv4_w_a": w4[:c_, :], "cv4_w_b": w4[c_:, :],
        "cv4_s": s4, "cv4_b": b4,
        "m": [],
    }
    for blk in params["m"]:
        sa, ba = bn(blk["cv1_bn"], c_)
        sb, bb = bn(blk["cv2_bn"], c_)
        packed["m"].append({
            "cv1_w": w1x1(blk["cv1_w"]), "cv1_s": sa, "cv1_b": ba,
            "cv2_w": w3x3(blk["cv2_w"]), "cv2_s": sb, "cv2_b": bb,
        })
    return packed


# ----------------------------------------------------------------------------
# BottleneckCSP forward (Pallas)
# ----------------------------------------------------------------------------
def bottleneck_csp_pallas(x_nchw, packed, *, shortcut=True, block_m=512):
    n, c1, h, w = x_nchw.shape
    m = n * h * w
    cdt = packed["cv1_w"].dtype           # compute dtype (f32 or bf16 operands)
    c_ = packed["cv1_w"].shape[1]

    x = jnp.transpose(x_nchw, (0, 2, 3, 1)).astype(cdt)   # NHWC
    x2 = x.reshape(m, c1)

    # cv1: 1x1 conv + BN + SiLU
    y = conv1x1_bn_silu(x2, packed["cv1_w"], packed["cv1_s"], packed["cv1_b"],
                        out_dtype=cdt, block_m=block_m)

    # Bottleneck chain (hidden width == c_ since e=1.0 inside BottleneckCSP)
    for blk in packed["m"]:
        t = conv1x1_bn_silu(y, blk["cv1_w"], blk["cv1_s"], blk["cv1_b"],
                            out_dtype=cdt, block_m=block_m)
        res = y.reshape(n, h * w, c_) if shortcut else None
        y = conv3x3_bn_silu(t.reshape(n, h, w, c_), blk["cv2_w"],
                            blk["cv2_s"], blk["cv2_b"], res,
                            out_dtype=cdt).reshape(m, c_)

    # Fused tail: cv3(y), cv2(x), Concat, BN, SiLU, cv4, BN, SiLU — one kernel.
    out2 = csp_tail(y, x2, packed, out_dtype=jnp.float32, block_m=block_m)
    c2 = out2.shape[1]
    return jnp.transpose(out2.reshape(n, h, w, c2), (0, 3, 1, 2))   # back to NCHW


# ----------------------------------------------------------------------------
# Pure-JAX reference (mirrors the PyTorch module in eval mode)
# ----------------------------------------------------------------------------
def bottleneck_csp_ref(x, params, shortcut=True, eps=1e-5):
    def conv(x, w, pad=0):
        return jax.lax.conv_general_dilated(
            x, w, (1, 1), [(pad, pad), (pad, pad)],
            dimension_numbers=("NCHW", "OIHW", "NCHW"))

    def bn(x, p):
        g, b, m, v = p
        sh = (1, -1, 1, 1)
        return (x - m.reshape(sh)) / jnp.sqrt(v.reshape(sh) + eps) * g.reshape(sh) + b.reshape(sh)

    silu = lambda z: z * jax.nn.sigmoid(z)

    def conv_block(x, w, bnp, k):
        return silu(bn(conv(x, w, pad=k // 2), bnp))

    y = conv_block(x, params["cv1_w"], params["cv1_bn"], 1)
    for blk in params["m"]:
        t = conv_block(y, blk["cv1_w"], blk["cv1_bn"], 1)
        t = conv_block(t, blk["cv2_w"], blk["cv2_bn"], 3)
        y = y + t if shortcut else t
    y1 = conv(y, params["cv3_w"])
    y2 = conv(x, params["cv2_w"])
    cat = jnp.concatenate([y1, y2], axis=1)
    z = silu(bn(cat, params["bn"]))
    return conv_block(z, params["cv4_w"], params["cv4_bn"], 1)


# ----------------------------------------------------------------------------
if __name__ == "__main__":
    key = jax.random.PRNGKey(0)
    k_param, k_x = jax.random.split(key)

    N, C1, H, W = 2, 4, 16, 16
    C2, n_blocks = 4, 1

    params, _ = init_params(k_param, C1, C2, n=n_blocks, e=0.5)
    x = jax.random.normal(k_x, (N, C1, H, W), jnp.float32)

    forward = jax.jit(bottleneck_csp_pallas, static_argnames=("shortcut", "block_m"))
    ref = jax.block_until_ready(bottleneck_csp_ref(x, params, shortcut=True))

    # f32 operand path — strict numerics check (block_m=128 exercises a multi-step grid).
    packed_f32 = pack_params(params, jnp.float32)
    out = jax.block_until_ready(forward(x, packed_f32, shortcut=True, block_m=128))
    assert out.shape == (N, C2, H, W), out.shape
    assert jnp.allclose(out, ref, atol=1e-3, rtol=1e-3), float(jnp.max(jnp.abs(out - ref)))

    # bf16 operand path (v6e/v7x MXU; f32 accumulation + epilogue) — looser tolerance.
    packed_bf16 = pack_params(params, jnp.bfloat16)
    out_bf16 = jax.block_until_ready(forward(x, packed_bf16, shortcut=True, block_m=128))
    assert jnp.allclose(out_bf16, ref, atol=5e-2, rtol=5e-2), \
        float(jnp.max(jnp.abs(out_bf16 - ref)))

    print("KERNEL_OK")
</pallas_src>

<mosaic_0001>
module attributes {stable_mosaic.version = 11 : i64} {
  func.func @_conv1x1_bn_silu_kernel(%arg0: i32, %arg1: memref<128x4xf32, #tpu.memory_space<vmem>>, %arg2: memref<4x2xf32, #tpu.memory_space<vmem>>, %arg3: memref<1x2xf32, #tpu.memory_space<vmem>>, %arg4: memref<1x2xf32, #tpu.memory_space<vmem>>, %arg5: memref<128x2xf32, #tpu.memory_space<vmem>>) attributes {dimension_semantics = [#tpu.dimension_semantics<parallel>], iteration_bounds = array<i64: 4>, scalar_prefetch = 0 : i64, scratch_operands = 0 : i64, tpu.core_type = #tpu.core_type<tc>, window_params = [{transform_indices = @transform_0, window_bounds = array<i64: 128, 4>}, {pipeline_mode = #tpu.pipeline_mode<synchronous>, transform_indices = @transform_1, window_bounds = array<i64: 4, 2>}, {pipeline_mode = #tpu.pipeline_mode<synchronous>, transform_indices = @transform_2, window_bounds = array<i64: 1, 2>}, {pipeline_mode = #tpu.pipeline_mode<synchronous>, transform_indices = @transform_3, window_bounds = array<i64: 1, 2>}, {transform_indices = @transform_4, window_bounds = array<i64: 128, 2>}]} {
    %c0 = arith.constant 0 : index
    %c0_0 = arith.constant 0 : index
    %0 = vector.load %arg1[%c0, %c0_0] : memref<128x4xf32, #tpu.memory_space<vmem>>, vector<128x4xf32>
    %c0_1 = arith.constant 0 : index
    %c0_2 = arith.constant 0 : index
    %1 = vector.load %arg2[%c0_1, %c0_2] : memref<4x2xf32, #tpu.memory_space<vmem>>, vector<4x2xf32>
    %cst = arith.constant dense<0.000000e+00> : vector<128x2xf32>
    %2 = tpu.matmul %0, %1, %cst {dimension_numbers = #tpu.dot_dimension_numbers<[1], [0], [0], [1], [0, 0, 1, 1], [], []>} : vector<128x4xf32>, vector<4x2xf32>, vector<128x2xf32> -> vector<128x2xf32>
    %c0_3 = arith.constant 0 : index
    %c0_4 = arith.constant 0 : index
    %3 = vector.load %arg3[%c0_3, %c0_4] : memref<1x2xf32, #tpu.memory_space<vmem>>, vector<1x2xf32>
    %4 = vector.broadcast %3 : vector<1x2xf32> to vector<128x2xf32>
    %5 = arith.mulf %2, %4 : vector<128x2xf32>
    %c0_5 = arith.constant 0 : index
    %c0_6 = arith.constant 0 : index
    %6 = vector.load %arg4[%c0_5, %c0_6] : memref<1x2xf32, #tpu.memory_space<vmem>>, vector<1x2xf32>
    %7 = vector.broadcast %6 : vector<1x2xf32> to vector<128x2xf32>
    %8 = arith.addf %5, %7 : vector<128x2xf32>
    %9 = arith.negf %8 : vector<128x2xf32>
    %10 = math.exp %9 : vector<128x2xf32>
    %cst_7 = arith.constant 1.000000e+00 : f32
    %11 = vector.broadcast %cst_7 : f32 to vector<128x2xf32>
    %12 = arith.addf %11, %10 : vector<128x2xf32>
    %13 = arith.divf %11, %12 : vector<128x2xf32>
    %14 = arith.mulf %8, %13 : vector<128x2xf32>
    %c0_8 = arith.constant 0 : index
    %c0_9 = arith.constant 0 : index
    %15 = vector.load %arg5[%c0_8, %c0_9] : memref<128x2xf32, #tpu.memory_space<vmem>>, vector<128x2xf32>
    tpu.vector_store %arg5[%c0_8, %c0_9], %14 {strides = array<i32>} : memref<128x2xf32, #tpu.memory_space<vmem>>, vector<128x2xf32>,
    return
  }
  func.func @transform_0(%arg0: i32) -> (i32, i32) {
    %c0_i32 = arith.constant 0 : i32
    %c0_i32_0 = arith.constant 0 : i32
    return %arg0, %c0_i32 : i32, i32
  }
  func.func @transform_1(%arg0: i32) -> (i32, i32) {
    %c0_i32 = arith.constant 0 : i32
    %c0_i32_0 = arith.constant 0 : i32
    %c0_i32_1 = arith.constant 0 : i32
    return %c0_i32, %c0_i32_0 : i32, i32
  }
  func.func @transform_2(%arg0: i32) -> (i32, i32) {
    %c0_i32 = arith.constant 0 : i32
    %c0_i32_0 = arith.constant 0 : i32
    %c0_i32_1 = arith.constant 0 : i32
    return %c0_i32, %c0_i32_0 : i32, i32
  }
  func.func @transform_3(%arg0: i32) -> (i32, i32) {
    %c0_i32 = arith.constant 0 : i32
    %c0_i32_0 = arith.constant 0 : i32
    %c0_i32_1 = arith.constant 0 : i32
    return %c0_i32, %c0_i32_0 : i32, i32
  }
  func.func @transform_4(%arg0: i32) -> (i32, i32) {
    %c0_i32 = arith.constant 0 : i32
    %c0_i32_0 = arith.constant 0 : i32
    return %arg0, %c0_i32 : i32, i32
  }
}

module attributes {stable_mosaic.version = 11 : i64} {
  func.func @_conv1x1_bn_silu_kernel(%arg0: i32, %arg1: memref<128x2xf32, #tpu.memory_space<vmem>>, %arg2: memref<2x2xf32, #tpu.memory_space<vmem>>, %arg3: memref<1x2xf32, #tpu.memory_space<vmem>>, %arg4: memref<1x2xf32, #tpu.memory_space<vmem>>, %arg5: memref<128x2xf32, #tpu.memory_space<vmem>>) attributes {dimension_semantics = [#tpu.dimension_semantics<parallel>], iteration_bounds = array<i64: 4>, scalar_prefetch = 0 : i64, scratch_operands = 0 : i64, tpu.core_type = #tpu.core_type<tc>, window_params = [{transform_indices = @transform_0, window_bounds = array<i64: 128, 2>}, {pipeline_mode = #tpu.pipeline_mode<synchronous>, transform_indices = @transform_1, window_bounds = array<i64: 2, 2>}, {pipeline_mode = #tpu.pipeline_mode<synchronous>, transform_indices = @transform_2, window_bounds = array<i64: 1, 2>}, {pipeline_mode = #tpu.pipeline_mode<synchronous>, transform_indices = @transform_3, window_bounds = array<i64: 1, 2>}, {transform_indices = @transform_4, window_bounds = array<i64: 128, 2>}]} {
    %c0 = arith.constant 0 : index
    %c0_0 = arith.constant 0 : index
    %0 = vector.load %arg1[%c0, %c0_0] : memref<128x2xf32, #tpu.memory_space<vmem>>, vector<128x2xf32>
    %c0_1 = arith.constant 0 : index
    %c0_2 = arith.constant 0 : index
    %1 = vector.load %arg2[%c0_1, %c0_2] : memref<2x2xf32, #tpu.memory_space<vmem>>, vector<2x2xf32>
    %cst = arith.constant dense<0.000000e+00> : vector<128x2xf32>
    %2 = tpu.matmul %0, %1, %cst {dimension_numbers = #tpu.dot_dimension_numbers<[1], [0], [0], [1], [0, 0, 1, 1], [], []>} : vector<128x2xf32>, vector<2x2xf32>, vector<128x2xf32> -> vector<128x2xf32>
    %c0_3 = arith.constant 0 : index
    %c0_4 = arith.constant 0 : index
    %3 = vector.load %arg3[%c0_3, %c0_4] : memref<1x2xf32, #tpu.memory_space<vmem>>, vector<1x2xf32>
    %4 = vector.broadcast %3 : vector<1x2xf32> to vector<128x2xf32>
    %5 = arith.mulf %2, %4 : vector<128x2xf32>
    %c0_5 = arith.constant 0 : index
    %c0_6 = arith.constant 0 : index
    %6 = vector.load %arg4[%c0_5, %c0_6] : memref<1x2xf32, #tpu.memory_space<vmem>>, vector<1x2xf32>
    %7 = vector.broadcast %6 : vector<1x2xf32> to vector<128x2xf32>
    %8 = arith.addf %5, %7 : vector<128x2xf32>
    %9 = arith.negf %8 : vector<128x2xf32>
    %10 = math.exp %9 : vector<128x2xf32>
    %cst_7 = arith.constant 1.000000e+00 : f32
    %11 = vector.broadcast %cst_7 : f32 to vector<128x2xf32>
    %12 = arith.addf %11, %10 : vector<128x2xf32>
    %13 = arith.divf %11, %12 : vector<128x2xf32>
    %14 = arith.mulf %8, %13 : vector<128x2xf32>
    %c0_8 = arith.constant 0 : index
    %c0_9 = arith.constant 0 : index
    %15 = vector.load %arg5[%c0_8, %c0_9] : memref<128x2xf32, #tpu.memory_space<vmem>>, vector<128x2xf32>
    tpu.vector_store %arg5[%c0_8, %c0_9], %14 {strides = array<i32>} : memref<128x2xf32, #tpu.memory_space<vmem>>, vector<128x2xf32>,
    return
  }
  func.func @transform_0(%arg0: i32) -> (i32, i32) {
    %c0_i32 = arith.constant 0 : i32
    %c0_i32_0 = arith.constant 0 : i32
    return %arg0, %c0_i32 : i32, i32
  }
  func.func @transform_1(%arg0: i32) -> (i32, i32) {
    %c0_i32 = arith.constant 0 : i32
    %c0_i32_0 = arith.constant 0 : i32
    %c0_i32_1 = arith.constant 0 : i32
    return %c0_i32, %c0_i32_0 : i32, i32
  }
  func.func @transform_2(%arg0: i32) -> (i32, i32) {
    %c0_i32 = arith.constant 0 : i32
    %c0_i32_0 = arith.constant 0 : i32
    %c0_i32_1 = arith.constant 0 : i32
    return %c0_i32, %c0_i32_0 : i32, i32
  }
  func.func @transform_3(%arg0: i32) -> (i32, i32) {
    %c0_i32 = arith.constant 0 : i32
    %c0_i32_0 = arith.constant 0 : i32
    %c0_i32_1 = arith.constant 0 : i32
    return %c0_i32, %c0_i32_0 : i32, i32
  }
  func.func @transform_4(%arg0: i32) -> (i32, i32) {
    %c0_i32 = arith.constant 0 : i32
    %c0_i32_0 = arith.constant 0 : i32
    return %arg0, %c0_i32 : i32, i32
  }
}

module attributes {stable_mosaic.version = 11 : i64} {
  func.func @_conv3x3_bn_silu_res_kernel(%arg0: i32, %arg1: memref<1x18x18x2xf32, #tpu.memory_space<vmem>>, %arg2: memref<3x3x2x2xf32, #tpu.memory_space<vmem>>, %arg3: memref<1x2xf32, #tpu.memory_space<vmem>>, %arg4: memref<1x2xf32, #tpu.memory_space<vmem>>, %arg5: memref<1x256x2xf32, #tpu.memory_space<vmem>>, %arg6: memref<1x256x2xf32, #tpu.memory_space<vmem>>) attributes {dimension_semantics = [#tpu.dimension_semantics<parallel>], iteration_bounds = array<i64: 2>, scalar_prefetch = 0 : i64, scratch_operands = 0 : i64, tpu.core_type = #tpu.core_type<tc>, window_params = [{transform_indices = @transform_0, window_bounds = array<i64: 1, 18, 18, 2>}, {pipeline_mode = #tpu.pipeline_mode<synchronous>, transform_indices = @transform_1, window_bounds = array<i64: 3, 3, 2, 2>}, {pipeline_mode = #tpu.pipeline_mode<synchronous>, transform_indices = @transform_2, window_bounds = array<i64: 1, 2>}, {pipeline_mode = #tpu.pipeline_mode<synchronous>, transform_indices = @transform_3, window_bounds = array<i64: 1, 2>}, {transform_indices = @transform_4, window_bounds = array<i64: 1, 256, 2>}, {transform_indices = @transform_5, window_bounds = array<i64: 1, 256, 2>}]} {
    %c0 = arith.constant 0 : index
    %c0_0 = arith.constant 0 : index
    %c0_1 = arith.constant 0 : index
    %c0_2 = arith.constant 0 : index
    %0 = vector.load %arg1[%c0, %c0_0, %c0_1, %c0_2] : memref<1x18x18x2xf32, #tpu.memory_space<vmem>>, vector<1x18x18x2xf32>
    %1 = vector.shape_cast %0 : vector<1x18x18x2xf32> to vector<18x18x2xf32>
    %cst = arith.constant 0.000000e+00 : f32
    %2 = vector.broadcast %cst : f32 to vector<256x2xf32>
    %3 = vector.extract_strided_slice %1 {offsets = [0, 0, 0], sizes = [16, 16, 2], strides = [1, 1, 1]} : vector<18x18x2xf32> to vector<16x16x2xf32>
    %4 = vector.shape_cast %3 : vector<16x16x2xf32> to vector<256x2xf32>
    %c0_3 = arith.constant 0 : index
    %c0_4 = arith.constant 0 : index
    %c0_5 = arith.constant 0 : index
    %c0_6 = arith.constant 0 : index
    %5 = vector.load %arg2[%c0_3, %c0_4, %c0_5, %c0_6] : memref<3x3x2x2xf32, #tpu.memory_space<vmem>>, vector<1x1x2x2xf32>
    %6 = vector.shape_cast %5 : vector<1x1x2x2xf32> to vector<2x2xf32>
    %cst_7 = arith.constant dense<0.000000e+00> : vector<256x2xf32>
    %7 = tpu.matmul %4, %6, %cst_7 {dimension_numbers = #tpu.dot_dimension_numbers<[1], [0], [0], [1], [0, 0, 1, 1], [], []>} : vector<256x2xf32>, vector<2x2xf32>, vector<256x2xf32> -> vector<256x2xf32>
    %8 = arith.addf %2, %7 : vector<256x2xf32>
    %9 = vector.extract_strided_slice %1 {offsets = [0, 1, 0], sizes = [16, 16, 2], strides = [1, 1, 1]} : vector<18x18x2xf32> to vector<16x16x2xf32>
    %10 = vector.shape_cast %9 : vector<16x16x2xf32> to vector<256x2xf32>
    %c0_8 = arith.constant 0 : index
    %c1 = arith.constant 1 : index
    %c0_9 = arith.constant 0 : index
    %c0_10 = arith.constant 0 : index
    %11 = vector.load %arg2[%c0_8, %c1, %c0_9, %c0_10] : memref<3x3x2x2xf32, #tpu.memory_space<vmem>>, vector<1x1x2x2xf32>
    %12 = vector.shape_cast %11 : vector<1x1x2x2xf32> to vector<2x2xf32>
    %cst_11 = arith.constant dense<0.000000e+00> : vector<256x2xf32>
    %13 = tpu.matmul %10, %12, %cst_11 {dimension_numbers = #tpu.dot_dimension_numbers<[1], [0], [0], [1], [0, 0, 1, 1], [], []>} : vector<256x2xf32>, vector<2x2xf32>, vector<256x2xf32> -> vector<256x2xf32>
    %14 = arith.addf %8, %13 : vector<256x2xf32>
    %15 = vector.extract_strided_slice %1 {offsets = [0, 2, 0], sizes = [16, 16, 2], strides = [1, 1, 1]} : vector<18x18x2xf32> to vector<16x16x2xf32>
    %16 = vector.shape_cast %15 : vector<16x16x2xf32> to vector<256x2xf32>
    %c0_12 = arith.constant 0 : index
    %c2 = arith.constant 2 : index
    %c0_13 = arith.constant 0 : index
    %c0_14 = arith.constant 0 : index
    %17 = vector.load %arg2[%c0_12, %c2, %c0_13, %c0_14] : memref<3x3x2x2xf32, #tpu.memory_space<vmem>>, vector<1x1x2x2xf32>
    %18 = vector.shape_cast %17 : vector<1x1x2x2xf32> to vector<2x2xf32>
    %cst_15 = arith.constant dense<0.000000e+00> : vector<256x2xf32>
    %19 = tpu.matmul %16, %18, %cst_15 {dimension_numbers = #tpu.dot_dimension_numbers<[1], [0], [0], [1], [0, 0, 1, 1], [], []>} : vector<256x2xf32>, vector<2x2xf32>, vector<256x2xf32> -> vector<256x2xf32>
    %20 = arith.addf %14, %19 : vector<256x2xf32>
    %21 = vector.extract_strided_slice %1 {offsets = [1, 0, 0], sizes = [16, 16, 2], strides = [1, 1, 1]} : vector<18x18x2xf32> to vector<16x16x2xf32>
    %22 = vector.shape_cast %21 : vector<16x16x2xf32> to vector<256x2xf32>
    %c1_16 = arith.constant 1 : index
    %c0_17 = arith.constant 0 : index
    %c0_18 = arith.constant 0 : index
    %c0_19 = arith.constant 0 : index
    %23 = vector.load %arg2[%c1_16, %c0_17, %c0_18, %c0_19] : memref<3x3x2x2xf32, #tpu.memory_space<vmem>>, vector<1x1x2x2xf32>
    %24 = vector.shape_cast %23 : vector<1x1x2x2xf32> to vector<2x2xf32>
    %cst_20 = arith.constant dense<0.000000e+00> : vector<256x2xf32>
    %25 = tpu.matmul %22, %24, %cst_20 {dimension_numbers = #tpu.dot_dimension_numbers<[1], [0], [0], [1], [0, 0, 1, 1], [], []>} : vector<256x2xf32>, vector<2x2xf32>, vector<256x2xf32> -> vector<256x2xf32>
    %26 = arith.addf %20, %25 : vector<256x2xf32>
    %27 = vector.extract_strided_slice %1 {offsets = [1, 1, 0], sizes = [16, 16, 2], strides = [1, 1, 1]} : vector<18x18x2xf32> to vector<16x16x2xf32>
    %28 = vector.shape_cast %27 : vector<16x16x2xf32> to vector<256x2xf32>
    %c1_21 = arith.constant 1 : index
    %c1_22 = arith.constant 1 : index
    %c0_23 = arith.constant 0 : index
    %c0_24 = arith.constant 0 : index
    %29 = vector.load %arg2[%c1_21, %c1_22, %c0_23, %c0_24] : memref<3x3x2x2xf32, #tpu.memory_space<vmem>>, vector<1x1x2x2xf32>
    %30 = vector.shape_cast %29 : vector<1x1x2x2xf32> to vector<2x2xf32>
    %cst_25 = arith.constant dense<0.000000e+00> : vector<256x2xf32>
    %31 = tpu.matmul %28, %30, %cst_25 {dimension_numbers = #tpu.dot_dimension_numbers<[1], [0], [0], [1], [0, 0, 1, 1], [], []>} : vector<256x2xf32>, vector<2x2xf32>, vector<256x2xf32> -> vector<256x2xf32>
    %32 = arith.addf %26, %31 : vector<256x2xf32>
    %33 = vector.extract_strided_slice %1 {offsets = [1, 2, 0], sizes = [16, 16, 2], strides = [1, 1, 1]} : vector<18x18x2xf32> to vector<16x16x2xf32>
    %34 = vector.shape_cast %33 : vector<16x16x2xf32> to vector<256x2xf32>
    %c1_26 = arith.constant 1 : index
    %c2_27 = arith.constant 2 : index
    %c0_28 = arith.constant 0 : index
    %c0_29 = arith.constant 0 : index
    %35 = vector.load %arg2[%c1_26, %c2_27, %c0_28, %c0_29] : memref<3x3x2x2xf32, #tpu.memory_space<vmem>>, vector<1x1x2x2xf32>
    %36 = vector.shape_cast %35 : vector<1x1x2x2xf32> to vector<2x2xf32>
    %cst_30 = arith.constant dense<0.000000e+00> : vector<256x2xf32>
    %37 = tpu.matmul %34, %36, %cst_30 {dimension_numbers = #tpu.dot_dimension_numbers<[1], [0], [0], [1], [0, 0, 1, 1], [], []>} : vector<256x2xf32>, vector<2x2xf32>, vector<256x2xf32> -> vector<256x2xf32>
    %38 = arith.addf %32, %37 : vector<256x2xf32>
    %39 = vector.extract_strided_slice %1 {offsets = [2, 0, 0], sizes = [16, 16, 2], strides = [1, 1, 1]} : vector<18x18x2xf32> to vector<16x16x2xf32>
    %40 = vector.shape_cast %39 : vector<16x16x2xf32> to vector<256x2xf32>
    %c2_31 = arith.constant 2 : index
    %c0_32 = arith.constant 0 : index
    %c0_33 = arith.constant 0 : index
    %c0_34 = arith.constant 0 : index
    %41 = vector.load %arg2[%c2_31, %c0_32, %c0_33, %c0_34] : memref<3x3x2x2xf32, #tpu.memory_space<vmem>>, vector<1x1x2x2xf32>
    %42 = vector.shape_cast %41 : vector<1x1x2x2xf32> to vector<2x2xf32>
    %cst_35 = arith.constant dense<0.000000e+00> : vector<256x2xf32>
    %43 = tpu.matmul %40, %42, %cst_35 {dimension_numbers = #tpu.dot_dimension_numbers<[1], [0], [0], [1], [0, 0, 1, 1], [], []>} : vector<256x2xf32>, vector<2x2xf32>, vector<256x2xf32> -> vector<256x2xf32>
    %44 = arith.addf %38, %43 : vector<256x2xf32>
    %45 = vector.extract_strided_slice %1 {offsets = [2, 1, 0], sizes = [16, 16, 2], strides = [1, 1, 1]} : vector<18x18x2xf32> to vector<16x16x2xf32>
    %46 = vector.shape_cast %45 : vector<16x16x2xf32> to vector<256x2xf32>
    %c2_36 = arith.constant 2 : index
    %c1_37 = arith.constant 1 : index
    %c0_38 = arith.constant 0 : index
    %c0_39 = arith.constant 0 : index
    %47 = vector.load %arg2[%c2_36, %c1_37, %c0_38, %c0_39] : memref<3x3x2x2xf32, #tpu.memory_space<vmem>>, vector<1x1x2x2xf32>
    %48 = vector.shape_cast %47 : vector<1x1x2x2xf32> to vector<2x2xf32>
    %cst_40 = arith.constant dense<0.000000e+00> : vector<256x2xf32>
    %49 = tpu.matmul %46, %48, %cst_40 {dimension_numbers = #tpu.dot_dimension_numbers<[1], [0], [0], [1], [0, 0, 1, 1], [], []>} : vector<256x2xf32>, vector<2x2xf32>, vector<256x2xf32> -> vector<256x2xf32>
    %50 = arith.addf %44, %49 : vector<256x2xf32>
    %51 = vector.extract_strided_slice %1 {offsets = [2, 2, 0], sizes = [16, 16, 2], strides = [1, 1, 1]} : vector<18x18x2xf32> to vector<16x16x2xf32>
    %52 = vector.shape_cast %51 : vector<16x16x2xf32> to vector<256x2xf32>
    %c2_41 = arith.constant 2 : index
    %c2_42 = arith.constant 2 : index
    %c0_43 = arith.constant 0 : index
    %c0_44 = arith.constant 0 : index
    %53 = vector.load %arg2[%c2_41, %c2_42, %c0_43, %c0_44] : memref<3x3x2x2xf32, #tpu.memory_space<vmem>>, vector<1x1x2x2xf32>
    %54 = vector.shape_cast %53 : vector<1x1x2x2xf32> to vector<2x2xf32>
    %cst_45 = arith.constant dense<0.000000e+00> : vector<256x2xf32>
    %55 = tpu.matmul %52, %54, %cst_45 {dimension_numbers = #tpu.dot_dimension_numbers<[1], [0], [0], [1], [0, 0, 1, 1], [], []>} : vector<256x2xf32>, vector<2x2xf32>, vector<256x2xf32> -> vector<256x2xf32>
    %56 = arith.addf %50, %55 : vector<256x2xf32>
    %c0_46 = arith.constant 0 : index
    %c0_47 = arith.constant 0 : index
    %57 = vector.load %arg3[%c0_46, %c0_47] : memref<1x2xf32, #tpu.memory_space<vmem>>, vector<1x2xf32>
    %58 = vector.broadcast %57 : vector<1x2xf32> to vector<256x2xf32>
    %59 = arith.mulf %56, %58 : vector<256x2xf32>
    %c0_48 = arith.constant 0 : index
    %c0_49 = arith.constant 0 : index
    %60 = vector.load %arg4[%c0_48, %c0_49] : memref<1x2xf32, #tpu.memory_space<vmem>>, vector<1x2xf32>
    %61 = vector.broadcast %60 : vector<1x2xf32> to vector<256x2xf32>
    %62 = arith.addf %59, %61 : vector<256x2xf32>
    %63 = arith.negf %62 : vector<256x2xf32>
    %64 = math.exp %63 : vector<256x2xf32>
    %cst_50 = arith.constant 1.000000e+00 : f32
    %65 = vector.broadcast %cst_50 : f32 to vector<256x2xf32>
    %66 = arith.addf %65, %64 : vector<256x2xf32>
    %67 = arith.divf %65, %66 : vector<256x2xf32>
    %68 = arith.mulf %62, %67 : vector<256x2xf32>
    %c0_51 = arith.constant 0 : index
    %c0_52 = arith.constant 0 : index
    %c0_53 = arith.constant 0 : index
    %69 = vector.load %arg5[%c0_51, %c0_52, %c0_53] : memref<1x256x2xf32, #tpu.memory_space<vmem>>, vector<1x256x2xf32>
    %70 = vector.shape_cast %69 : vector<1x256x2xf32> to vector<256x2xf32>
    %71 = arith.addf %68, %70 : vector<256x2xf32>
    %c0_54 = arith.constant 0 : index
    %c0_55 = arith.constant 0 : index
    %c0_56 = arith.constant 0 : index
    %72 = vector.load %arg6[%c0_54, %c0_55, %c0_56] : memref<1x256x2xf32, #tpu.memory_space<vmem>>, vector<1x256x2xf32>
    %73 = vector.shape_cast %72 : vector<1x256x2xf32> to vector<256x2xf32>
    %74 = vector.shape_cast %71 : vector<256x2xf32> to vector<1x256x2xf32>
    tpu.vector_store %arg6[%c0_54, %c0_55, %c0_56], %74 {strides = array<i32>} : memref<1x256x2xf32, #tpu.memory_space<vmem>>, vector<1x256x2xf32>,
    return
  }
  func.func @transform_0(%arg0: i32) -> (i32, i32, i32, i32) {
    %c0_i32 = arith.constant 0 : i32
    %c0_i32_0 = arith.constant 0 : i32
    %c0_i32_1 = arith.constant 0 : i32
    %c0_i32_2 = arith.constant 0 : i32
    return %arg0, %c0_i32, %c0_i32_0, %c0_i32_1 : i32, i32, i32, i32
  }
  func.func @transform_1(%arg0: i32) -> (i32, i32, i32, i32) {
    %c0_i32 = arith.constant 0 : i32
    %c0_i32_0 = arith.constant 0 : i32
    %c0_i32_1 = arith.constant 0 : i32
    %c0_i32_2 = arith.constant 0 : i32
    %c0_i32_3 = arith.constant 0 : i32
    return %c0_i32, %c0_i32_0, %c0_i32_1, %c0_i32_2 : i32, i32, i32, i32
  }
  func.func @transform_2(%arg0: i32) -> (i32, i32) {
    %c0_i32 = arith.constant 0 : i32
    %c0_i32_0 = arith.constant 0 : i32
    %c0_i32_1 = arith.constant 0 : i32
    return %c0_i32, %c0_i32_0 : i32, i32
  }
  func.func @transform_3(%arg0: i32) -> (i32, i32) {
    %c0_i32 = arith.constant 0 : i32
    %c0_i32_0 = arith.constant 0 : i32
    %c0_i32_1 = arith.constant 0 : i32
    return %c0_i32, %c0_i32_0 : i32, i32
  }
  func.func @transform_4(%arg0: i32) -> (i32, i32, i32) {
    %c0_i32 = arith.constant 0 : i32
    %c0_i32_0 = arith.constant 0 : i32
    %c0_i32_1 = arith.constant 0 : i32
    return %arg0, %c0_i32, %c0_i32_0 : i32, i32, i32
  }
  func.func @transform_5(%arg0: i32) -> (i32, i32, i32) {
    %c0_i32 = arith.constant 0 : i32
    %c0_i32_0 = arith.constant 0 : i32
    %c0_i32_1 = arith.constant 0 : i32
    return %arg0, %c0_i32, %c0_i32_0 : i32, i32, i32
  }
}

module attributes {stable_mosaic.version = 11 : i64} {
  func.func @_csp_tail_kernel(%arg0: i32, %arg1: memref<128x2xf32, #tpu.memory_space<vmem>>, %arg2: memref<128x4xf32, #tpu.memory_space<vmem>>, %arg3: memref<2x2xf32, #tpu.memory_space<vmem>>, %arg4: memref<4x2xf32, #tpu.memory_space<vmem>>, %arg5: memref<1x2xf32, #tpu.memory_space<vmem>>, %arg6: memref<1x2xf32, #tpu.memory_space<vmem>>, %arg7: memref<1x2xf32, #tpu.memory_space<vmem>>, %arg8: memref<1x2xf32, #tpu.memory_space<vmem>>, %arg9: memref<2x4xf32, #tpu.memory_space<vmem>>, %arg10: memref<2x4xf32, #tpu.memory_space<vmem>>, %arg11: memref<1x4xf32, #tpu.memory_space<vmem>>, %arg12: memref<1x4xf32, #tpu.memory_space<vmem>>, %arg13: memref<128x4xf32, #tpu.memory_space<vmem>>) attributes {dimension_semantics = [#tpu.dimension_semantics<parallel>], iteration_bounds = array<i64: 4>, scalar_prefetch = 0 : i64, scratch_operands = 0 : i64, tpu.core_type = #tpu.core_type<tc>, window_params = [{transform_indices = @transform_0, window_bounds = array<i64: 128, 2>}, {transform_indices = @transform_1, window_bounds = array<i64: 128, 4>}, {pipeline_mode = #tpu.pipeline_mode<synchronous>, transform_indices = @transform_2, window_bounds = array<i64: 2, 2>}, {pipeline_mode = #tpu.pipeline_mode<synchronous>, transform_indices = @transform_3, window_bounds = array<i64: 4, 2>}, {pipeline_mode = #tpu.pipeline_mode<synchronous>, transform_indices = @transform_4, window_bounds = array<i64: 1, 2>}, {pipeline_mode = #tpu.pipeline_mode<synchronous>, transform_indices = @transform_5, window_bounds = array<i64: 1, 2>}, {pipeline_mode = #tpu.pipeline_mode<synchronous>, transform_indices = @transform_6, window_bounds = array<i64: 1, 2>}, {pipeline_mode = #tpu.pipeline_mode<synchronous>, transform_indices = @transform_7, window_bounds = array<i64: 1, 2>}, {pipeline_mode = #tpu.pipeline_mode<synchronous>, transform_indices = @transform_8, window_bounds = array<i64: 2, 4>}, {pipeline_mode = #tpu.pipeline_mode<synchronous>, transform_indices = @transform_9, window_bounds = array<i64: 2, 4>}, {pipeline_mode = #tpu.pipeline_mode<synchronous>, transform_indices = @transform_10, window_bounds = array<i64: 1, 4>}, {pipeline_mode = #tpu.pipeline_mode<synchronous>, transform_indices = @transform_11, window_bounds = array<i64: 1, 4>}, {transform_indices = @transform_12, window_bounds = array<i64: 128, 4>}]} {
    %c0 = arith.constant 0 : index
    %c0_0 = arith.constant 0 : index
    %0 = vector.load %arg1[%c0, %c0_0] : memref<128x2xf32, #tpu.memory_space<vmem>>, vector<128x2xf32>
    %c0_1 = arith.constant 0 : index
    %c0_2 = arith.constant 0 : index
    %1 = vector.load %arg3[%c0_1, %c0_2] : memref<2x2xf32, #tpu.memory_space<vmem>>, vector<2x2xf32>
    %cst = arith.constant dense<0.000000e+00> : vector<128x2xf32>
    %2 = tpu.matmul %0, %1, %cst {dimension_numbers = #tpu.dot_dimension_numbers<[1], [0], [0], [1], [0, 0, 1, 1], [], []>} : vector<128x2xf32>, vector<2x2xf32>, vector<128x2xf32> -> vector<128x2xf32>
    %c0_3 = arith.constant 0 : index
    %c0_4 = arith.constant 0 : index
    %3 = vector.load %arg5[%c0_3, %c0_4] : memref<1x2xf32, #tpu.memory_space<vmem>>, vector<1x2xf32>
    %4 = vector.broadcast %3 : vector<1x2xf32> to vector<128x2xf32>
    %5 = arith.mulf %2, %4 : vector<128x2xf32>
    %c0_5 = arith.constant 0 : index
    %c0_6 = arith.constant 0 : index
    %6 = vector.load %arg6[%c0_5, %c0_6] : memref<1x2xf32, #tpu.memory_space<vmem>>, vector<1x2xf32>
    %7 = vector.broadcast %6 : vector<1x2xf32> to vector<128x2xf32>
    %8 = arith.addf %5, %7 : vector<128x2xf32>
    %9 = arith.negf %8 : vector<128x2xf32>
    %10 = math.exp %9 : vector<128x2xf32>
    %cst_7 = arith.constant 1.000000e+00 : f32
    %11 = vector.broadcast %cst_7 : f32 to vector<128x2xf32>
    %12 = arith.addf %11, %10 : vector<128x2xf32>
    %13 = arith.divf %11, %12 : vector<128x2xf32>
    %14 = arith.mulf %8, %13 : vector<128x2xf32>
    %c0_8 = arith.constant 0 : index
    %c0_9 = arith.constant 0 : index
    %15 = vector.load %arg2[%c0_8, %c0_9] : memref<128x4xf32, #tpu.memory_space<vmem>>, vector<128x4xf32>
    %c0_10 = arith.constant 0 : index
    %c0_11 = arith.constant 0 : index
    %16 = vector.load %arg4[%c0_10, %c0_11] : memref<4x2xf32, #tpu.memory_space<vmem>>, vector<4x2xf32>
    %cst_12 = arith.constant dense<0.000000e+00> : vector<128x2xf32>
    %17 = tpu.matmul %15, %16, %cst_12 {dimension_numbers = #tpu.dot_dimension_numbers<[1], [0], [0], [1], [0, 0, 1, 1], [], []>} : vector<128x4xf32>, vector<4x2xf32>, vector<128x2xf32> -> vector<128x2xf32>
    %c0_13 = arith.constant 0 : index
    %c0_14 = arith.constant 0 : index
    %18 = vector.load %arg7[%c0_13, %c0_14] : memref<1x2xf32, #tpu.memory_space<vmem>>, vector<1x2xf32>
    %19 = vector.broadcast %18 : vector<1x2xf32> to vector<128x2xf32>
    %20 = arith.mulf %17, %19 : vector<128x2xf32>
    %c0_15 = arith.constant 0 : index
    %c0_16 = arith.constant 0 : index
    %21 = vector.load %arg8[%c0_15, %c0_16] : memref<1x2xf32, #tpu.memory_space<vmem>>, vector<1x2xf32>
    %22 = vector.broadcast %21 : vector<1x2xf32> to vector<128x2xf32>
    %23 = arith.addf %20, %22 : vector<128x2xf32>
    %24 = arith.negf %23 : vector<128x2xf32>
    %25 = math.exp %24 : vector<128x2xf32>
    %cst_17 = arith.constant 1.000000e+00 : f32
    %26 = vector.broadcast %cst_17 : f32 to vector<128x2xf32>
    %27 = arith.addf %26, %25 : vector<128x2xf32>
    %28 = arith.divf %26, %27 : vector<128x2xf32>
    %29 = arith.mulf %23, %28 : vector<128x2xf32>
    %c0_18 = arith.constant 0 : index
    %c0_19 = arith.constant 0 : index
    %30 = vector.load %arg9[%c0_18, %c0_19] : memref<2x4xf32, #tpu.memory_space<vmem>>, vector<2x4xf32>
    %cst_20 = arith.constant dense<0.000000e+00> : vector<128x4xf32>
    %31 = tpu.matmul %14, %30, %cst_20 {dimension_numbers = #tpu.dot_dimension_numbers<[1], [0], [0], [1], [0, 0, 1, 1], [], []>} : vector<128x2xf32>, vector<2x4xf32>, vector<128x4xf32> -> vector<128x4xf32>
    %c0_21 = arith.constant 0 : index
    %c0_22 = arith.constant 0 : index
    %32 = vector.load %arg10[%c0_21, %c0_22] : memref<2x4xf32, #tpu.memory_space<vmem>>, vector<2x4xf32>
    %cst_23 = arith.constant dense<0.000000e+00> : vector<128x4xf32>
    %33 = tpu.matmul %29, %32, %cst_23 {dimension_numbers = #tpu.dot_dimension_numbers<[1], [0], [0], [1], [0, 0, 1, 1], [], []>} : vector<128x2xf32>, vector<2x4xf32>, vector<128x4xf32> -> vector<128x4xf32>
    %34 = arith.addf %31, %33 : vector<128x4xf32>
    %c0_24 = arith.constant 0 : index
    %c0_25 = arith.constant 0 : index
    %35 = vector.load %arg11[%c0_24, %c0_25] : memref<1x4xf32, #tpu.memory_space<vmem>>, vector<1x4xf32>
    %36 = vector.broadcast %35 : vector<1x4xf32> to vector<128x4xf32>
    %37 = arith.mulf %34, %36 : vector<128x4xf32>
    %c0_26 = arith.constant 0 : index
    %c0_27 = arith.constant 0 : index
    %38 = vector.load %arg12[%c0_26, %c0_27] : memref<1x4xf32, #tpu.memory_space<vmem>>, vector<1x4xf32>
    %39 = vector.broadcast %38 : vector<1x4xf32> to vector<128x4xf32>
    %40 = arith.addf %37, %39 : vector<128x4xf32>
    %41 = arith.negf %40 : vector<128x4xf32>
    %42 = math.exp %41 : vector<128x4xf32>
    %cst_28 = arith.constant 1.000000e+00 : f32
    %43 = vector.broadcast %cst_28 : f32 to vector<128x4xf32>
    %44 = arith.addf %43, %42 : vector<128x4xf32>
    %45 = arith.divf %43, %44 : vector<128x4xf32>
    %46 = arith.mulf %40, %45 : vector<128x4xf32>
    %c0_29 = arith.constant 0 : index
    %c0_30 = arith.constant 0 : index
    %47 = vector.load %arg13[%c0_29, %c0_30] : memref<128x4xf32, #tpu.memory_space<vmem>>, vector<128x4xf32>
    tpu.vector_store %arg13[%c0_29, %c0_30], %46 {strides = array<i32>} : memref<128x4xf32, #tpu.memory_space<vmem>>, vector<128x4xf32>,
    return
  }
  func.func @transform_0(%arg0: i32) -> (i32, i32) {
    %c0_i32 = arith.constant 0 : i32
    %c0_i32_0 = arith.constant 0 : i32
    return %arg0, %c0_i32 : i32, i32
  }
  func.func @transform_1(%arg0: i32) -> (i32, i32) {
    %c0_i32 = arith.constant 0 : i32
    %c0_i32_0 = arith.constant 0 : i32
    return %arg0, %c0_i32 : i32, i32
  }
  func.func @transform_2(%arg0: i32) -> (i32, i32) {
    %c0_i32 = arith.constant 0 : i32
    %c0_i32_0 = arith.constant 0 : i32
    %c0_i32_1 = arith.constant 0 : i32
    return %c0_i32, %c0_i32_0 : i32, i32
  }
  func.func @transform_3(%arg0: i32) -> (i32, i32) {
    %c0_i32 = arith.constant 0 : i32
    %c0_i32_0 = arith.constant 0 : i32
    %c0_i32_1 = arith.constant 0 : i32
    return %c0_i32, %c0_i32_0 : i32, i32
  }
  func.func @transform_4(%arg0: i32) -> (i32, i32) {
    %c0_i32 = arith.constant 0 : i32
    %c0_i32_0 = arith.constant 0 : i32
    %c0_i32_1 = arith.constant 0 : i32
    return %c0_i32, %c0_i32_0 : i32, i32
  }
  func.func @transform_5(%arg0: i32) -> (i32, i32) {
    %c0_i32 = arith.constant 0 : i32
    %c0_i32_0 = arith.constant 0 : i32
    %c0_i32_1 = arith.constant 0 : i32
    return %c0_i32, %c0_i32_0 : i32, i32
  }
  func.func @transform_6(%arg0: i32) -> (i32, i32) {
    %c0_i32 = arith.constant 0 : i32
    %c0_i32_0 = arith.constant 0 : i32
    %c0_i32_1 = arith.constant 0 : i32
    return %c0_i32, %c0_i32_0 : i32, i32
  }
  func.func @transform_7(%arg0: i32) -> (i32, i32) {
    %c0_i32 = arith.constant 0 : i32
    %c0_i32_0 = arith.constant 0 : i32
    %c0_i32_1 = arith.constant 0 : i32
    return %c0_i32, %c0_i32_0 : i32, i32
  }
  func.func @transform_8(%arg0: i32) -> (i32, i32) {
    %c0_i32 = arith.constant 0 : i32
    %c0_i32_0 = arith.constant 0 : i32
    %c0_i32_1 = arith.constant 0 : i32
    return %c0_i32, %c0_i32_0 : i32, i32
  }
  func.func @transform_9(%arg0: i32) -> (i32, i32) {
    %c0_i32 = arith.constant 0 : i32
    %c0_i32_0 = arith.constant 0 : i32
    %c0_i32_1 = arith.constant 0 : i32
    return %c0_i32, %c0_i32_0 : i32, i32
  }
  func.func @transform_10(%arg0: i32) -> (i32, i32) {
    %c0_i32 = arith.constant 0 : i32
    %c0_i32_0 = arith.constant 0 : i32
    %c0_i32_1 = arith.constant 0 : i32
    return %c0_i32, %c0_i32_0 : i32, i32
  }
  func.func @transform_11(%arg0: i32) -> (i32, i32) {
    %c0_i32 = arith.constant 0 : i32
    %c0_i32_0 = arith.constant 0 : i32
    %c0_i32_1 = arith.constant 0 : i32
    return %c0_i32, %c0_i32_0 : i32, i32
  }
  func.func @transform_12(%arg0: i32) -> (i32, i32) {
    %c0_i32 = arith.constant 0 : i32
    %c0_i32_0 = arith.constant 0 : i32
    return %arg0, %c0_i32 : i32, i32
  }
}

</mosaic_0001>

<bundles_post_ra>
// kernel: bottleneck_csp_pallas.5
= control target key start
LH: loop header
LB: loop body
LE: loop exit
PB: predicated region body
PF: predicated region fallthrough
CT: control target
= control target key end

     0   :  { %s842_s15 = smov 0   ;;  %s1025_s0 = inlined_call_operand.vmem [shape: f32[512,2], index: 0, kind: input, shape index: {}]   ;;  %s1026_s1 = inlined_call_operand.vmem [shape: f32[2,2], index: 1, kind: input, shape index: {}]   ;;  %s1027_s2 = inlined_call_operand.vmem [shape: f32[1,2], index: 2, kind: input, shape index: {}]   ;;  %s1028_s3 = inlined_call_operand.vmem [shape: f32[1,2], index: 3, kind: input, shape index: {}]   ;;  %s1029_s4 = inlined_call_operand.vmem [shape: f32[512,2], index: 4, kind: output, shape index: {}]  }
   0x1 LB: > { %s646_s16 = sadd.s32 4294967295, %s815_s15   ;;  %p650_p0 = scmp.ge.s32.totalorder %s815_s15, 1  ;;  %s815_s15 = sphi %s842_s15, %s14_s15  }
   0x2   : > { %p163_p1 = scmp.lt.s32.totalorder %s815_s15, 5 }
   0x4   : > { %p164_p2 = pnand %p650_p0, %p163_p1 }
   0x5   : > { %v217_v0 = vld [vmem:[%s1026_s1] sm:$0x3] (!%p164_p2)  ;;  %vm267_vm0 = vcmask (!%p164_p2), 1041408   ;;  %s651_s19 = sshll.u32 (!%p164_p2), %s646_s16, 4  ;;  %vm218_vm1 = vcmask (!%p164_p2), 15360  }
   0x6   : > { %167 = sbr.rel (%p164_p2) target bundleno = 291 (0x123), region = 36  ;;  %709 = vmatprep.subr.msk.mxu0 (!%p164_p2), %vm267_vm0, %v217_v0  ;;  %735 = vmatprep.subr.msk.mxu1 (!%p164_p2), %vm267_vm0, %v217_v0  ;;  %p190_p3 = scmp.lt.s32.totalorder (!%p164_p2), %s651_s19, 63  ;;  %v880_v17 = vld [vmem:[%s1027_s2] ss:$0 sm:$0xff] (!%p164_p2) }
   0x7   : > { %710 = vmatpush3.msk.msra.mxu0 (!%p164_p2), %vm267_vm0, %v217_v0  ;;  %736 = vmatpush3.msk.msra.mxu1 (!%p164_p2), %vm267_vm0, %v217_v0  ;;  %v885_v19 = vld [vmem:[%s1028_s3] ss:$0 sm:$0xff] (!%p164_p2) }
   0xd   : > { %s1031_s19 = smov (!%p190_p3, %s651_s19), 63 }
   0xe   : > { %s652_s20 = sshll.u32 %s1031_s19, 3 }
   0xf   : > { %s193_s23 = scalar_lea.vmem %s1025_s0, %s652_s20  ;;  %s970_s30 = scalar_lea.vmem %s1029_s4, %s652_s20 }
  0x10   : > { %v201_v1 = vld [vmem:[%s193_s23] sm:$0xff]  ;;  %v202_v3 = vld [vmem:[%s193_s23 + $0x8] sm:$0xff]  ;;  %v203_v5 = vld [vmem:[%s193_s23 + $0x10] sm:$0xff] }
  0x11   : > { %v209_v2 = vld [vmem:[%s193_s23 + $0x40] sm:$0xff]  ;;  %711 = vmatprep.mubr.msk.f32.mxu0 %vm218_vm1, %v201_v1  ;;  %v210_v4 = vld [vmem:[%s193_s23 + $0x48] sm:$0xff]  ;;  %v211_v6 = vld [vmem:[%s193_s23 + $0x50] sm:$0xff] }
  0x12   : > { %723 = vmatprep.mubr.msk.f32.mxu1 %vm218_vm1, %v209_v2  ;;  %712 = vmatmul.mubr.msk.f32.vlgmr.msra.gmra.mrb[0].mxu0 %vm218_vm1, %v202_v3  ;;  %v204_v7 = vld [vmem:[%s193_s23 + $0x18] sm:$0xff]  ;;  %v205_v9 = vld [vmem:[%s193_s23 + $0x20] sm:$0xff]  ;;  %v206_v11 = vld [vmem:[%s193_s23 + $0x28] sm:$0xff] }
  0x13   : > { %724 = vmatmul.mubr.msk.f32.vlgmr.msra.gmra.mrb[0].mxu1 %vm218_vm1, %v210_v4  ;;  %714 = vmatprep.mubr.msk.f32.mxu0 %vm218_vm1, %v203_v5  ;;  %v212_v8 = vld [vmem:[%s193_s23 + $0x58] sm:$0xff]  ;;  %v213_v10 = vld [vmem:[%s193_s23 + $0x60] sm:$0xff]  ;;  %v214_v12 = vld [vmem:[%s193_s23 + $0x68] sm:$0xff] }
  0x14   : > { %726 = vmatprep.mubr.msk.f32.mxu1 %vm218_vm1, %v211_v6  ;;  %v207_v13 = vld [vmem:[%s193_s23 + $0x30] sm:$0xff]  ;;  %v208_v15 = vld [vmem:[%s193_s23 + $0x38] sm:$0xff] }
  0x15   : > { %v215_v14 = vld [vmem:[%s193_s23 + $0x70] sm:$0xff]  ;;  %v216_v16 = vld [vmem:[%s193_s23 + $0x78] sm:$0xff] }
  0x16   : > { %715 = vmatmul.mubr.msk.f32.gmra.mrb[2].mxu0 %vm218_vm1, %v204_v7 }
  0x17   : > { %727 = vmatmul.mubr.msk.f32.gmra.mrb[2].mxu1 %vm218_vm1, %v212_v8  ;;  %717 = vmatprep.mubr.msk.f32.mxu0 %vm218_vm1, %v205_v9 }
  0x18   : > { %729 = vmatprep.mubr.msk.f32.mxu1 %vm218_vm1, %v213_v10 }
  0x1a   : > { %718 = vmatmul.mubr.msk.f32.gmra.mrb[4].mxu0 %vm218_vm1, %v206_v11 }
  0x1b   : > { %730 = vmatmul.mubr.msk.f32.gmra.mrb[4].mxu1 %vm218_vm1, %v214_v12  ;;  %720 = vmatprep.mubr.msk.f32.mxu0 %vm218_vm1, %v207_v13 }
  0x1c   : > { %732 = vmatprep.mubr.msk.f32.mxu1 %vm218_vm1, %v215_v14 }
  0x1e   : > { %721 = vmatmul.mubr.msk.f32.gmra.mrb[6].mxu0 %vm218_vm1, %v208_v15 }
  0x1f   : > { %733 = vmatmul.mubr.msk.f32.gmra.mrb[6].mxu1 %vm218_vm1, %v216_v16 }
  0xe5   : > { %v713_v18 = vpop.f32.mrb[0].mxu0 }
  0xe6   : > { %v725_v20 = vpop.f32.mrb[0].mxu1  ;;  %v424_v21 = vmul.f32 %v713_v18, %v880_v17  ;;  %v337_v23 = vpop.f32.mrb[1].mxu0 }
  0xe7   : > { %v432_v22 = vmul.f32 %v725_v20, %v880_v17  ;;  %v377_v24 = vpop.f32.mrb[1].mxu1  ;;  %v423_v25 = vmul.f32 %v880_v17, %v337_v23 }
  0xe8   : > { %v431_v26 = vmul.f32 %v880_v17, %v377_v24  ;;  %v892_v27 = vadd.f32 %v885_v19, %v424_v21 }
  0xe9   : > { %v895_v28 = vadd.f32 %v885_v19, %v432_v22  ;;  %v898_v29 = vadd.f32 %v885_v19, %v423_v25  ;;  %v716_v31 = vpop.f32.mrb[2].mxu0 }
  0xea   : > { %v901_v30 = vadd.f32 %v885_v19, %v431_v26  ;;  %v728_v32 = vpop.f32.mrb[2].mxu1  ;;  %v675_v33 = vmul.f32 -1.442695, %v892_v27  ;;  %v426_v35 = vmul.f32 %v716_v31, %v880_v17  ;;  %v347_v37 = vpop.f32.mrb[3].mxu0 }
  0xeb   : > { %v683_v34 = vmul.f32 -1.442695, %v895_v28  ;;  %v434_v36 = vmul.f32 %v728_v32, %v880_v17  ;;  %v387_v38 = vpop.f32.mrb[3].mxu1  ;;  %v674_v39 = vmul.f32 -1.442695, %v898_v29  ;;  %v425_v41 = vmul.f32 %v880_v17, %v347_v37 }
  0xec   : > { %v682_v40 = vmul.f32 -1.442695, %v901_v30  ;;  %v433_v42 = vmul.f32 %v880_v17, %v387_v38  ;;  %745 = vpow2.f32 %v675_v33  ;;  %v912_v43 = vadd.f32 %v885_v19, %v426_v35 }
  0xed   : > { %v915_v44 = vadd.f32 %v885_v19, %v434_v36  ;;  %747 = vpow2.f32 %v683_v34  ;;  %v918_v45 = vadd.f32 %v885_v19, %v425_v41  ;;  %v719_v47 = vpop.f32.mrb[4].mxu0 }
  0xee   : > { %v921_v46 = vadd.f32 %v885_v19, %v433_v42  ;;  %v731_v48 = vpop.f32.mrb[4].mxu1  ;;  %749 = vpow2.f32 %v674_v39  ;;  %v677_v49 = vmul.f32 -1.442695, %v912_v43  ;;  %v428_v51 = vmul.f32 %v719_v47, %v880_v17  ;;  %v357_v52 = vpop.f32.mrb[5].mxu0 }
  0xef   : > { %v685_v50 = vmul.f32 -1.442695, %v915_v44  ;;  %v397_v53 = vpop.f32.mrb[5].mxu1  ;;  %751 = vpow2.f32 %v682_v40  ;;  %v676_v54 = vmul.f32 -1.442695, %v918_v45  ;;  %v436_v56 = vmul.f32 %v731_v48, %v880_v17 }
  0xf0   : > { %v684_v55 = vmul.f32 -1.442695, %v921_v46  ;;  %753 = vpow2.f32 %v677_v49  ;;  %v930_v57 = vadd.f32 %v885_v19, %v428_v51  ;;  %v427_v58 = vmul.f32 %v880_v17, %v357_v52 }
  0xf1   : > { %v435_v59 = vmul.f32 %v880_v17, %v397_v53  ;;  %755 = vpow2.f32 %v685_v50  ;;  %v935_v60 = vadd.f32 %v885_v19, %v436_v56  ;;  %v722_v61 = vpop.f32.mrb[6].mxu0 }
  0xf2   : > { %v734_v62 = vpop.f32.mrb[6].mxu1  ;;  %757 = vpow2.f32 %v676_v54  ;;  %v679_v63 = vmul.f32 -1.442695, %v930_v57  ;;  %v939_v0 = vadd.f32 %v885_v19, %v427_v58  ;;  %v367_v2 = vpop.f32.mrb[7].mxu0  ;;  %v430_v14 = vmul.f32 %v722_v61, %v880_v17 }
  0xf3   : > { %v942_v1 = vadd.f32 %v885_v19, %v435_v59  ;;  %v407_v3 = vpop.f32.mrb[7].mxu1  ;;  %759 = vpow2.f32 %v684_v55  ;;  %v687_v4 = vmul.f32 -1.442695, %v935_v60  ;;  %v438_v18 = vmul.f32 %v734_v62, %v880_v17 }
  0xf4   : > { %761 = vpow2.f32 %v679_v63  ;;  %v678_v5 = vmul.f32 -1.442695, %v939_v0  ;;  %v429_v22 = vmul.f32 %v880_v17, %v367_v2  ;;  %v437_v25 = vmul.f32 %v880_v17, %v407_v3 }
  0xf5   : > { %v686_v6 = vmul.f32 -1.442695, %v942_v1  ;;  %763 = vpow2.f32 %v687_v4  ;;  %v952_v32 = vadd.f32 %v885_v19, %v430_v14  ;;  %v955_v35 = vadd.f32 %v885_v19, %v438_v18 }
  0xf6   : > { %v746_v7 = vpop.eup %745  ;;  %765 = vpow2.f32 %v678_v5  ;;  %v958_v38 = vadd.f32 %v885_v19, %v429_v22  ;;  %v961_v40 = vadd.f32 %v885_v19, %v437_v25 }
  0xf7   : > { %v748_v8 = vpop.eup %747  ;;  %v511_v9 = vadd.f32 1.0, %v746_v7  ;;  %767 = vpow2.f32 %v686_v6  ;;  %v681_v47 = vmul.f32 -1.442695, %v952_v32  ;;  %v689_v49 = vmul.f32 -1.442695, %v955_v35 }
  0xf8   : > { %v750_v10 = vpop.eup %749  ;;  %v519_v11 = vadd.f32 1.0, %v748_v8  ;;  %v680_v19 = vmul.f32 -1.442695, %v958_v38  ;;  %v688_v53 = vmul.f32 -1.442695, %v961_v40 }
  0xf9   : > { %v752_v12 = vpop.eup %751  ;;  %769 = vrcp.f32 %v511_v9  ;;  %v510_v13 = vadd.f32 1.0, %v750_v10 }
  0xfa   : > { %v754_v15 = vpop.eup %753  ;;  %771 = vrcp.f32 %v519_v11  ;;  %v518_v16 = vadd.f32 1.0, %v752_v12 }
  0xfb   : > { %v756_v20 = vpop.eup %755  ;;  %773 = vrcp.f32 %v510_v13  ;;  %v513_v21 = vadd.f32 1.0, %v754_v15 }
  0xfc   : > { %v758_v23 = vpop.eup %757  ;;  %775 = vrcp.f32 %v518_v16  ;;  %v521_v24 = vadd.f32 1.0, %v756_v20 }
  0xfd   : > { %v760_v26 = vpop.eup %759  ;;  %777 = vrcp.f32 %v513_v21  ;;  %v512_v31 = vadd.f32 1.0, %v758_v23 }
  0xfe   : > { %v762_v33 = vpop.eup %761  ;;  %779 = vrcp.f32 %v521_v24  ;;  %v520_v34 = vadd.f32 1.0, %v760_v26 }
  0xff   : > { %v764_v36 = vpop.eup %763  ;;  %781 = vrcp.f32 %v512_v31  ;;  %v515_v37 = vadd.f32 1.0, %v762_v33 }
 0x100   : > { %v766_v17 = vpop.eup %765  ;;  %783 = vrcp.f32 %v520_v34  ;;  %v523_v39 = vadd.f32 1.0, %v764_v36 }
 0x101   : > { %v768_v41 = vpop.eup %767  ;;  %785 = vrcp.f32 %v515_v37  ;;  %v514_v42 = vadd.f32 1.0, %v766_v17 }
 0x102   : > { %787 = vrcp.f32 %v523_v39  ;;  %v522_v48 = vadd.f32 1.0, %v768_v41 }
 0x103   : > { %v770_v50 = vpop.eup %769  ;;  %789 = vrcp.f32 %v514_v42 }
 0x104   : > { %v772_v51 = vpop.eup %771  ;;  %v559_v52 = vmul.f32 %v770_v50, %v892_v27  ;;  %791 = vrcp.f32 %v522_v48 }
 0x105   : > { %v774_v54 = vpop.eup %773  ;;  %v567_v55 = vmul.f32 %v772_v51, %v895_v28  ;;  %793 = vpow2.f32 %v681_v47 }
 0x106   : > { %v776_v56 = vpop.eup %775  ;;  %575 = vst.msk [vmem:[%s970_s30 + $0x8] sm:$0xff] %vm218_vm1, %v559_v52  ;;  %v558_v58 = vmul.f32 %v774_v54, %v898_v29  ;;  %795 = vpow2.f32 %v689_v49 }
 0x107   : > { %v778_v59 = vpop.eup %777  ;;  %583 = vst.msk [vmem:[%s970_s30 + $0x48] sm:$0xff] %vm218_vm1, %v567_v55  ;;  %v566_v27 = vmul.f32 %v776_v56, %v901_v30  ;;  %797 = vpow2.f32 %v680_v19 }
 0x108   : > { %v780_v61 = vpop.eup %779  ;;  %574 = vst.msk [vmem:[%s970_s30] sm:$0xff] %vm218_vm1, %v558_v58  ;;  %v561_v28 = vmul.f32 %v778_v59, %v912_v43  ;;  %799 = vpow2.f32 %v688_v53 }
 0x109   : > { %v782_v62 = vpop.eup %781  ;;  %582 = vst.msk [vmem:[%s970_s30 + $0x40] sm:$0xff] %vm218_vm1, %v566_v27  ;;  %v569_v29 = vmul.f32 %v780_v61, %v915_v44 }
 0x10a   : > { %v784_v63 = vpop.eup %783  ;;  %577 = vst.msk [vmem:[%s970_s30 + $0x18] sm:$0xff] %vm218_vm1, %v561_v28  ;;  %v560_v30 = vmul.f32 %v782_v62, %v918_v45 }
 0x10b   : > { %v786_v2 = vpop.eup %785  ;;  %585 = vst.msk [vmem:[%s970_s30 + $0x58] sm:$0xff] %vm218_vm1, %v569_v29  ;;  %v568_v3 = vmul.f32 %v784_v63, %v921_v46 }
 0x10c   : > { %v788_v43 = vpop.eup %787  ;;  %576 = vst.msk [vmem:[%s970_s30 + $0x10] sm:$0xff] %vm218_vm1, %v560_v30  ;;  %v563_v4 = vmul.f32 %v786_v2, %v930_v57 }
 0x10d   : > { %v790_v5 = vpop.eup %789  ;;  %584 = vst.msk [vmem:[%s970_s30 + $0x50] sm:$0xff] %vm218_vm1, %v568_v3  ;;  %v571_v44 = vmul.f32 %v788_v43, %v935_v60 }
 0x10e   : > { %v792_v6 = vpop.eup %791  ;;  %579 = vst.msk [vmem:[%s970_s30 + $0x28] sm:$0xff] %vm218_vm1, %v563_v4  ;;  %v562_v45 = vmul.f32 %v790_v5, %v939_v0 }
 0x10f   : > { %v794_v7 = vpop.eup %793  ;;  %587 = vst.msk [vmem:[%s970_s30 + $0x68] sm:$0xff] %vm218_vm1, %v571_v44  ;;  %v570_v46 = vmul.f32 %v792_v6, %v942_v1 }
 0x110   : > { %v796_v8 = vpop.eup %795  ;;  %578 = vst.msk [vmem:[%s970_s30 + $0x20] sm:$0xff] %vm218_vm1, %v562_v45  ;;  %v517_v9 = vadd.f32 1.0, %v794_v7 }
 0x111   : > { %v798_v57 = vpop.eup %797  ;;  %586 = vst.msk [vmem:[%s970_s30 + $0x60] sm:$0xff] %vm218_vm1, %v570_v46  ;;  %v525_v10 = vadd.f32 1.0, %v796_v8 }
 0x112   : > { %v800_v60 = vpop.eup %799  ;;  %801 = vrcp.f32 %v517_v9  ;;  %v516_v11 = vadd.f32 1.0, %v798_v57 }
 0x113   : > { %803 = vrcp.f32 %v525_v10  ;;  %v524_v0 = vadd.f32 1.0, %v800_v60 }
 0x114   : > { %805 = vrcp.f32 %v516_v11 }
 0x115   : > { %807 = vrcp.f32 %v524_v0 }
 0x11c   : > { %v802_v1 = vpop.eup %801 }
 0x11d   : > { %v804_v12 = vpop.eup %803  ;;  %v565_v13 = vmul.f32 %v802_v1, %v952_v32 }
 0x11e   : > { %v806_v14 = vpop.eup %805  ;;  %v573_v15 = vmul.f32 %v804_v12, %v955_v35 }
 0x11f   : > { %v808_v16 = vpop.eup %807  ;;  %581 = vst.msk [vmem:[%s970_s30 + $0x38] sm:$0xff] %vm218_vm1, %v565_v13  ;;  %v564_v18 = vmul.f32 %v806_v14, %v958_v38 }
 0x120   : > { %589 = vst.msk [vmem:[%s970_s30 + $0x78] sm:$0xff] %vm218_vm1, %v573_v15  ;;  %v572_v20 = vmul.f32 %v808_v16, %v961_v40 }
 0x121   : > { %580 = vst.msk [vmem:[%s970_s30 + $0x30] sm:$0xff] %vm218_vm1, %v564_v18 }
 0x122   : > { %588 = vst.msk [vmem:[%s970_s30 + $0x70] sm:$0xff] %vm218_vm1, %v572_v20 }
 0x123 PF: > { %s14_s15 = sadd.s32 1, %s815_s15  }
 0x124   : > { %p11_p4 = scmp.ge.s32.totalorder %s14_s15, 6  }
 0x126   :  { %13 = sbr.rel (!%p11_p4) target bundleno = 1 (0x1), region = 66 }

// kernel: bottleneck_csp_pallas.4
= control target key start
LH: loop header
LB: loop body
LE: loop exit
PB: predicated region body
PF: predicated region fallthrough
CT: control target
= control target key end

     0   :  { %s843_s15 = smov 0   ;;  %s1026_s0 = inlined_call_operand.vmem [shape: f32[512,4], index: 0, kind: input, shape index: {}]   ;;  %s1027_s1 = inlined_call_operand.vmem [shape: f32[4,2], index: 1, kind: input, shape index: {}]   ;;  %s1028_s2 = inlined_call_operand.vmem [shape: f32[1,2], index: 2, kind: input, shape index: {}]   ;;  %s1029_s3 = inlined_call_operand.vmem [shape: f32[1,2], index: 3, kind: input, shape index: {}]   ;;  %s1030_s4 = inlined_call_operand.vmem [shape: f32[512,2], index: 4, kind: output, shape index: {}]  }
   0x1 LB: > { %s647_s16 = sadd.s32 4294967295, %s816_s15   ;;  %p651_p0 = scmp.ge.s32.totalorder %s816_s15, 1  ;;  %s816_s15 = sphi %s843_s15, %s14_s15  }
   0x2   : > { %p163_p1 = scmp.lt.s32.totalorder %s816_s15, 5 }
   0x4   : > { %p164_p2 = pnand %p651_p0, %p163_p1 }
   0x5   : > { %v217_v0 = vld [vmem:[%s1027_s1] sm:$0xf] (!%p164_p2)  ;;  %vm267_vm0 = vcmask (!%p164_p2), 1043456   ;;  %s652_s19 = sshll.u32 (!%p164_p2), %s647_s16, 4  ;;  %vm218_vm1 = vcmask (!%p164_p2), 31744   ;;  %vm574_vm2 = vcmask (!%p164_p2), 15360  }
   0x6   : > { %167 = sbr.rel (%p164_p2) target bundleno = 291 (0x123), region = 36  ;;  %710 = vmatprep.subr.msk.mxu0 (!%p164_p2), %vm267_vm0, %v217_v0  ;;  %736 = vmatprep.subr.msk.mxu1 (!%p164_p2), %vm267_vm0, %v217_v0  ;;  %p190_p3 = scmp.lt.s32.totalorder (!%p164_p2), %s652_s19, 63  ;;  %v881_v17 = vld [vmem:[%s1028_s2] ss:$0 sm:$0xff] (!%p164_p2) }
   0x7   : > { %711 = vmatpush3.msk.msra.mxu0 (!%p164_p2), %vm267_vm0, %v217_v0  ;;  %737 = vmatpush3.msk.msra.mxu1 (!%p164_p2), %vm267_vm0, %v217_v0  ;;  %v886_v19 = vld [vmem:[%s1029_s3] ss:$0 sm:$0xff] (!%p164_p2) }
   0xd   : > { %s1032_s19 = smov (!%p190_p3, %s652_s19), 63 }
   0xe   : > { %s653_s20 = sshll.u32 %s1032_s19, 3 }
   0xf   : > { %s193_s23 = scalar_lea.vmem %s1026_s0, %s653_s20  ;;  %s971_s30 = scalar_lea.vmem %s1030_s4, %s653_s20 }
  0x10   : > { %v201_v1 = vld [vmem:[%s193_s23] sm:$0xff]  ;;  %v202_v3 = vld [vmem:[%s193_s23 + $0x8] sm:$0xff]  ;;  %v203_v5 = vld [vmem:[%s193_s23 + $0x10] sm:$0xff] }
  0x11   : > { %v209_v2 = vld [vmem:[%s193_s23 + $0x40] sm:$0xff]  ;;  %712 = vmatprep.mubr.msk.f32.mxu0 %vm218_vm1, %v201_v1  ;;  %v210_v4 = vld [vmem:[%s193_s23 + $0x48] sm:$0xff]  ;;  %v211_v6 = vld [vmem:[%s193_s23 + $0x50] sm:$0xff] }
  0x12   : > { %724 = vmatprep.mubr.msk.f32.mxu1 %vm218_vm1, %v209_v2  ;;  %713 = vmatmul.mubr.msk.f32.vlgmr.msra.gmra.mrb[0].mxu0 %vm218_vm1, %v202_v3  ;;  %v204_v7 = vld [vmem:[%s193_s23 + $0x18] sm:$0xff]  ;;  %v205_v9 = vld [vmem:[%s193_s23 + $0x20] sm:$0xff]  ;;  %v206_v11 = vld [vmem:[%s193_s23 + $0x28] sm:$0xff] }
  0x13   : > { %725 = vmatmul.mubr.msk.f32.vlgmr.msra.gmra.mrb[0].mxu1 %vm218_vm1, %v210_v4  ;;  %715 = vmatprep.mubr.msk.f32.mxu0 %vm218_vm1, %v203_v5  ;;  %v212_v8 = vld [vmem:[%s193_s23 + $0x58] sm:$0xff]  ;;  %v213_v10 = vld [vmem:[%s193_s23 + $0x60] sm:$0xff]  ;;  %v214_v12 = vld [vmem:[%s193_s23 + $0x68] sm:$0xff] }
  0x14   : > { %727 = vmatprep.mubr.msk.f32.mxu1 %vm218_vm1, %v211_v6  ;;  %v207_v13 = vld [vmem:[%s193_s23 + $0x30] sm:$0xff]  ;;  %v208_v15 = vld [vmem:[%s193_s23 + $0x38] sm:$0xff] }
  0x15   : > { %v215_v14 = vld [vmem:[%s193_s23 + $0x70] sm:$0xff]  ;;  %v216_v16 = vld [vmem:[%s193_s23 + $0x78] sm:$0xff] }
  0x16   : > { %716 = vmatmul.mubr.msk.f32.gmra.mrb[2].mxu0 %vm218_vm1, %v204_v7 }
  0x17   : > { %728 = vmatmul.mubr.msk.f32.gmra.mrb[2].mxu1 %vm218_vm1, %v212_v8  ;;  %718 = vmatprep.mubr.msk.f32.mxu0 %vm218_vm1, %v205_v9 }
  0x18   : > { %730 = vmatprep.mubr.msk.f32.mxu1 %vm218_vm1, %v213_v10 }
  0x1a   : > { %719 = vmatmul.mubr.msk.f32.gmra.mrb[4].mxu0 %vm218_vm1, %v206_v11 }
  0x1b   : > { %731 = vmatmul.mubr.msk.f32.gmra.mrb[4].mxu1 %vm218_vm1, %v214_v12  ;;  %721 = vmatprep.mubr.msk.f32.mxu0 %vm218_vm1, %v207_v13 }
  0x1c   : > { %733 = vmatprep.mubr.msk.f32.mxu1 %vm218_vm1, %v215_v14 }
  0x1e   : > { %722 = vmatmul.mubr.msk.f32.gmra.mrb[6].mxu0 %vm218_vm1, %v208_v15 }
  0x1f   : > { %734 = vmatmul.mubr.msk.f32.gmra.mrb[6].mxu1 %vm218_vm1, %v216_v16 }
  0xe5   : > { %v714_v18 = vpop.f32.mrb[0].mxu0 }
  0xe6   : > { %v726_v20 = vpop.f32.mrb[0].mxu1  ;;  %v424_v21 = vmul.f32 %v714_v18, %v881_v17  ;;  %v337_v23 = vpop.f32.mrb[1].mxu0 }
  0xe7   : > { %v432_v22 = vmul.f32 %v726_v20, %v881_v17  ;;  %v377_v24 = vpop.f32.mrb[1].mxu1  ;;  %v423_v25 = vmul.f32 %v881_v17, %v337_v23 }
  0xe8   : > { %v431_v26 = vmul.f32 %v881_v17, %v377_v24  ;;  %v893_v27 = vadd.f32 %v886_v19, %v424_v21 }
  0xe9   : > { %v896_v28 = vadd.f32 %v886_v19, %v432_v22  ;;  %v899_v29 = vadd.f32 %v886_v19, %v423_v25  ;;  %v717_v31 = vpop.f32.mrb[2].mxu0 }
  0xea   : > { %v902_v30 = vadd.f32 %v886_v19, %v431_v26  ;;  %v729_v32 = vpop.f32.mrb[2].mxu1  ;;  %v676_v33 = vmul.f32 -1.442695, %v893_v27  ;;  %v426_v35 = vmul.f32 %v717_v31, %v881_v17  ;;  %v347_v37 = vpop.f32.mrb[3].mxu0 }
  0xeb   : > { %v684_v34 = vmul.f32 -1.442695, %v896_v28  ;;  %v434_v36 = vmul.f32 %v729_v32, %v881_v17  ;;  %v387_v38 = vpop.f32.mrb[3].mxu1  ;;  %v675_v39 = vmul.f32 -1.442695, %v899_v29  ;;  %v425_v41 = vmul.f32 %v881_v17, %v347_v37 }
  0xec   : > { %v683_v40 = vmul.f32 -1.442695, %v902_v30  ;;  %v433_v42 = vmul.f32 %v881_v17, %v387_v38  ;;  %746 = vpow2.f32 %v676_v33  ;;  %v913_v43 = vadd.f32 %v886_v19, %v426_v35 }
  0xed   : > { %v916_v44 = vadd.f32 %v886_v19, %v434_v36  ;;  %748 = vpow2.f32 %v684_v34  ;;  %v919_v45 = vadd.f32 %v886_v19, %v425_v41  ;;  %v720_v47 = vpop.f32.mrb[4].mxu0 }
  0xee   : > { %v922_v46 = vadd.f32 %v886_v19, %v433_v42  ;;  %v732_v48 = vpop.f32.mrb[4].mxu1  ;;  %750 = vpow2.f32 %v675_v39  ;;  %v678_v49 = vmul.f32 -1.442695, %v913_v43  ;;  %v428_v51 = vmul.f32 %v720_v47, %v881_v17  ;;  %v357_v52 = vpop.f32.mrb[5].mxu0 }
  0xef   : > { %v686_v50 = vmul.f32 -1.442695, %v916_v44  ;;  %v397_v53 = vpop.f32.mrb[5].mxu1  ;;  %752 = vpow2.f32 %v683_v40  ;;  %v677_v54 = vmul.f32 -1.442695, %v919_v45  ;;  %v436_v56 = vmul.f32 %v732_v48, %v881_v17 }
  0xf0   : > { %v685_v55 = vmul.f32 -1.442695, %v922_v46  ;;  %754 = vpow2.f32 %v678_v49  ;;  %v931_v57 = vadd.f32 %v886_v19, %v428_v51  ;;  %v427_v58 = vmul.f32 %v881_v17, %v357_v52 }
  0xf1   : > { %v435_v59 = vmul.f32 %v881_v17, %v397_v53  ;;  %756 = vpow2.f32 %v686_v50  ;;  %v936_v60 = vadd.f32 %v886_v19, %v436_v56  ;;  %v723_v61 = vpop.f32.mrb[6].mxu0 }
  0xf2   : > { %v735_v62 = vpop.f32.mrb[6].mxu1  ;;  %758 = vpow2.f32 %v677_v54  ;;  %v680_v63 = vmul.f32 -1.442695, %v931_v57  ;;  %v940_v0 = vadd.f32 %v886_v19, %v427_v58  ;;  %v367_v2 = vpop.f32.mrb[7].mxu0  ;;  %v430_v14 = vmul.f32 %v723_v61, %v881_v17 }
  0xf3   : > { %v943_v1 = vadd.f32 %v886_v19, %v435_v59  ;;  %v407_v3 = vpop.f32.mrb[7].mxu1  ;;  %760 = vpow2.f32 %v685_v55  ;;  %v688_v4 = vmul.f32 -1.442695, %v936_v60  ;;  %v438_v18 = vmul.f32 %v735_v62, %v881_v17 }
  0xf4   : > { %762 = vpow2.f32 %v680_v63  ;;  %v679_v5 = vmul.f32 -1.442695, %v940_v0  ;;  %v429_v22 = vmul.f32 %v881_v17, %v367_v2  ;;  %v437_v25 = vmul.f32 %v881_v17, %v407_v3 }
  0xf5   : > { %v687_v6 = vmul.f32 -1.442695, %v943_v1  ;;  %764 = vpow2.f32 %v688_v4  ;;  %v953_v32 = vadd.f32 %v886_v19, %v430_v14  ;;  %v956_v35 = vadd.f32 %v886_v19, %v438_v18 }
  0xf6   : > { %v747_v7 = vpop.eup %746  ;;  %766 = vpow2.f32 %v679_v5  ;;  %v959_v38 = vadd.f32 %v886_v19, %v429_v22  ;;  %v962_v40 = vadd.f32 %v886_v19, %v437_v25 }
  0xf7   : > { %v749_v8 = vpop.eup %748  ;;  %v511_v9 = vadd.f32 1.0, %v747_v7  ;;  %768 = vpow2.f32 %v687_v6  ;;  %v682_v47 = vmul.f32 -1.442695, %v953_v32  ;;  %v690_v49 = vmul.f32 -1.442695, %v956_v35 }
  0xf8   : > { %v751_v10 = vpop.eup %750  ;;  %v519_v11 = vadd.f32 1.0, %v749_v8  ;;  %v681_v19 = vmul.f32 -1.442695, %v959_v38  ;;  %v689_v53 = vmul.f32 -1.442695, %v962_v40 }
  0xf9   : > { %v753_v12 = vpop.eup %752  ;;  %770 = vrcp.f32 %v511_v9  ;;  %v510_v13 = vadd.f32 1.0, %v751_v10 }
  0xfa   : > { %v755_v15 = vpop.eup %754  ;;  %772 = vrcp.f32 %v519_v11  ;;  %v518_v16 = vadd.f32 1.0, %v753_v12 }
  0xfb   : > { %v757_v20 = vpop.eup %756  ;;  %774 = vrcp.f32 %v510_v13  ;;  %v513_v21 = vadd.f32 1.0, %v755_v15 }
  0xfc   : > { %v759_v23 = vpop.eup %758  ;;  %776 = vrcp.f32 %v518_v16  ;;  %v521_v24 = vadd.f32 1.0, %v757_v20 }
  0xfd   : > { %v761_v26 = vpop.eup %760  ;;  %778 = vrcp.f32 %v513_v21  ;;  %v512_v31 = vadd.f32 1.0, %v759_v23 }
  0xfe   : > { %v763_v33 = vpop.eup %762  ;;  %780 = vrcp.f32 %v521_v24  ;;  %v520_v34 = vadd.f32 1.0, %v761_v26 }
  0xff   : > { %v765_v36 = vpop.eup %764  ;;  %782 = vrcp.f32 %v512_v31  ;;  %v515_v37 = vadd.f32 1.0, %v763_v33 }
 0x100   : > { %v767_v17 = vpop.eup %766  ;;  %784 = vrcp.f32 %v520_v34  ;;  %v523_v39 = vadd.f32 1.0, %v765_v36 }
 0x101   : > { %v769_v41 = vpop.eup %768  ;;  %786 = vrcp.f32 %v515_v37  ;;  %v514_v42 = vadd.f32 1.0, %v767_v17 }
 0x102   : > { %788 = vrcp.f32 %v523_v39  ;;  %v522_v48 = vadd.f32 1.0, %v769_v41 }
 0x103   : > { %v771_v50 = vpop.eup %770  ;;  %790 = vrcp.f32 %v514_v42 }
 0x104   : > { %v773_v51 = vpop.eup %772  ;;  %v559_v52 = vmul.f32 %v771_v50, %v893_v27  ;;  %792 = vrcp.f32 %v522_v48 }
 0x105   : > { %v775_v54 = vpop.eup %774  ;;  %v567_v55 = vmul.f32 %v773_v51, %v896_v28  ;;  %794 = vpow2.f32 %v682_v47 }
 0x106   : > { %v777_v56 = vpop.eup %776  ;;  %576 = vst.msk [vmem:[%s971_s30 + $0x8] sm:$0xff] %vm574_vm2, %v559_v52  ;;  %v558_v58 = vmul.f32 %v775_v54, %v899_v29  ;;  %796 = vpow2.f32 %v690_v49 }
 0x107   : > { %v779_v59 = vpop.eup %778  ;;  %584 = vst.msk [vmem:[%s971_s30 + $0x48] sm:$0xff] %vm574_vm2, %v567_v55  ;;  %v566_v27 = vmul.f32 %v777_v56, %v902_v30  ;;  %798 = vpow2.f32 %v681_v19 }
 0x108   : > { %v781_v61 = vpop.eup %780  ;;  %575 = vst.msk [vmem:[%s971_s30] sm:$0xff] %vm574_vm2, %v558_v58  ;;  %v561_v28 = vmul.f32 %v779_v59, %v913_v43  ;;  %800 = vpow2.f32 %v689_v53 }
 0x109   : > { %v783_v62 = vpop.eup %782  ;;  %583 = vst.msk [vmem:[%s971_s30 + $0x40] sm:$0xff] %vm574_vm2, %v566_v27  ;;  %v569_v29 = vmul.f32 %v781_v61, %v916_v44 }
 0x10a   : > { %v785_v63 = vpop.eup %784  ;;  %578 = vst.msk [vmem:[%s971_s30 + $0x18] sm:$0xff] %vm574_vm2, %v561_v28  ;;  %v560_v30 = vmul.f32 %v783_v62, %v919_v45 }
 0x10b   : > { %v787_v2 = vpop.eup %786  ;;  %586 = vst.msk [vmem:[%s971_s30 + $0x58] sm:$0xff] %vm574_vm2, %v569_v29  ;;  %v568_v3 = vmul.f32 %v785_v63, %v922_v46 }
 0x10c   : > { %v789_v43 = vpop.eup %788  ;;  %577 = vst.msk [vmem:[%s971_s30 + $0x10] sm:$0xff] %vm574_vm2, %v560_v30  ;;  %v563_v4 = vmul.f32 %v787_v2, %v931_v57 }
 0x10d   : > { %v791_v5 = vpop.eup %790  ;;  %585 = vst.msk [vmem:[%s971_s30 + $0x50] sm:$0xff] %vm574_vm2, %v568_v3  ;;  %v571_v44 = vmul.f32 %v789_v43, %v936_v60 }
 0x10e   : > { %v793_v6 = vpop.eup %792  ;;  %580 = vst.msk [vmem:[%s971_s30 + $0x28] sm:$0xff] %vm574_vm2, %v563_v4  ;;  %v562_v45 = vmul.f32 %v791_v5, %v940_v0 }
 0x10f   : > { %v795_v7 = vpop.eup %794  ;;  %588 = vst.msk [vmem:[%s971_s30 + $0x68] sm:$0xff] %vm574_vm2, %v571_v44  ;;  %v570_v46 = vmul.f32 %v793_v6, %v943_v1 }
 0x110   : > { %v797_v8 = vpop.eup %796  ;;  %579 = vst.msk [vmem:[%s971_s30 + $0x20] sm:$0xff] %vm574_vm2, %v562_v45  ;;  %v517_v9 = vadd.f32 1.0, %v795_v7 }
 0x111   : > { %v799_v57 = vpop.eup %798  ;;  %587 = vst.msk [vmem:[%s971_s30 + $0x60] sm:$0xff] %vm574_vm2, %v570_v46  ;;  %v525_v10 = vadd.f32 1.0, %v797_v8 }
 0x112   : > { %v801_v60 = vpop.eup %800  ;;  %802 = vrcp.f32 %v517_v9  ;;  %v516_v11 = vadd.f32 1.0, %v799_v57 }
 0x113   : > { %804 = vrcp.f32 %v525_v10  ;;  %v524_v0 = vadd.f32 1.0, %v801_v60 }
 0x114   : > { %806 = vrcp.f32 %v516_v11 }
 0x115   : > { %808 = vrcp.f32 %v524_v0 }
 0x11c   : > { %v803_v1 = vpop.eup %802 }
 0x11d   : > { %v805_v12 = vpop.eup %804  ;;  %v565_v13 = vmul.f32 %v803_v1, %v953_v32 }
 0x11e   : > { %v807_v14 = vpop.eup %806  ;;  %v573_v15 = vmul.f32 %v805_v12, %v956_v35 }
 0x11f   : > { %v809_v16 = vpop.eup %808  ;;  %582 = vst.msk [vmem:[%s971_s30 + $0x38] sm:$0xff] %vm574_vm2, %v565_v13  ;;  %v564_v18 = vmul.f32 %v807_v14, %v959_v38 }
 0x120   : > { %590 = vst.msk [vmem:[%s971_s30 + $0x78] sm:$0xff] %vm574_vm2, %v573_v15  ;;  %v572_v20 = vmul.f32 %v809_v16, %v962_v40 }
 0x121   : > { %581 = vst.msk [vmem:[%s971_s30 + $0x30] sm:$0xff] %vm574_vm2, %v564_v18 }
 0x122   : > { %589 = vst.msk [vmem:[%s971_s30 + $0x70] sm:$0xff] %vm574_vm2, %v572_v20 }
 0x123 PF: > { %s14_s15 = sadd.s32 1, %s816_s15  }
 0x124   : > { %p11_p4 = scmp.ge.s32.totalorder %s14_s15, 6  }
 0x126   :  { %13 = sbr.rel (!%p11_p4) target bundleno = 1 (0x1), region = 66 }

// kernel: bottleneck_csp_pallas.7
= control target key start
LH: loop header
LB: loop body
LE: loop exit
PB: predicated region body
PF: predicated region fallthrough
CT: control target
= control target key end

     0   :  { %s2417_s21 = smov 0   ;;  %s2964_s0 = inlined_call_operand.vmem [shape: f32[512,2], index: 0, kind: input, shape index: {}]   ;;  %s2965_s1 = inlined_call_operand.vmem [shape: f32[512,4], index: 1, kind: input, shape index: {}]   ;;  %s2966_s2 = inlined_call_operand.vmem [shape: f32[2,2], index: 2, kind: input, shape index: {}]   ;;  %s2967_s3 = inlined_call_operand.vmem [shape: f32[4,2], index: 3, kind: input, shape index: {}]   ;;  %s2968_s4 = inlined_call_operand.vmem [shape: f32[1,2], index: 4, kind: input, shape index: {}]   ;;  %s2969_s5 = inlined_call_operand.vmem [shape: f32[1,2], index: 5, kind: input, shape index: {}]   ;;  %s2970_s6 = inlined_call_operand.vmem [shape: f32[1,2], index: 6, kind: input, shape index: {}]   ;;  %s2971_s7 = inlined_call_operand.vmem [shape: f32[1,2], index: 7, kind: input, shape index: {}]   ;;  %s2972_s8 = inlined_call_operand.vmem [shape: f32[2,4], index: 8, kind: input, shape index: {}]   ;;  %s2973_s9 = inlined_call_operand.vmem [shape: f32[2,4], index: 9, kind: input, shape index: {}]   ;;  %s2974_s10 = inlined_call_operand.vmem [shape: f32[1,4], index: 10, kind: input, shape index: {}]   ;;  %s2975_s11 = inlined_call_operand.vmem [shape: f32[1,4], index: 11, kind: input, shape index: {}]   ;;  %s2976_s12 = inlined_call_operand.vmem [shape: f32[512,4], index: 12, kind: output, shape index: {}]  }
   0x1 LB: > { %s1821_s22 = sadd.s32 4294967295, %s2350_s21   ;;  %p1825_p0 = scmp.ge.s32.totalorder %s2350_s21, 1  ;;  %s2350_s21 = sphi %s2417_s21, %s22_s21  }
   0x2   : > { %p374_p1 = scmp.lt.s32.totalorder %s2350_s21, 5 }
   0x4   : > { %p375_p2 = pnand %p1825_p0, %p374_p1 }
   0x5   : > { %v455_v0 = vld [vmem:[%s2966_s2] sm:$0x3] (!%p375_p2)  ;;  %vm505_vm0 = vcmask (!%p375_p2), 1041408   ;;  %s1826_s25 = sshll.u32 (!%p375_p2), %s1821_s22, 4  ;;  %vm878_vm1 = vcmask (!%p375_p2), 1043456   ;;  %vm456_vm2 = vcmask (!%p375_p2), 15360  }
   0x6   : > { %378 = sbr.rel (%p375_p2) target bundleno = 607 (0x25f), region = 68  ;;  %2024 = vmatprep.subr.msk.mxu1 (!%p375_p2), %vm505_vm0, %v455_v0  ;;  %p422_p3 = scmp.lt.s32.totalorder (!%p375_p2), %s1826_s25, 63  ;;  %v828_v1 = vld [vmem:[%s2967_s3] sm:$0xf] (!%p375_p2)  ;;  %vm829_vm3 = vcmask (!%p375_p2), 31744  }
   0x7   : > { %2025 = vmatpush3.msk.msra.mxu1 (!%p375_p2), %vm505_vm0, %v455_v0  ;;  %v1186_v34 = vld [vmem:[%s2973_s9] sm:$0x3] (!%p375_p2) }
   0x8   : > { %2050 = vmatprep.subr.msk.mxu1 (!%p375_p2), %vm878_vm1, %v828_v1  ;;  %2076 = vmatprep.subr.msk.mxu0 (!%p375_p2), %vm505_vm0, %v1186_v34  ;;  %v2519_v35 = vld [vmem:[%s2972_s8] sm:$0x3] (!%p375_p2) }
   0x9   : > { %2077 = vmatpush3.msk.msra.mxu0 (!%p375_p2), %vm505_vm0, %v1186_v34  ;;  %v2552_v52 = vld [vmem:[%s2970_s6] ss:$0 sm:$0xff] (!%p375_p2) }
   0xa   : > { %2102 = vmatprep.subr.msk.mxu0 (!%p375_p2), %vm505_vm0, %v2519_v35  ;;  %v2557_v53 = vld [vmem:[%s2968_s4] ss:$0 sm:$0xff] (!%p375_p2) }
   0xb   : > { %v2562_v55 = vld [vmem:[%s2971_s7] ss:$0 sm:$0xff] (!%p375_p2) }
   0xc   : > { %v2570_v60 = vld [vmem:[%s2969_s5] ss:$0 sm:$0xff] (!%p375_p2) }
   0xd   : > { %s2978_s25 = smov (!%p422_p3, %s1826_s25), 63 }
   0xe   : > { %s2433_s28 = sshll.u32 %s2978_s25, 3 }
   0xf   : > { %s2439_s13 = scalar_lea.vmem %s2964_s0, %s2433_s28  ;;  %s2473_s16 = scalar_lea.vmem %s2965_s1, %s2433_s28 }
  0x10   : > { %v439_v2 = vld [vmem:[%s2439_s13] sm:$0xff]  ;;  %v440_v3 = vld [vmem:[%s2439_s13 + $0x8] sm:$0xff]  ;;  %v441_v4 = vld [vmem:[%s2439_s13 + $0x10] sm:$0xff]  ;;  %s2901_s19 = scalar_lea.vmem %s2976_s12, %s2433_s28 }
  0x11   : > { %2026 = vmatprep.mubr.msk.f32.mxu1 %vm456_vm2, %v439_v2  ;;  %v442_v5 = vld [vmem:[%s2439_s13 + $0x18] sm:$0xff]  ;;  %v443_v6 = vld [vmem:[%s2439_s13 + $0x20] sm:$0xff]  ;;  %v444_v7 = vld [vmem:[%s2439_s13 + $0x28] sm:$0xff] }
  0x12   : > { %2027 = vmatmul.mubr.msk.f32.vlgmr.msra.gmra.mrb[0].mxu1 %vm456_vm2, %v440_v3  ;;  %v445_v8 = vld [vmem:[%s2439_s13 + $0x30] sm:$0xff]  ;;  %v446_v9 = vld [vmem:[%s2439_s13 + $0x38] sm:$0xff]  ;;  %v447_v10 = vld [vmem:[%s2439_s13 + $0x40] sm:$0xff] }
  0x13   : > { %2051 = vmatpush3.msk.msra.mxu1 %vm878_vm1, %v828_v1  ;;  %2029 = vmatprep.mubr.msk.f32.mxu1 %vm456_vm2, %v441_v4  ;;  %v448_v11 = vld [vmem:[%s2439_s13 + $0x48] sm:$0xff]  ;;  %v449_v12 = vld [vmem:[%s2439_s13 + $0x50] sm:$0xff]  ;;  %v450_v13 = vld [vmem:[%s2439_s13 + $0x58] sm:$0xff] }
  0x14   : > { %v451_v14 = vld [vmem:[%s2439_s13 + $0x60] sm:$0xff]  ;;  %v452_v15 = vld [vmem:[%s2439_s13 + $0x68] sm:$0xff]  ;;  %v453_v16 = vld [vmem:[%s2439_s13 + $0x70] sm:$0xff] }
  0x15   : > { %v454_v17 = vld [vmem:[%s2439_s13 + $0x78] sm:$0xff]  ;;  %v812_v18 = vld [vmem:[%s2473_s16] sm:$0xff]  ;;  %v813_v19 = vld [vmem:[%s2473_s16 + $0x8] sm:$0xff] }
  0x16   : > { %2030 = vmatmul.mubr.msk.f32.gmra.mrb[2].mxu1 %vm456_vm2, %v442_v5  ;;  %v814_v20 = vld [vmem:[%s2473_s16 + $0x10] sm:$0xff]  ;;  %v815_v21 = vld [vmem:[%s2473_s16 + $0x18] sm:$0xff]  ;;  %v816_v22 = vld [vmem:[%s2473_s16 + $0x20] sm:$0xff] }
  0x17   : > { %2032 = vmatprep.mubr.msk.f32.mxu1 %vm456_vm2, %v443_v6  ;;  %v817_v23 = vld [vmem:[%s2473_s16 + $0x28] sm:$0xff]  ;;  %v818_v24 = vld [vmem:[%s2473_s16 + $0x30] sm:$0xff]  ;;  %v819_v25 = vld [vmem:[%s2473_s16 + $0x38] sm:$0xff] }
  0x18   : > { %v820_v26 = vld [vmem:[%s2473_s16 + $0x40] sm:$0xff]  ;;  %v821_v27 = vld [vmem:[%s2473_s16 + $0x48] sm:$0xff]  ;;  %v822_v28 = vld [vmem:[%s2473_s16 + $0x50] sm:$0xff] }
  0x19   : > { %v823_v29 = vld [vmem:[%s2473_s16 + $0x58] sm:$0xff]  ;;  %v824_v30 = vld [vmem:[%s2473_s16 + $0x60] sm:$0xff]  ;;  %v825_v31 = vld [vmem:[%s2473_s16 + $0x68] sm:$0xff] }
  0x1a   : > { %2033 = vmatmul.mubr.msk.f32.gmra.mrb[4].mxu1 %vm456_vm2, %v444_v7  ;;  %v826_v32 = vld [vmem:[%s2473_s16 + $0x70] sm:$0xff]  ;;  %v827_v33 = vld [vmem:[%s2473_s16 + $0x78] sm:$0xff] }
  0x1b   : > { %2035 = vmatprep.mubr.msk.f32.mxu1 %vm456_vm2, %v445_v8 }
  0x1e   : > { %2036 = vmatmul.mubr.msk.f32.gmra.mrb[6].mxu1 %vm456_vm2, %v446_v9 }
  0x1f   : > { %2038 = vmatprep.mubr.msk.f32.mxu1 %vm456_vm2, %v447_v10 }
  0x22   : > { %2039 = vmatmul.mubr.msk.f32.gmra.mrb[8].mxu1 %vm456_vm2, %v448_v11 }
  0x23   : > { %2041 = vmatprep.mubr.msk.f32.mxu1 %vm456_vm2, %v449_v12 }
  0x26   : > { %2042 = vmatmul.mubr.msk.f32.gmra.mrb[10].mxu1 %vm456_vm2, %v450_v13 }
  0x27   : > { %2044 = vmatprep.mubr.msk.f32.mxu1 %vm456_vm2, %v451_v14 }
  0x2a   : > { %2045 = vmatmul.mubr.msk.f32.gmra.mrb[12].mxu1 %vm456_vm2, %v452_v15 }
  0x2b   : > { %2047 = vmatprep.mubr.msk.f32.mxu1 %vm456_vm2, %v453_v16 }
  0x2e   : > { %2048 = vmatmul.mubr.msk.f32.gmra.mrb[14].mxu1 %vm456_vm2, %v454_v17 }
  0x2f   : > { %2052 = vmatprep.mubr.msk.f32.mxu1 %vm829_vm3, %v812_v18 }
  0x32   : > { %2053 = vmatmul.mubr.msk.f32.vlgmr.msra.gmra.mrb[16].mxu1 %vm829_vm3, %v813_v19 }
  0x33   : > { %2055 = vmatprep.mubr.msk.f32.mxu1 %vm829_vm3, %v814_v20 }
  0x36   : > { %2056 = vmatmul.mubr.msk.f32.gmra.mrb[18].mxu1 %vm829_vm3, %v815_v21 }
  0x37   : > { %2058 = vmatprep.mubr.msk.f32.mxu1 %vm829_vm3, %v816_v22 }
  0x3a   : > { %2059 = vmatmul.mubr.msk.f32.gmra.mrb[20].mxu1 %vm829_vm3, %v817_v23 }
  0x3b   : > { %2061 = vmatprep.mubr.msk.f32.mxu1 %vm829_vm3, %v818_v24 }
  0x3e   : > { %2062 = vmatmul.mubr.msk.f32.gmra.mrb[22].mxu1 %vm829_vm3, %v819_v25 }
  0x3f   : > { %2064 = vmatprep.mubr.msk.f32.mxu1 %vm829_vm3, %v820_v26 }
  0x42   : > { %2065 = vmatmul.mubr.msk.f32.gmra.mrb[24].mxu1 %vm829_vm3, %v821_v27 }
  0x43   : > { %2067 = vmatprep.mubr.msk.f32.mxu1 %vm829_vm3, %v822_v28 }
  0x46   : > { %2068 = vmatmul.mubr.msk.f32.gmra.mrb[26].mxu1 %vm829_vm3, %v823_v29 }
  0x47   : > { %2070 = vmatprep.mubr.msk.f32.mxu1 %vm829_vm3, %v824_v30 }
  0x4a   : > { %2071 = vmatmul.mubr.msk.f32.gmra.mrb[28].mxu1 %vm829_vm3, %v825_v31 }
  0x4b   : > { %2073 = vmatprep.mubr.msk.f32.mxu1 %vm829_vm3, %v826_v32 }
  0x4e   : > { %2074 = vmatmul.mubr.msk.f32.gmra.mrb[30].mxu1 %vm829_vm3, %v827_v33 }
  0xe5   : > { %v2028_v36 = vpop.f32.mrb[0].mxu1 }
  0xe6   : > { %v575_v37 = vpop.f32.mrb[1].mxu1  ;;  %v662_v58 = vmul.f32 %v2028_v36, %v2557_v53 }
  0xe7   : > { %v661_v4 = vmul.f32 %v2557_v53, %v575_v37 }
  0xe8   : > { %v2581_v3 = vadd.f32 %v2570_v60, %v662_v58 }
  0xe9   : > { %v2523_v38 = vpop.f32.mrb[2].mxu1  ;;  %v2597_v15 = vadd.f32 %v2570_v60, %v661_v4 }
  0xea   : > { %v585_v39 = vpop.f32.mrb[3].mxu1  ;;  %v1852_v14 = vmul.f32 -1.442695, %v2581_v3 }
  0xeb   : > { %v663_v7 = vmul.f32 %v2557_v53, %v585_v39  ;;  %v1851_v25 = vmul.f32 -1.442695, %v2597_v15 }
  0xed   : > { %v2525_v40 = vpop.f32.mrb[4].mxu1  ;;  %v2601_v17 = vadd.f32 %v2570_v60, %v663_v7 }
  0xee   : > { %v2527_v41 = vpop.f32.mrb[5].mxu1 }
  0xef   : > { %v1853_v28 = vmul.f32 -1.442695, %v2601_v17 }
  0xf1   : > { %v2529_v42 = vpop.f32.mrb[6].mxu1 }
  0xf2   : > { %v2531_v43 = vpop.f32.mrb[7].mxu1 }
  0xf5   : > { %v2533_v44 = vpop.f32.mrb[8].mxu1 }
  0xf6   : > { %v2535_v45 = vpop.f32.mrb[9].mxu1 }
  0xf9   : > { %v2537_v46 = vpop.f32.mrb[10].mxu1 }
  0xfa   : > { %v2539_v47 = vpop.f32.mrb[11].mxu1 }
  0xfd   : > { %v2541_v48 = vpop.f32.mrb[12].mxu1 }
  0xfe   : > { %v2543_v49 = vpop.f32.mrb[13].mxu1 }
 0x101   : > { %v2545_v50 = vpop.f32.mrb[14].mxu1 }
 0x102   : > { %v2547_v51 = vpop.f32.mrb[15].mxu1 }
 0x105   : > { %v2054_v54 = vpop.f32.mrb[16].mxu1 }
 0x106   : > { %v1035_v56 = vmul.f32 %v2054_v54, %v2552_v52  ;;  %v948_v57 = vpop.f32.mrb[17].mxu1 }
 0x107   : > { %v1034_v59 = vmul.f32 %v2552_v52, %v948_v57 }
 0x108   : > { %v2573_v61 = vadd.f32 %v2562_v55, %v1035_v56 }
 0x109   : > { %v2576_v62 = vadd.f32 %v2562_v55, %v1034_v59  ;;  %v2057_v63 = vpop.f32.mrb[18].mxu1 }
 0x10a   : > { %v1887_v0 = vmul.f32 -1.442695, %v2573_v61  ;;  %v1037_v1 = vmul.f32 %v2057_v63, %v2552_v52  ;;  %v958_v2 = vpop.f32.mrb[19].mxu1 }
 0x10b   : > { %v1886_v5 = vmul.f32 -1.442695, %v2576_v62  ;;  %v1036_v6 = vmul.f32 %v2552_v52, %v958_v2 }
 0x10c   : > { %v2588_v8 = vadd.f32 %v2562_v55, %v1037_v1  ;;  %2152 = vpow2.f32 %v1887_v0 }
 0x10d   : > { %v2591_v9 = vadd.f32 %v2562_v55, %v1036_v6  ;;  %v2060_v10 = vpop.f32.mrb[20].mxu1  ;;  %2154 = vpow2.f32 %v1886_v5 }
 0x10e   : > { %v1889_v11 = vmul.f32 -1.442695, %v2588_v8  ;;  %v1039_v12 = vmul.f32 %v2060_v10, %v2552_v52  ;;  %v968_v13 = vpop.f32.mrb[21].mxu1 }
 0x10f   : > { %v1038_v16 = vmul.f32 %v2552_v52, %v968_v13  ;;  %v1888_v18 = vmul.f32 -1.442695, %v2591_v9 }
 0x110   : > { %v2605_v19 = vadd.f32 %v2562_v55, %v1039_v12  ;;  %2156 = vpow2.f32 %v1889_v11 }
 0x111   : > { %v2608_v20 = vadd.f32 %v2562_v55, %v1038_v16  ;;  %v2063_v21 = vpop.f32.mrb[22].mxu1  ;;  %2158 = vpow2.f32 %v1852_v14 }
 0x112   : > { %v1891_v22 = vmul.f32 -1.442695, %v2605_v19  ;;  %v1041_v23 = vmul.f32 %v2063_v21, %v2552_v52  ;;  %v978_v24 = vpop.f32.mrb[23].mxu1  ;;  %2160 = vpow2.f32 %v1888_v18 }
 0x113   : > { %v1890_v26 = vmul.f32 -1.442695, %v2608_v20  ;;  %v1040_v27 = vmul.f32 %v2552_v52, %v978_v24 }
 0x114   : > { %v2617_v29 = vadd.f32 %v2562_v55, %v1041_v23  ;;  %2162 = vpow2.f32 %v1891_v22 }
 0x115   : > { %v2620_v30 = vadd.f32 %v2562_v55, %v1040_v27  ;;  %v2066_v31 = vpop.f32.mrb[24].mxu1  ;;  %2164 = vpow2.f32 %v1890_v26 }
 0x116   : > { %v1893_v32 = vmul.f32 -1.442695, %v2617_v29  ;;  %v1043_v33 = vmul.f32 %v2066_v31, %v2552_v52  ;;  %v988_v34 = vpop.f32.mrb[25].mxu1  ;;  %2166 = vpow2.f32 %v1851_v25  ;;  %v2153_v39 = vpop.eup %2152 }
 0x117   : > { %v1892_v36 = vmul.f32 -1.442695, %v2620_v30  ;;  %v1042_v37 = vmul.f32 %v2552_v52, %v988_v34  ;;  %2168 = vpow2.f32 %v1853_v28  ;;  %v2155_v56 = vpop.eup %2154  ;;  %v1122_v57 = vadd.f32 1.0, %v2153_v39 }
 0x118   : > { %v2627_v54 = vadd.f32 %v2562_v55, %v1043_v33  ;;  %2170 = vpow2.f32 %v1893_v32  ;;  %v1121_v63 = vadd.f32 1.0, %v2155_v56  ;;  %v664_v32 = vmul.f32 %v2523_v38, %v2557_v53 }
 0x119   : > { %v2630_v58 = vadd.f32 %v2562_v55, %v1042_v37  ;;  %v2069_v59 = vpop.f32.mrb[26].mxu1  ;;  %2172 = vpow2.f32 %v1892_v36  ;;  %v666_v39 = vmul.f32 %v2525_v40, %v2557_v53  ;;  %v665_v38 = vmul.f32 %v2557_v53, %v2527_v41 }
 0x11a   : > { %v1895_v0 = vmul.f32 -1.442695, %v2627_v54  ;;  %v1045_v1 = vmul.f32 %v2069_v59, %v2552_v52  ;;  %v998_v2 = vpop.f32.mrb[27].mxu1  ;;  %2174 = vrcp.f32 %v1122_v57  ;;  %v2157_v6 = vpop.eup %2156 }
 0x11b   : > { %v1894_v4 = vmul.f32 -1.442695, %v2630_v58  ;;  %v1044_v5 = vmul.f32 %v2552_v52, %v998_v2  ;;  %2176 = vrcp.f32 %v1121_v63  ;;  %v2639_v10 = vpop.eup %2158  ;;  %v1124_v11 = vadd.f32 1.0, %v2157_v6 }
 0x11c   : > { %v2637_v7 = vadd.f32 %v2562_v55, %v1045_v1  ;;  %2178 = vpow2.f32 %v1895_v0  ;;  %v2161_v14 = vpop.eup %2160  ;;  %v2672_v6 = vadd.f32 %v2570_v60, %v664_v32 }
 0x11d   : > { %v2642_v12 = vadd.f32 %v2562_v55, %v1044_v5  ;;  %v2072_v13 = vpop.f32.mrb[28].mxu1  ;;  %2180 = vpow2.f32 %v1894_v4  ;;  %v1123_v23 = vadd.f32 1.0, %v2161_v14  ;;  %v668_v14 = vmul.f32 %v2529_v42, %v2557_v53 }
 0x11e   : > { %v1897_v16 = vmul.f32 -1.442695, %v2637_v7  ;;  %v1047_v18 = vmul.f32 %v2072_v13, %v2552_v52  ;;  %v1008_v21 = vpop.f32.mrb[29].mxu1  ;;  %v2163_v22 = vpop.eup %2162  ;;  %2182 = vrcp.f32 %v1124_v11 }
 0x11f   : > { %v1046_v24 = vmul.f32 %v2552_v52, %v1008_v21  ;;  %v2165_v25 = vpop.eup %2164  ;;  %v1126_v26 = vadd.f32 1.0, %v2163_v22  ;;  %v1896_v27 = vmul.f32 -1.442695, %v2642_v12  ;;  %v2684_v21 = vadd.f32 %v2570_v60, %v665_v38 }
 0x120   : > { %2184 = vpow2.f32 %v1897_v16  ;;  %v2649_v28 = vadd.f32 %v2562_v55, %v1047_v18  ;;  %v2651_v31 = vpop.eup %2166  ;;  %v1125_v33 = vadd.f32 1.0, %v2165_v25  ;;  %v667_v22 = vmul.f32 %v2557_v53, %v2531_v43 }
 0x121   : > { %2186 = vrcp.f32 %v1123_v23  ;;  %v2656_v34 = vadd.f32 %v2562_v55, %v1046_v24  ;;  %v2075_v36 = vpop.f32.mrb[30].mxu1  ;;  %v2658_v37 = vpop.eup %2168 }
 0x122   : > { %2188 = vrcp.f32 %v1126_v26  ;;  %v1899_v56 = vmul.f32 -1.442695, %v2649_v28  ;;  %v1049_v57 = vmul.f32 %v2075_v36, %v2552_v52  ;;  %v1018_v59 = vpop.f32.mrb[31].mxu1  ;;  %v2171_v63 = vpop.eup %2170  ;;  %v2695_v36 = vadd.f32 %v2570_v60, %v668_v14 }
 0x123   : > { %2190 = vrcp.f32 %v1125_v33  ;;  %v1048_v0 = vmul.f32 %v2552_v52, %v1018_v59  ;;  %v2173_v1 = vpop.eup %2172  ;;  %v1128_v2 = vadd.f32 1.0, %v2171_v63  ;;  %v1898_v4 = vmul.f32 -1.442695, %v2656_v34 }
 0x124   : > { %2192 = vpow2.f32 %v1896_v27  ;;  %v2669_v40 = vadd.f32 %v2562_v55, %v1049_v57  ;;  %v2175_v5 = vpop.eup %2174  ;;  %v1127_v11 = vadd.f32 1.0, %v2173_v1  ;;  %v2678_v52 = vadd.f32 %v2570_v60, %v666_v39 }
 0x125   : > { %2194 = vpow2.f32 %v1899_v56  ;;  %v2675_v13 = vadd.f32 %v2562_v55, %v1048_v0  ;;  %v2177_v41 = vpop.eup %2176  ;;  %v1170_v24 = vmul.f32 %v2175_v5, %v2573_v61  ;;  %v1854_v27 = vmul.f32 -1.442695, %v2672_v6 }
 0x126   : > { %2196 = vrcp.f32 %v1128_v2  ;;  %v1901_v16 = vmul.f32 -1.442695, %v2669_v40  ;;  %v2179_v18 = vpop.eup %2178  ;;  %v1169_v55 = vmul.f32 %v2177_v41, %v2576_v62  ;;  %v1856_v43 = vmul.f32 -1.442695, %v2678_v52 }
 0x127   : > { %2198 = vrcp.f32 %v1127_v11  ;;  %v2181_v23 = vpop.eup %2180  ;;  %v1130_v25 = vadd.f32 1.0, %v2179_v18  ;;  %v1900_v42 = vmul.f32 -1.442695, %v2675_v13  ;;  %v1855_v62 = vmul.f32 -1.442695, %v2684_v21 }
 0x128   : > { %2200 = vpow2.f32 %v1898_v4  ;;  %v2183_v26 = vpop.eup %2182  ;;  %v1129_v32 = vadd.f32 1.0, %v2181_v23  ;;  %2078 = vmatprep.mubr.msk.f32.mxu0 %vm456_vm2, %v1169_v55  ;;  %v2700_v39 = vadd.f32 %v2570_v60, %v667_v22  ;;  %v669_v56 = vmul.f32 %v2557_v53, %v2535_v45 }
 0x129   : > { %2202 = vpow2.f32 %v1901_v16  ;;  %2079 = vmatmul.mubr.msk.f32.vlgmr.msra.gmra.mrb[0].mxu0 %vm456_vm2, %v1170_v24  ;;  %v1172_v0 = vmul.f32 %v2183_v26, %v2588_v8  ;;  %v1858_v2 = vmul.f32 -1.442695, %v2695_v36  ;;  %v670_v45 = vmul.f32 %v2533_v44, %v2557_v53 }
 0x12a   : > { %v2185_v33 = vpop.eup %2184  ;;  %2204 = vrcp.f32 %v1130_v25  ;;  %2103 = vmatpush3.msk.msra.mxu0 %vm505_vm0, %v2519_v35  ;;  %v2715_v5 = vadd.f32 %v2570_v60, %v669_v56  ;;  %v671_v41 = vmul.f32 %v2557_v53, %v2539_v47  ;;  %v748_v18 = vadd.f32 1.0, %v2651_v31 }
 0x12b   : > { %v2187_v61 = vpop.eup %2186  ;;  %2206 = vrcp.f32 %v1129_v32  ;;  %v1132_v63 = vadd.f32 1.0, %v2185_v33  ;;  %v2724_v22 = vadd.f32 %v2570_v60, %v670_v45  ;;  %v672_v24 = vmul.f32 %v2537_v46, %v2557_v53 }
 0x12c   : > { %v2189_v57 = vpop.eup %2188  ;;  %v1171_v59 = vmul.f32 %v2187_v61, %v2591_v9  ;;  %2208 = vpow2.f32 %v1900_v42  ;;  %v1857_v9 = vmul.f32 -1.442695, %v2700_v39  ;;  %v1859_v47 = vmul.f32 -1.442695, %v2715_v5 }
 0x12d   : > { %v2191_v38 = vpop.eup %2190  ;;  %2210 = vpow2.f32 %v1854_v27  ;;  %v1174_v14 = vmul.f32 %v2189_v57, %v2605_v19  ;;  %v2732_v42 = vadd.f32 %v2570_v60, %v671_v41  ;;  %v673_v31 = vmul.f32 %v2557_v53, %v2543_v49 }
 0x12e   : > { %v2193_v1 = vpop.eup %2192  ;;  %2212 = vpow2.f32 %v1856_v43  ;;  %v1173_v4 = vmul.f32 %v2191_v38, %v2608_v20  ;;  %2081 = vmatprep.mubr.msk.f32.mxu0 %vm456_vm2, %v1171_v59  ;;  %v749_v46 = vadd.f32 1.0, %v2639_v10  ;;  %v1860_v33 = vmul.f32 -1.442695, %v2724_v22 }
 0x12f   : > { %v2195_v35 = vpop.eup %2194  ;;  %2214 = vpow2.f32 %v1855_v62  ;;  %v1131_v11 = vadd.f32 1.0, %v2193_v1  ;;  %2082 = vmatmul.mubr.msk.f32.gmra.mrb[2].mxu0 %vm456_vm2, %v1172_v0  ;;  %v2742_v49 = vadd.f32 %v2570_v60, %v672_v24  ;;  %v674_v62 = vmul.f32 %v2541_v48, %v2557_v53 }
 0x130   : > { %v2197_v8 = vpop.eup %2196  ;;  %2216 = vrcp.f32 %v1132_v63  ;;  %v1134_v44 = vadd.f32 1.0, %v2195_v35  ;;  %2084 = vmatprep.mubr.msk.f32.mxu0 %vm456_vm2, %v1173_v4  ;;  %v1861_v57 = vmul.f32 -1.442695, %v2732_v42  ;;  %v2749_v10 = vadd.f32 %v2570_v60, %v673_v31 }
 0x131   : > { %v2199_v20 = vpop.eup %2198  ;;  %2218 = vrcp.f32 %v1131_v11  ;;  %v1176_v27 = vmul.f32 %v2197_v8, %v2617_v29  ;;  %v750_v63 = vadd.f32 1.0, %v2658_v37  ;;  %v2758_v45 = vadd.f32 %v2570_v60, %v674_v62 }
 0x132   : > { %v2201_v16 = vpop.eup %2200  ;;  %2220 = vpow2.f32 %v1858_v2  ;;  %v1175_v55 = vmul.f32 %v2199_v20, %v2620_v30  ;;  %v1862_v2 = vmul.f32 -1.442695, %v2742_v49 }
 0x133   : > { %v2203_v23 = vpop.eup %2202  ;;  %2222 = vpow2.f32 %v1857_v9  ;;  %v1133_v25 = vadd.f32 1.0, %v2201_v16  ;;  %2085 = vmatmul.mubr.msk.f32.gmra.mrb[4].mxu0 %vm456_vm2, %v1174_v14 }
 0x134   : > { %v2205_v19 = vpop.eup %2204  ;;  %2224 = vrcp.f32 %v1134_v44  ;;  %v1136_v26 = vadd.f32 1.0, %v2203_v23  ;;  %2087 = vmatprep.mubr.msk.f32.mxu0 %vm456_vm2, %v1175_v55 }
 0x135   : > { %v2207_v30 = vpop.eup %2206  ;;  %2226 = vrcp.f32 %v1133_v25  ;;  %v1178_v48 = vmul.f32 %v2205_v19, %v2627_v54  ;;  %v1863_v54 = vmul.f32 -1.442695, %v2749_v10 }
 0x136   : > { %v2209_v32 = vpop.eup %2208  ;;  %2228 = vrcp.f32 %v748_v18  ;;  %v1177_v43 = vmul.f32 %v2207_v30, %v2630_v58  ;;  %v675_v58 = vmul.f32 %v2557_v53, %v2547_v51  ;;  %v676_v51 = vmul.f32 %v2545_v50, %v2557_v53 }
 0x137   : > { %v2211_v61 = vpop.eup %2210  ;;  %2230 = vpow2.f32 %v1859_v47  ;;  %v1135_v56 = vadd.f32 1.0, %v2209_v32  ;;  %2088 = vmatmul.mubr.msk.f32.gmra.mrb[6].mxu0 %vm456_vm2, %v1176_v27  ;;  %v1864_v53 = vmul.f32 -1.442695, %v2758_v45 }
 0x138   : > { %v2213_v29 = vpop.eup %2212  ;;  %2232 = vrcp.f32 %v1136_v26  ;;  %2090 = vmatprep.mubr.msk.f32.mxu0 %vm456_vm2, %v1177_v43  ;;  %v751_v0 = vadd.f32 1.0, %v2211_v61  ;;  %v2765_v37 = vadd.f32 %v2570_v60, %v675_v58  ;;  %v2772_v20 = vadd.f32 %v2570_v60, %v676_v51 }
 0x139   : > { %v2215_v59 = vpop.eup %2214  ;;  %2234 = vrcp.f32 %v1135_v56  ;;  %v753_v44 = vadd.f32 1.0, %v2213_v29 }
 0x13a   : > { %v2217_v38 = vpop.eup %2216  ;;  %2236 = vrcp.f32 %v749_v46  ;;  %v752_v11 = vadd.f32 1.0, %v2215_v59  ;;  %v1865_v14 = vmul.f32 -1.442695, %v2765_v37  ;;  %v1866_v60 = vmul.f32 -1.442695, %v2772_v20 }
 0x13b   : > { %v2219_v1 = vpop.eup %2218  ;;  %2238 = vpow2.f32 %v1860_v33  ;;  %2091 = vmatmul.mubr.msk.f32.gmra.mrb[8].mxu0 %vm456_vm2, %v1178_v48  ;;  %v1180_v8 = vmul.f32 %v2217_v38, %v2637_v7 }
 0x13c   : > { %v2221_v4 = vpop.eup %2220  ;;  %2240 = vpow2.f32 %v1861_v57  ;;  %v1179_v35 = vmul.f32 %v2219_v1, %v2642_v12 }
 0x13d   : > { %v2223_v9 = vpop.eup %2222  ;;  %2242 = vrcp.f32 %v750_v63  ;;  %v755_v25 = vadd.f32 1.0, %v2221_v4 }
 0x13e   : > { %v2225_v41 = vpop.eup %2224  ;;  %2244 = vrcp.f32 %v751_v0  ;;  %2093 = vmatprep.mubr.msk.f32.mxu0 %vm456_vm2, %v1179_v35  ;;  %v754_v18 = vadd.f32 1.0, %v2223_v9 }
 0x13f   : > { %v2227_v50 = vpop.eup %2226  ;;  %2246 = vpow2.f32 %v1862_v2  ;;  %2094 = vmatmul.mubr.msk.f32.gmra.mrb[10].mxu0 %vm456_vm2, %v1180_v8  ;;  %v1182_v55 = vmul.f32 %v2225_v41, %v2649_v28 }
 0x140   : > { %v2229_v12 = vpop.eup %2228  ;;  %2248 = vpow2.f32 %v1863_v54  ;;  %v1181_v7 = vmul.f32 %v2227_v50, %v2656_v34 }
 0x141   : > { %v2231_v16 = vpop.eup %2230  ;;  %2250 = vrcp.f32 %v752_v11  ;;  %v796_v30 = vmul.f32 %v2229_v12, %v2597_v15 }
 0x142   : > { %v2233_v23 = vpop.eup %2232  ;;  %2252 = vrcp.f32 %v753_v44  ;;  %2096 = vmatprep.mubr.msk.f32.mxu0 %vm456_vm2, %v1181_v7  ;;  %v756_v31 = vadd.f32 1.0, %v2231_v16 }
 0x143   : > { %v2235_v47 = vpop.eup %2234  ;;  %2254 = vpow2.f32 %v1864_v53  ;;  %2097 = vmatmul.mubr.msk.f32.gmra.mrb[12].mxu0 %vm456_vm2, %v1182_v55  ;;  %v1184_v28 = vmul.f32 %v2233_v23, %v2669_v40 }
 0x144   : > { %v2237_v24 = vpop.eup %2236  ;;  %2256 = vpow2.f32 %v1865_v14  ;;  %v1183_v34 = vmul.f32 %v2235_v47, %v2675_v13 }
 0x145   : > { %v2239_v19 = vpop.eup %2238  ;;  %2258 = vrcp.f32 %v754_v18  ;;  %v797_v33 = vmul.f32 %v2237_v24, %v2581_v3 }
 0x146   : > { %v2241_v26 = vpop.eup %2240  ;;  %2099 = vmatprep.mubr.msk.f32.mxu0 %vm456_vm2, %v1183_v34  ;;  %2260 = vpow2.f32 %v1866_v60  ;;  %v757_v46 = vadd.f32 1.0, %v2239_v19 }
 0x147   : > { %v2243_v27 = vpop.eup %2242  ;;  %2100 = vmatmul.mubr.msk.f32.gmra.mrb[14].mxu0 %vm456_vm2, %v1184_v28  ;;  %2262 = vrcp.f32 %v755_v25  ;;  %v758_v43 = vadd.f32 1.0, %v2241_v26 }
 0x148   : > { %v2245_v32 = vpop.eup %2244  ;;  %2104 = vmatprep.mubr.msk.f32.mxu0 %vm456_vm2, %v796_v30  ;;  %2264 = vrcp.f32 %v756_v31  ;;  %v798_v61 = vmul.f32 %v2243_v27, %v2601_v17 }
 0x149   : > { %v2247_v13 = vpop.eup %2246  ;;  %2266 = vrcp.f32 %v757_v46  ;;  %v799_v57 = vmul.f32 %v2245_v32, %v2672_v6 }
 0x14a   : > { %v2249_v40 = vpop.eup %2248  ;;  %v759_v56 = vadd.f32 1.0, %v2247_v13  ;;  %2268 = vrcp.f32 %v758_v43 }
 0x14b   : > { %v2251_v15 = vpop.eup %2250  ;;  %2105 = vmatmul.mubr.msk.f32.vlgmr.msra.gmra.mrb[0].mxu0 %vm456_vm2, %v797_v33  ;;  %v760_v58 = vadd.f32 1.0, %v2249_v40 }
 0x14c   : > { %v2253_v62 = vpop.eup %2252  ;;  %2107 = vmatprep.mubr.msk.f32.mxu0 %vm456_vm2, %v798_v61  ;;  %v800_v3 = vmul.f32 %v2251_v15, %v2684_v21  ;;  %2270 = vrcp.f32 %v759_v56 }
 0x14d   : > { %v2255_v29 = vpop.eup %2254  ;;  %v801_v38 = vmul.f32 %v2253_v62, %v2678_v52  ;;  %2272 = vrcp.f32 %v760_v58 }
 0x14e   : > { %v2257_v59 = vpop.eup %2256  ;;  %v761_v17 = vadd.f32 1.0, %v2255_v29 }
 0x14f   : > { %v2259_v63 = vpop.eup %2258  ;;  %2108 = vmatmul.mubr.msk.f32.gmra.mrb[2].mxu0 %vm456_vm2, %v799_v57  ;;  %v762_v0 = vadd.f32 1.0, %v2257_v59 }
 0x150   : > { %2110 = vmatprep.mubr.msk.f32.mxu0 %vm456_vm2, %v800_v3  ;;  %v2261_v48 = vpop.eup %2260  ;;  %v802_v6 = vmul.f32 %v2259_v63, %v2700_v39  ;;  %2274 = vrcp.f32 %v761_v17 }
 0x151   : > { %v2263_v1 = vpop.eup %2262  ;;  %v763_v21 = vadd.f32 1.0, %v2261_v48  ;;  %2276 = vrcp.f32 %v762_v0 }
 0x152   : > { %v2265_v2 = vpop.eup %2264  ;;  %v803_v51 = vmul.f32 %v2263_v1, %v2695_v36 }
 0x153   : > { %2111 = vmatmul.mubr.msk.f32.gmra.mrb[4].mxu0 %vm456_vm2, %v801_v38  ;;  %v2267_v4 = vpop.eup %2266  ;;  %v804_v54 = vmul.f32 %v2265_v2, %v2715_v5  ;;  %2278 = vrcp.f32 %v763_v21 }
 0x154   : > { %2113 = vmatprep.mubr.msk.f32.mxu0 %vm456_vm2, %v802_v6  ;;  %v2269_v35 = vpop.eup %2268  ;;  %v805_v52 = vmul.f32 %v2267_v4, %v2724_v22 }
 0x155   : > { %v806_v9 = vmul.f32 %v2269_v35, %v2732_v42 }
 0x156   : > { %v2271_v39 = vpop.eup %2270 }
 0x157   : > { %2114 = vmatmul.mubr.msk.f32.gmra.mrb[6].mxu0 %vm456_vm2, %v803_v51  ;;  %v2273_v11 = vpop.eup %2272  ;;  %v807_v36 = vmul.f32 %v2271_v39, %v2742_v49  ;;  %v2820_v49 = vld [vmem:[%s2974_s10] ss:$0 sm:$0xff] }
 0x158   : > { %2116 = vmatprep.mubr.msk.f32.mxu0 %vm456_vm2, %v804_v54  ;;  %v808_v5 = vmul.f32 %v2273_v11, %v2749_v10 }
 0x15a   : > { %v2275_v8 = vpop.eup %2274 }
 0x15b   : > { %2117 = vmatmul.mubr.msk.f32.gmra.mrb[8].mxu0 %vm456_vm2, %v805_v52  ;;  %v2277_v41 = vpop.eup %2276  ;;  %v809_v22 = vmul.f32 %v2275_v8, %v2758_v45  ;;  %v2825_v45 = vld [vmem:[%s2975_s11] ss:$0 sm:$0xff] }
 0x15c   : > { %2119 = vmatprep.mubr.msk.f32.mxu0 %vm456_vm2, %v806_v9  ;;  %v810_v42 = vmul.f32 %v2277_v41, %v2765_v37 }
 0x15d   : > { %v2279_v44 = vpop.eup %2278 }
 0x15e   : > { %v811_v50 = vmul.f32 %v2279_v44, %v2772_v20 }
 0x15f   : > { %2120 = vmatmul.mubr.msk.f32.gmra.mrb[10].mxu0 %vm456_vm2, %v807_v36 }
 0x160   : > { %2122 = vmatprep.mubr.msk.f32.mxu0 %vm456_vm2, %v808_v5 }
 0x163   : > { %2123 = vmatmul.mubr.msk.f32.gmra.mrb[12].mxu0 %vm456_vm2, %v809_v22 }
 0x164   : > { %2125 = vmatprep.mubr.msk.f32.mxu0 %vm456_vm2, %v810_v42 }
 0x167   : > { %2126 = vmatmul.mubr.msk.f32.gmra.mrb[14].mxu0 %vm456_vm2, %v811_v50 }
 0x21e   : > { %v2106_v10 = vpop.f32.mrb[0].mxu0 }
 0x21f   : > { %v1587_v37 = vmul.f32 %v2106_v10, %v2820_v49  ;;  %v1500_v53 = vpop.f32.mrb[1].mxu0 }
 0x220   : > { %v1586_v12 = vmul.f32 %v2820_v49, %v1500_v53 }
 0x221   : > { %v2830_v20 = vadd.f32 %v2825_v45, %v1587_v37 }
 0x222   : > { %v2833_v14 = vadd.f32 %v2825_v45, %v1586_v12  ;;  %v2109_v7 = vpop.f32.mrb[2].mxu0 }
 0x223   : > { %v1939_v16 = vmul.f32 -1.442695, %v2830_v20  ;;  %v1589_v18 = vmul.f32 %v2109_v7, %v2820_v49  ;;  %v1510_v55 = vpop.f32.mrb[3].mxu0 }
 0x224   : > { %v1938_v23 = vmul.f32 -1.442695, %v2833_v14  ;;  %v1588_v47 = vmul.f32 %v2820_v49, %v1510_v55 }
 0x225   : > { %2280 = vpow2.f32 %v1939_v16  ;;  %v2840_v60 = vadd.f32 %v2825_v45, %v1589_v18 }
 0x226   : > { %2282 = vpow2.f32 %v1938_v23  ;;  %v2843_v24 = vadd.f32 %v2825_v45, %v1588_v47  ;;  %v2112_v25 = vpop.f32.mrb[4].mxu0 }
 0x227   : > { %v1941_v34 = vmul.f32 -1.442695, %v2840_v60  ;;  %v1591_v19 = vmul.f32 %v2112_v25, %v2820_v49  ;;  %v1520_v31 = vpop.f32.mrb[5].mxu0 }
 0x228   : > { %v1940_v28 = vmul.f32 -1.442695, %v2843_v24  ;;  %v1590_v26 = vmul.f32 %v2820_v49, %v1520_v31 }
 0x229   : > { %2284 = vpow2.f32 %v1941_v34  ;;  %v2850_v30 = vadd.f32 %v2825_v45, %v1591_v19 }
 0x22a   : > { %2286 = vpow2.f32 %v1940_v28  ;;  %v2853_v27 = vadd.f32 %v2825_v45, %v1590_v26  ;;  %v2115_v32 = vpop.f32.mrb[6].mxu0 }
 0x22b   : > { %v1943_v46 = vmul.f32 -1.442695, %v2850_v30  ;;  %v1593_v13 = vmul.f32 %v2115_v32, %v2820_v49  ;;  %v1530_v33 = vpop.f32.mrb[7].mxu0 }
 0x22c   : > { %v1942_v43 = vmul.f32 -1.442695, %v2853_v27  ;;  %v1592_v40 = vmul.f32 %v2820_v49, %v1530_v33 }
 0x22d   : > { %2288 = vpow2.f32 %v1943_v46  ;;  %v2860_v61 = vadd.f32 %v2825_v45, %v1593_v13 }
 0x22e   : > { %2290 = vpow2.f32 %v1942_v43  ;;  %v2863_v15 = vadd.f32 %v2825_v45, %v1592_v40  ;;  %v2118_v62 = vpop.f32.mrb[8].mxu0 }
 0x22f   : > { %v2281_v56 = vpop.eup %2280  ;;  %v1945_v29 = vmul.f32 -1.442695, %v2860_v61  ;;  %v1595_v57 = vmul.f32 %v2118_v62, %v2820_v49  ;;  %v1540_v58 = vpop.f32.mrb[9].mxu0 }
 0x230   : > { %v2283_v59 = vpop.eup %2282  ;;  %v1674_v3 = vadd.f32 1.0, %v2281_v56  ;;  %v1944_v63 = vmul.f32 -1.442695, %v2863_v15  ;;  %v1594_v17 = vmul.f32 %v2820_v49, %v1540_v58 }
 0x231   : > { %v1673_v48 = vadd.f32 1.0, %v2283_v59  ;;  %2292 = vpow2.f32 %v1945_v29  ;;  %v2870_v38 = vadd.f32 %v2825_v45, %v1595_v57 }
 0x232   : > { %2294 = vrcp.f32 %v1674_v3  ;;  %v2873_v0 = vadd.f32 %v2825_v45, %v1594_v17  ;;  %v2121_v1 = vpop.f32.mrb[10].mxu0 }
 0x233   : > { %v2285_v6 = vpop.eup %2284  ;;  %2296 = vrcp.f32 %v1673_v48  ;;  %v1947_v2 = vmul.f32 -1.442695, %v2870_v38  ;;  %v1597_v21 = vmul.f32 %v2121_v1, %v2820_v49  ;;  %v1550_v51 = vpop.f32.mrb[11].mxu0 }
 0x234   : > { %v2287_v4 = vpop.eup %2286  ;;  %v1676_v54 = vadd.f32 1.0, %v2285_v6  ;;  %2298 = vpow2.f32 %v1944_v63  ;;  %v1946_v35 = vmul.f32 -1.442695, %v2873_v0  ;;  %v1596_v52 = vmul.f32 %v2820_v49, %v1550_v51 }
 0x235   : > { %v1675_v39 = vadd.f32 1.0, %v2287_v4  ;;  %2300 = vpow2.f32 %v1947_v2  ;;  %v2880_v9 = vadd.f32 %v2825_v45, %v1597_v21 }
 0x236   : > { %2302 = vrcp.f32 %v1676_v54  ;;  %v2883_v11 = vadd.f32 %v2825_v45, %v1596_v52  ;;  %v2124_v36 = vpop.f32.mrb[12].mxu0 }
 0x237   : > { %v2289_v8 = vpop.eup %2288  ;;  %2304 = vrcp.f32 %v1675_v39  ;;  %v1949_v5 = vmul.f32 -1.442695, %v2880_v9  ;;  %v1599_v41 = vmul.f32 %v2124_v36, %v2820_v49  ;;  %v1560_v22 = vpop.f32.mrb[13].mxu0 }
 0x238   : > { %v2291_v44 = vpop.eup %2290  ;;  %v1678_v42 = vadd.f32 1.0, %v2289_v8  ;;  %2306 = vpow2.f32 %v1946_v35  ;;  %v1948_v50 = vmul.f32 -1.442695, %v2883_v11  ;;  %v1598_v10 = vmul.f32 %v2820_v49, %v1560_v22 }
 0x239   : > { %v1677_v37 = vadd.f32 1.0, %v2291_v44  ;;  %2308 = vpow2.f32 %v1949_v5  ;;  %v2890_v53 = vadd.f32 %v2825_v45, %v1599_v41 }
 0x23a   : > { %2310 = vrcp.f32 %v1678_v42  ;;  %v2893_v12 = vadd.f32 %v2825_v45, %v1598_v10  ;;  %v2127_v7 = vpop.f32.mrb[14].mxu0 }
 0x23b   : > { %v2293_v16 = vpop.eup %2292  ;;  %2312 = vrcp.f32 %v1677_v37  ;;  %v1951_v18 = vmul.f32 -1.442695, %v2890_v53  ;;  %v1601_v55 = vmul.f32 %v2127_v7, %v2820_v49  ;;  %v1570_v23 = vpop.f32.mrb[15].mxu0 }
 0x23c   : > { %v2295_v47 = vpop.eup %2294  ;;  %v1680_v25 = vadd.f32 1.0, %v2293_v16  ;;  %2314 = vpow2.f32 %v1948_v50  ;;  %v1950_v34 = vmul.f32 -1.442695, %v2893_v12  ;;  %v1600_v19 = vmul.f32 %v2820_v49, %v1570_v23 }
 0x23d   : > { %v2297_v31 = vpop.eup %2296  ;;  %v1722_v28 = vmul.f32 %v2295_v47, %v2830_v20  ;;  %2316 = vpow2.f32 %v1951_v18  ;;  %v2907_v26 = vadd.f32 %v2825_v45, %v1601_v55 }
 0x23e   : > { %v2299_v32 = vpop.eup %2298  ;;  %v1721_v46 = vmul.f32 %v2297_v31, %v2833_v14  ;;  %2318 = vrcp.f32 %v1680_v25  ;;  %v2911_v13 = vadd.f32 %v2825_v45, %v1600_v19 }
 0x23f   : > { %v2301_v33 = vpop.eup %2300  ;;  %1738 = vst.msk [vmem:[%s2901_s19 + $0x8] sm:$0xff] %vm829_vm3, %v1722_v28  ;;  %v1679_v43 = vadd.f32 1.0, %v2299_v32  ;;  %2320 = vpow2.f32 %v1950_v34  ;;  %v1953_v49 = vmul.f32 -1.442695, %v2907_v26 }
 0x240   : > { %v2303_v20 = vpop.eup %2302  ;;  %1737 = vst.msk [vmem:[%s2901_s19] sm:$0xff] %vm829_vm3, %v1721_v46  ;;  %v1682_v40 = vadd.f32 1.0, %v2301_v33  ;;  %v1952_v62 = vmul.f32 -1.442695, %v2911_v13 }
 0x241   : > { %v2305_v14 = vpop.eup %2304  ;;  %v1724_v56 = vmul.f32 %v2303_v20, %v2840_v60  ;;  %2322 = vrcp.f32 %v1679_v43 }
 0x242   : > { %v2307_v45 = vpop.eup %2306  ;;  %v1723_v29 = vmul.f32 %v2305_v14, %v2843_v24  ;;  %2324 = vrcp.f32 %v1682_v40 }
 0x243   : > { %v2309_v57 = vpop.eup %2308  ;;  %1740 = vst.msk [vmem:[%s2901_s19 + $0x18] sm:$0xff] %vm829_vm3, %v1724_v56  ;;  %v1681_v58 = vadd.f32 1.0, %v2307_v45  ;;  %2326 = vpow2.f32 %v1953_v49 }
 0x244   : > { %v2311_v59 = vpop.eup %2310  ;;  %1739 = vst.msk [vmem:[%s2901_s19 + $0x10] sm:$0xff] %vm829_vm3, %v1723_v29  ;;  %v1684_v3 = vadd.f32 1.0, %v2309_v57  ;;  %2328 = vpow2.f32 %v1952_v62 }
 0x245   : > { %v2313_v63 = vpop.eup %2312  ;;  %v1726_v60 = vmul.f32 %v2311_v59, %v2850_v30  ;;  %2330 = vrcp.f32 %v1681_v58 }
 0x246   : > { %v2315_v17 = vpop.eup %2314  ;;  %v1725_v24 = vmul.f32 %v2313_v63, %v2853_v27  ;;  %2332 = vrcp.f32 %v1684_v3 }
 0x247   : > { %v2317_v48 = vpop.eup %2316  ;;  %1742 = vst.msk [vmem:[%s2901_s19 + $0x28] sm:$0xff] %vm829_vm3, %v1726_v60  ;;  %v1683_v1 = vadd.f32 1.0, %v2315_v17 }
 0x248   : > { %v2319_v6 = vpop.eup %2318  ;;  %1741 = vst.msk [vmem:[%s2901_s19 + $0x20] sm:$0xff] %vm829_vm3, %v1725_v24  ;;  %v1686_v2 = vadd.f32 1.0, %v2317_v48 }
 0x249   : > { %v2321_v21 = vpop.eup %2320  ;;  %v1728_v51 = vmul.f32 %v2319_v6, %v2860_v61  ;;  %2334 = vrcp.f32 %v1683_v1 }
 0x24a   : > { %2336 = vrcp.f32 %v1686_v2  ;;  %v1685_v30 = vadd.f32 1.0, %v2321_v21 }
 0x24b   : > { %v2323_v4 = vpop.eup %2322  ;;  %1744 = vst.msk [vmem:[%s2901_s19 + $0x38] sm:$0xff] %vm829_vm3, %v1728_v51 }
 0x24c   : > { %v2325_v27 = vpop.eup %2324  ;;  %v1727_v54 = vmul.f32 %v2323_v4, %v2863_v15  ;;  %2338 = vrcp.f32 %v1685_v30 }
 0x24d   : > { %v2327_v35 = vpop.eup %2326  ;;  %v1730_v52 = vmul.f32 %v2325_v27, %v2870_v38 }
 0x24e   : > { %v2329_v39 = vpop.eup %2328  ;;  %1743 = vst.msk [vmem:[%s2901_s19 + $0x30] sm:$0xff] %vm829_vm3, %v1727_v54  ;;  %v1688_v36 = vadd.f32 1.0, %v2327_v35 }
 0x24f   : > { %v2331_v61 = vpop.eup %2330  ;;  %1746 = vst.msk [vmem:[%s2901_s19 + $0x48] sm:$0xff] %vm829_vm3, %v1730_v52  ;;  %v1687_v8 = vadd.f32 1.0, %v2329_v39 }
 0x250   : > { %v2333_v5 = vpop.eup %2332  ;;  %v1729_v41 = vmul.f32 %v2331_v61, %v2873_v0  ;;  %2340 = vrcp.f32 %v1688_v36 }
 0x251   : > { %v1732_v15 = vmul.f32 %v2333_v5, %v2880_v9  ;;  %2342 = vrcp.f32 %v1687_v8 }
 0x252   : > { %1745 = vst.msk [vmem:[%s2901_s19 + $0x40] sm:$0xff] %vm829_vm3, %v1729_v41 }
 0x253   : > { %v2335_v38 = vpop.eup %2334  ;;  %1748 = vst.msk [vmem:[%s2901_s19 + $0x58] sm:$0xff] %vm829_vm3, %v1732_v15 }
 0x254   : > { %v2337_v22 = vpop.eup %2336  ;;  %v1731_v44 = vmul.f32 %v2335_v38, %v2883_v11 }
 0x255   : > { %v1734_v42 = vmul.f32 %v2337_v22, %v2890_v53 }
 0x256   : > { %v2339_v50 = vpop.eup %2338  ;;  %1747 = vst.msk [vmem:[%s2901_s19 + $0x50] sm:$0xff] %vm829_vm3, %v1731_v44 }
 0x257   : > { %1750 = vst.msk [vmem:[%s2901_s19 + $0x68] sm:$0xff] %vm829_vm3, %v1734_v42  ;;  %v1733_v0 = vmul.f32 %v2339_v50, %v2893_v12 }
 0x259   : > { %1749 = vst.msk [vmem:[%s2901_s19 + $0x60] sm:$0xff] %vm829_vm3, %v1733_v0 }
 0x25a   : > { %v2341_v9 = vpop.eup %2340 }
 0x25b   : > { %v2343_v10 = vpop.eup %2342  ;;  %v1736_v37 = vmul.f32 %v2341_v9, %v2907_v26 }
 0x25c   : > { %v1735_v7 = vmul.f32 %v2343_v10, %v2911_v13 }
 0x25d   : > { %1752 = vst.msk [vmem:[%s2901_s19 + $0x78] sm:$0xff] %vm829_vm3, %v1736_v37 }
 0x25e   : > { %1751 = vst.msk [vmem:[%s2901_s19 + $0x70] sm:$0xff] %vm829_vm3, %v1735_v7 }
 0x25f PF: > { %s22_s21 = sadd.s32 1, %s2350_s21  }
 0x260   : > { %p19_p4 = scmp.ge.s32.totalorder %s22_s21, 6  }
 0x262   :  { %21 = sbr.rel (!%p19_p4) target bundleno = 1 (0x1), region = 101 }

// kernel: bottleneck_csp_pallas.6
= control target key start
LH: loop header
LB: loop body
LE: loop exit
PB: predicated region body
PF: predicated region fallthrough
CT: control target
= control target key end

     0   :  { %s5044_s18 = smov 0   ;;  %s6497_s0 = inlined_call_operand.vmem [shape: f32[2,18,18,2], index: 0, kind: input, shape index: {}]   ;;  %s6498_s1 = inlined_call_operand.vmem [shape: f32[3,3,2,2], index: 1, kind: input, shape index: {}]   ;;  %s6499_s2 = inlined_call_operand.vmem [shape: f32[1,2], index: 2, kind: input, shape index: {}]   ;;  %s6500_s3 = inlined_call_operand.vmem [shape: f32[1,2], index: 3, kind: input, shape index: {}]   ;;  %s6501_s4 = inlined_call_operand.vmem [shape: f32[2,256,2], index: 4, kind: input, shape index: {}]   ;;  %s6502_s5 = inlined_call_operand.vmem [shape: f32[2,256,2], index: 5, kind: output, shape index: {}]  }
   0x1 LB: > { %s3511_s19 = sadd.s32 4294967295, %s5012_s18   ;;  %p3515_p0 = scmp.ge.s32.totalorder %s5012_s18, 1  ;;  %s5012_s18 = sphi %s5044_s18, %s15_s18  }
   0x2   : > { %p197_p1 = scmp.lt.s32.totalorder %s5012_s18, 3 }
   0x4   : > { %p198_p2 = pnand %p3515_p0, %p197_p1 }
   0x6   : > { %201 = sbr.rel (%p198_p2) target bundleno = 566 (0x236), region = 40 }
   0xd   : > { %v3521_v0 = vld [vmem:[%s6498_s1 + $0x2] sm:$0x3]  ;;  %vm496_vm0 = vcmask 1041408   ;;  %v5058_v1 = vld [vmem:[%s6498_s1 + $0x8] sm:$0x3]  ;;  %p230_p3 = scmp.lt.s32.totalorder %s3511_s19, 1 }
   0xe   : > { %4161 = vmatprep.subr.msk.mxu1 %vm496_vm0, %v3521_v0  ;;  %4361 = vmatprep.subr.msk.mxu0 %vm496_vm0, %v5058_v1  ;;  %v299_v2 = vld [vmem:[%s6498_s1] sm:$0x3]  ;;  %v3690_v3 = vld [vmem:[%s6498_s1 + $0xa] sm:$0x3]  ;;  %vm348_vm1 = vcmask 1046528   ;;  %vm431_vm2 = vcmask 15360  }
   0xf   : > { %4162 = vmatpush3.msk.msra.mxu1 %vm496_vm0, %v3521_v0  ;;  %4362 = vmatpush3.msk.msra.mxu0 %vm496_vm0, %v5058_v1  ;;  %s6678_s19 = smov (!%p230_p3, %s3511_s19), 1  ;;  %v5145_v33 = vld [vmem:[%s6498_s1 + $0xc] sm:$0x3]  ;;  %v5155_v35 = vld [vmem:[%s6498_s1 + $0x4] sm:$0x3]  ;;  %vm1017_vm3 = vcmask 1045504  }
  0x10   : > { %4211 = vmatprep.subr.msk.mxu1 %vm496_vm0, %v299_v2  ;;  %4411 = vmatprep.subr.msk.mxu0 %vm496_vm0, %v3690_v3  ;;  %s4869_s28 = smul.u32 432, %s6678_s19  ;;  %s3862_s23 = sshll.u32 %s6678_s19, 8 }
  0x11   : > { %s6257_s26 = scalar_lea.vmem %s6501_s4, %s3862_s23  ;;  %s6282_s29 = scalar_lea.vmem %s6502_s5, %s3862_s23 }
  0x12   : > { %s5080_s6 = scalar_lea.vmem %s6497_s0, %s4869_s28 }
  0x13   : > { %v5083_v4 = vld [vmem:[%s5080_s6] sm:$0xff]  ;;  %v5086_v5 = vld [vmem:[%s5080_s6 + $0x8] sm:$0xff]  ;;  %v5089_v6 = vld [vmem:[%s5080_s6 + $0x18] sm:$0xff] }
  0x14   : > { %6576 = vst [vmem:[#allocation2_spill] sm:$0xff] %v5089_v6  ;;  %v349_v7 = vrot.slane %v5083_v4, 1  ;;  %v350_v8 = vrot.slane %v5086_v5, 1  ;;  %v5094_v9 = vld [vmem:[%s5080_s6 + $0x20] sm:$0xff]  ;;  %v354_v10 = vrot.slane %v5089_v6, 1  ;;  %v5106_v15 = vld [vmem:[%s5080_s6 + $0x30] sm:$0xff] }
  0x15   : > { %6577 = vst [vmem:[#allocation3_spill] sm:$0xff] %v5094_v9  ;;  %v5098_v11 = vld [vmem:[%s5080_s6 + $0x10] sm:$0x3]  ;;  %v355_v12 = vrot.slane %v5094_v9, 1  ;;  %v5103_v14 = vld [vmem:[%s5080_s6 + $0x28] sm:$0x3] }
  0x16   : > { %v352_v13 = vrot.slane %v5098_v11, 1  ;;  %v351_v16 = vsel %vm348_vm1, %v349_v7, %v350_v8  ;;  %v357_v17 = vrot.slane %v5103_v14, 1  ;;  %v5111_v18 = vld [vmem:[%s5080_s6 + $0x38] sm:$0xff]  ;;  %v359_v19 = vrot.slane %v5106_v15, 1  ;;  %v5115_v20 = vld [vmem:[%s5080_s6 + $0x40] sm:$0x3] }
  0x17   : > { %4163 = vmatprep.mubr.msk.f32.mxu1 %vm431_vm2, %v351_v16  ;;  %v356_v21 = vsel %vm348_vm1, %v354_v10, %v355_v12  ;;  %v360_v23 = vrot.slane %v5111_v18, 1  ;;  %v362_v24 = vrot.slane %v5115_v20, 1  ;;  %v5123_v25 = vld [vmem:[%s5080_s6 + $0x48] sm:$0xff]  ;;  %v5126_v26 = vld [vmem:[%s5080_s6 + $0x50] sm:$0xff]  ;;  %v5129_v27 = vld [vmem:[%s5080_s6 + $0x58] sm:$0x3] }
  0x18   : > { %v353_v22 = vsel %vm348_vm1, %v350_v8, %v352_v13  ;;  %4363 = vmatprep.mubr.msk.f32.mxu0 %vm431_vm2, %v356_v21  ;;  %v358_v28 = vsel %vm348_vm1, %v355_v12, %v357_v17  ;;  %v364_v29 = vrot.slane %v5123_v25, 1  ;;  %v365_v30 = vrot.slane %v5126_v26, 1  ;;  %v5137_v31 = vld [vmem:[%s5080_s6 + $0x60] sm:$0xff]  ;;  %v5140_v32 = vld [vmem:[%s5080_s6 + $0x68] sm:$0xff]  ;;  %v5171_v41 = vld [vmem:[%s5080_s6 + $0x70] sm:$0x3] }
  0x19   : > { %4164 = vmatmul.mubr.msk.f32.vlgmr.msra.gmra.mrb[0].mxu1 %vm431_vm2, %v353_v22  ;;  %4364 = vmatmul.mubr.msk.f32.vlgmr.msra.gmra.mrb[0].mxu0 %vm431_vm2, %v358_v28  ;;  %v5150_v34 = vsel %vm348_vm1, %v359_v19, %v360_v23  ;;  %v5160_v36 = vsel %vm348_vm1, %v360_v23, %v362_v24  ;;  %v367_v37 = vrot.slane %v5129_v27, 1  ;;  %v369_v39 = vrot.slane %v5137_v31, 1  ;;  %v5177_v42 = vld [vmem:[%s5080_s6 + $0x78] sm:$0xff]  ;;  %v5180_v43 = vld [vmem:[%s5080_s6 + $0x80] sm:$0xff]  ;;  %v5200_v49 = vld [vmem:[%s5080_s6 + $0x88] sm:$0x3] }
  0x1a   : > { %4212 = vmatpush3.msk.msra.mxu1 %vm496_vm0, %v299_v2  ;;  %6578 = vst [vmem:[#allocation4_spill] sm:$0xff] %v5150_v34  ;;  %4412 = vmatpush3.msk.msra.mxu0 %vm496_vm0, %v3690_v3  ;;  %6579 = vst [vmem:[#allocation5_spill] sm:$0xff] %v5160_v36  ;;  %v5166_v38 = vsel %vm348_vm1, %v364_v29, %v365_v30  ;;  %v370_v40 = vrot.slane %v5140_v32, 1  ;;  %v372_v45 = vrot.slane %v5171_v41, 1  ;;  %v374_v47 = vrot.slane %v5177_v42, 1  ;;  %v5205_v50 = vld [vmem:[%s5080_s6 + $0x90] sm:$0xff] }
  0x1b   : > { %4166 = vmatprep.mubr.msk.f32.mxu1 %vm431_vm2, %v356_v21  ;;  %4366 = vmatprep.mubr.msk.f32.mxu0 %vm431_vm2, %v5150_v34  ;;  %6580 = vst [vmem:[#allocation6_spill] sm:$0xff] %v5166_v38  ;;  %v5191_v44 = vsel %vm348_vm1, %v365_v30, %v367_v37  ;;  %v375_v48 = vrot.slane %v5180_v43, 1  ;;  %v5208_v51 = vld [vmem:[%s5080_s6 + $0x98] sm:$0xff]  ;;  %v377_v53 = vrot.slane %v5200_v49, 1  ;;  %v379_v55 = vrot.slane %v5205_v50, 1  ;;  %v5231_v58 = vld [vmem:[%s5080_s6 + $0xa8] sm:$0xff] }
  0x1c   : > { %4461 = vmatprep.subr.msk.mxu0 %vm496_vm0, %v5145_v33  ;;  %4261 = vmatprep.subr.msk.mxu1 %vm496_vm0, %v5155_v35  ;;  %6581 = vst [vmem:[#allocation7_spill] sm:$0xff] %v5191_v44  ;;  %v5195_v46 = vsel %vm348_vm1, %v369_v39, %v370_v40  ;;  %v5217_v52 = vsel %vm348_vm1, %v370_v40, %v372_v45  ;;  %v380_v56 = vrot.slane %v5208_v51, 1  ;;  %v5226_v57 = vld [vmem:[%s5080_s6 + $0xa0] sm:$0x3]  ;;  %v5234_v59 = vld [vmem:[%s5080_s6 + $0xb0] sm:$0xff]  ;;  %v384_v63 = vrot.slane %v5231_v58, 1 }
  0x1d   : > { %4167 = vmatmul.mubr.msk.f32.gmra.mrb[2].mxu1 %vm431_vm2, %v358_v28  ;;  %4367 = vmatmul.mubr.msk.f32.gmra.mrb[2].mxu0 %vm431_vm2, %v5160_v36  ;;  %6582 = vst [vmem:[#allocation8_spill] sm:$0xff] %v5195_v46  ;;  %6583 = vst [vmem:[#allocation9_spill] sm:$0xff] %v5217_v52  ;;  %v5221_v54 = vsel %vm348_vm1, %v374_v47, %v375_v48  ;;  %v5243_v60 = vsel %vm348_vm1, %v375_v48, %v377_v53  ;;  %v382_v61 = vrot.slane %v5226_v57, 1  ;;  %v5252_v2 = vld [vmem:[%s5080_s6 + $0xb8] sm:$0x3]  ;;  %v5257_v3 = vld [vmem:[%s5080_s6 + $0xc0] sm:$0xff] }
  0x1e   : > { %4169 = vmatprep.mubr.msk.f32.mxu1 %vm431_vm2, %v5150_v34  ;;  %4369 = vmatprep.mubr.msk.f32.mxu0 %vm431_vm2, %v5166_v38  ;;  %6584 = vst [vmem:[#allocation10_spill] sm:$0xff] %v5221_v54  ;;  %6585 = vst [vmem:[#allocation11_spill] sm:$0xff] %v5243_v60  ;;  %v5247_v62 = vsel %vm348_vm1, %v379_v55, %v380_v56  ;;  %v385_v0 = vrot.slane %v5234_v59, 1  ;;  %v5260_v7 = vld [vmem:[%s5080_s6 + $0xc8] sm:$0xff]  ;;  %v387_v10 = vrot.slane %v5252_v2, 1  ;;  %v389_v13 = vrot.slane %v5257_v3, 1 }
  0x1f   : > { %6586 = vst [vmem:[#allocation12_spill] sm:$0xff] %v5247_v62  ;;  %v5269_v8 = vsel %vm348_vm1, %v380_v56, %v382_v61  ;;  %v390_v16 = vrot.slane %v5260_v7, 1  ;;  %v5278_v17 = vld [vmem:[%s5080_s6 + $0xd0] sm:$0x3]  ;;  %v1023_v23 = vrot.slane %v5089_v6, 2  ;;  %v1024_v24 = vrot.slane %v5094_v9, 2 }
  0x20   : > { %6587 = vst [vmem:[#allocation13_spill] sm:$0xff] %v5269_v8  ;;  %v5273_v12 = vsel %vm348_vm1, %v384_v63, %v385_v0  ;;  %v5289_v19 = vsel %vm348_vm1, %v385_v0, %v387_v10  ;;  %v392_v21 = vrot.slane %v5278_v17, 1  ;;  %v5298_v28 = vld [vmem:[%s5080_s6 + $0xd8] sm:$0xff]  ;;  %v5301_v29 = vld [vmem:[%s5080_s6 + $0xe0] sm:$0xff]  ;;  %v1026_v30 = vrot.slane %v5103_v14, 2  ;;  %v5326_v53 = vld [vmem:[%s5080_s6 + $0xf0] sm:$0xff] }
  0x21   : > { %4170 = vmatmul.mubr.msk.f32.gmra.mrb[4].mxu1 %vm431_vm2, %v5160_v36  ;;  %4370 = vmatmul.mubr.msk.f32.gmra.mrb[4].mxu0 %vm431_vm2, %v5191_v44  ;;  %6588 = vst [vmem:[#allocation14_spill] sm:$0xff] %v5273_v12  ;;  %6589 = vst [vmem:[#allocation15_spill] sm:$0xff] %v5289_v19  ;;  %v5293_v22 = vsel %vm348_vm1, %v389_v13, %v390_v16  ;;  %v394_v39 = vrot.slane %v5298_v28, 1  ;;  %v395_v40 = vrot.slane %v5301_v29, 1  ;;  %v5318_v45 = vld [vmem:[%s5080_s6 + $0xe8] sm:$0x3] }
  0x22   : > { %4172 = vmatprep.mubr.msk.f32.mxu1 %vm431_vm2, %v5166_v38  ;;  %4372 = vmatprep.mubr.msk.f32.mxu0 %vm431_vm2, %v5195_v46  ;;  %6590 = vst [vmem:[#allocation16_spill] sm:$0xff] %v5293_v22  ;;  %v5313_v37 = vsel %vm348_vm1, %v390_v16, %v392_v21  ;;  %v5321_v47 = vsel %vm1017_vm3, %v1023_v23, %v1024_v24  ;;  %v1028_v48 = vrot.slane %v5106_v15, 2  ;;  %v1029_v14 = vrot.slane %v5111_v18, 2  ;;  %v5329_v55 = vld [vmem:[%s5080_s6 + $0xf8] sm:$0xff]  ;;  %v5350_v16 = vld [vmem:[%s5080_s6 + $0x100] sm:$0x3] }
  0x23   : > { %6591 = vst [vmem:[#allocation17_spill] sm:$0xff] %v5313_v37  ;;  %v397_v56 = vrot.slane %v5318_v45, 1  ;;  %v1031_v61 = vrot.slane %v5115_v20, 2  ;;  %v5342_v63 = vsel %vm1017_vm3, %v1024_v24, %v1026_v30  ;;  %v5345_v0 = vsel %vm348_vm1, %v394_v39, %v395_v40  ;;  %v5361_v24 = vld [vmem:[%s5080_s6 + $0x110] sm:$0xff]  ;;  %v5368_v30 = vld [vmem:[%s6498_s1 + $0xe] sm:$0x3] }
  0x24   : > { %6592 = vst [vmem:[#allocation18_spill] sm:$0xff] %v5345_v0  ;;  %v399_v10 = vrot.slane %v5326_v53, 1  ;;  %v400_v13 = vrot.slane %v5329_v55, 1  ;;  %v5353_v21 = vsel %vm1017_vm3, %v1028_v48, %v1029_v14  ;;  %v1033_v20 = vrot.slane %v5123_v25, 2  ;;  %v5464_v36 = vld [vmem:[%s5080_s6 + $0x148] sm:$0x3] }
  0x25   : > { %4173 = vmatmul.mubr.msk.f32.gmra.mrb[6].mxu1 %vm431_vm2, %v5191_v44  ;;  %4373 = vmatmul.mubr.msk.f32.gmra.mrb[6].mxu0 %vm431_vm2, %v5217_v52  ;;  %v1034_v23 = vrot.slane %v5126_v26, 2  ;;  %v5375_v39 = vsel %vm348_vm1, %v395_v40, %v397_v56  ;;  %v5378_v48 = vsel %vm1017_vm3, %v1029_v14, %v1031_v61  ;;  %v405_v40 = vrot.slane %v5361_v24, 1  ;;  %v5392_v56 = vld [vmem:[%s5080_s6 + $0x118] sm:$0x3] }
  0x26   : > { %4175 = vmatprep.mubr.msk.f32.mxu1 %vm431_vm2, %v5195_v46  ;;  %4375 = vmatprep.mubr.msk.f32.mxu0 %vm431_vm2, %v5221_v54  ;;  %6593 = vst [vmem:[#allocation19_spill] sm:$0xff] %v5375_v39  ;;  %6594 = vst [vmem:[#allocation20_spill] sm:$0xff] %v5378_v48  ;;  %v1038_v61 = vrot.slane %v5137_v31, 2  ;;  %v5437_v46 = vld [vmem:[%s5080_s6 + $0x138] sm:$0xff]  ;;  %v1046_v44 = vrot.slane %v5200_v49, 2  ;;  %v1051_v34 = vrot.slane %v5226_v57, 2 }
  0x27   : > { %v5395_v14 = vsel %vm1017_vm3, %v1033_v20, %v1034_v23  ;;  %v407_v20 = vrot.slane %v5392_v56, 1  ;;  %v414_v38 = vrot.slane %v5437_v46, 1  ;;  %v1053_v57 = vrot.slane %v5231_v58, 2 }
  0x28   : > { %6596 = vst [vmem:[#allocation22_spill] sm:$0xff] %v5395_v14 }
  0x29   : > { %4176 = vmatmul.mubr.msk.f32.gmra.mrb[8].mxu1 %vm431_vm2, %v5217_v52  ;;  %4376 = vmatmul.mubr.msk.f32.gmra.mrb[8].mxu0 %vm431_vm2, %v5243_v60  ;;  %v5429_v52 = vld [vmem:[%s5080_s6 + $0x130] sm:$0x3] }
  0x2a   : > { %4178 = vmatprep.mubr.msk.f32.mxu1 %vm431_vm2, %v5221_v54  ;;  %4378 = vmatprep.mubr.msk.f32.mxu0 %vm431_vm2, %v5247_v62 }
  0x2d   : > { %4179 = vmatmul.mubr.msk.f32.gmra.mrb[10].mxu1 %vm431_vm2, %v5243_v60  ;;  %4379 = vmatmul.mubr.msk.f32.gmra.mrb[10].mxu0 %vm431_vm2, %v5269_v8 }
  0x2e   : > { %4181 = vmatprep.mubr.msk.f32.mxu1 %vm431_vm2, %v5247_v62  ;;  %4381 = vmatprep.mubr.msk.f32.mxu0 %vm431_vm2, %v5273_v12  ;;  %v1041_v62 = vrot.slane %v5171_v41, 2  ;;  %v1043_v41 = vrot.slane %v5177_v42, 2 }
  0x31   : > { %4182 = vmatmul.mubr.msk.f32.gmra.mrb[12].mxu1 %vm431_vm2, %v5269_v8  ;;  %4382 = vmatmul.mubr.msk.f32.gmra.mrb[12].mxu0 %vm431_vm2, %v5289_v19  ;;  %v5400_v8 = vld [vmem:[%s5080_s6 + $0x120] sm:$0xff] }
  0x32   : > { %4184 = vmatprep.mubr.msk.f32.mxu1 %vm431_vm2, %v5273_v12  ;;  %4384 = vmatprep.mubr.msk.f32.mxu0 %vm431_vm2, %v5293_v22  ;;  %v1036_v12 = vrot.slane %v5129_v27, 2  ;;  %v409_v54 = vrot.slane %v5400_v8, 1 }
  0x34   : > { %v5421_v60 = vsel %vm1017_vm3, %v1034_v23, %v1036_v12  ;;  %v5440_v12 = vld [vmem:[%s5080_s6 + $0x140] sm:$0xff] }
  0x35   : > { %4185 = vmatmul.mubr.msk.f32.gmra.mrb[14].mxu1 %vm431_vm2, %v5289_v19  ;;  %4385 = vmatmul.mubr.msk.f32.gmra.mrb[14].mxu0 %vm431_vm2, %v5313_v37  ;;  %v5386_v19 = vsel %vm348_vm1, %v399_v10, %v400_v13  ;;  %v5403_v10 = vld [vmem:[%s5080_s6 + $0x128] sm:$0xff]  ;;  %6598 = vst [vmem:[#allocation24_spill] sm:$0xff] %v5421_v60 }
  0x36   : > { %4187 = vmatprep.mubr.msk.f32.mxu1 %vm431_vm2, %v5293_v22  ;;  %4413 = vmatprep.mubr.msk.f32.mxu0 %vm431_vm2, %v5321_v47  ;;  %v5358_v22 = vld [vmem:[%s5080_s6 + $0x108] sm:$0xff]  ;;  %6595 = vst [vmem:[#allocation21_spill] sm:$0xff] %v5386_v19 }
  0x39   : > { %4188 = vmatmul.mubr.msk.f32.gmra.mrb[16].mxu1 %vm431_vm2, %v5313_v37  ;;  %4414 = vmatmul.mubr.msk.f32.vlgmr.msra.gmra.mrb[0].mxu0 %vm431_vm2, %v5342_v63  ;;  %v402_v37 = vrot.slane %v5350_v16, 1 }
  0x3a   : > { %4190 = vmatprep.mubr.msk.f32.mxu1 %vm431_vm2, %v5345_v0  ;;  %4462 = vmatpush3.msk.msra.mxu0 %vm496_vm0, %v5145_v33  ;;  %v404_v0 = vrot.slane %v5358_v22, 1  ;;  %v1039_v33 = vrot.slane %v5140_v32, 2 }
  0x3b   : > { %4416 = vmatprep.mubr.msk.f32.mxu0 %vm431_vm2, %v5353_v21  ;;  %4511 = vmatprep.subr.msk.mxu0 %vm496_vm0, %v5368_v30  ;;  %v5414_v27 = vsel %vm348_vm1, %v400_v13, %v402_v37  ;;  %v1044_v13 = vrot.slane %v5180_v43, 2 }
  0x3c   : > { %6597 = vst [vmem:[#allocation23_spill] sm:$0xff] %v5414_v27  ;;  %v5432_v37 = vsel %vm1017_vm3, %v1038_v61, %v1039_v33  ;;  %v5452_v23 = vsel %vm1017_vm3, %v1039_v33, %v1041_v62  ;;  %v412_v61 = vrot.slane %v5429_v52, 1  ;;  %v1048_v62 = vrot.slane %v5205_v50, 2 }
  0x3d   : > { %4191 = vmatmul.mubr.msk.f32.gmra.mrb[18].mxu1 %vm431_vm2, %v5375_v39  ;;  %4417 = vmatmul.mubr.msk.f32.gmra.mrb[2].mxu0 %vm431_vm2, %v5378_v48  ;;  %v5424_v39 = vsel %vm348_vm1, %v404_v0, %v405_v40  ;;  %6600 = vst [vmem:[#allocation26_spill] sm:$0xff] %v5432_v37  ;;  %v5449_v0 = vsel %vm348_vm1, %v405_v40, %v407_v20  ;;  %6602 = vst [vmem:[#allocation28_spill] sm:$0xff] %v5452_v23  ;;  %v1049_v33 = vrot.slane %v5208_v51, 2  ;;  %v5472_v20 = vld [vmem:[%s5080_s6 + $0x150] sm:$0xff]  ;;  %v5534_v48 = vld [vmem:[%s5080_s6 + $0x178] sm:$0x3] }
  0x3e   : > { %4193 = vmatprep.mubr.msk.f32.mxu1 %vm431_vm2, %v5386_v19  ;;  %4419 = vmatprep.mubr.msk.f32.mxu0 %vm431_vm2, %v5395_v14  ;;  %6599 = vst [vmem:[#allocation25_spill] sm:$0xff] %v5424_v39  ;;  %v410_v19 = vrot.slane %v5403_v10, 1  ;;  %6601 = vst [vmem:[#allocation27_spill] sm:$0xff] %v5449_v0  ;;  %v5467_v40 = vsel %vm1017_vm3, %v1043_v41, %v1044_v13  ;;  %v417_v41 = vrot.slane %v5464_v36, 1 }
  0x3f   : > { %6604 = vst [vmem:[#allocation30_spill] sm:$0xff] %v5467_v40 }
  0x40   : > { %v5484_v49 = vsel %vm348_vm1, %v410_v19, %v412_v61  ;;  %v1054_v61 = vrot.slane %v5234_v59, 2 }
  0x41   : > { %4194 = vmatmul.mubr.msk.f32.gmra.mrb[20].mxu1 %vm431_vm2, %v5414_v27  ;;  %4420 = vmatmul.mubr.msk.f32.gmra.mrb[4].mxu0 %vm431_vm2, %v5421_v60  ;;  %v5458_v27 = vsel %vm348_vm1, %v409_v54, %v410_v19  ;;  %v5475_v54 = vld [vmem:[%s5080_s6 + $0x158] sm:$0xff]  ;;  %6605 = vst [vmem:[#allocation31_spill] sm:$0xff] %v5484_v49  ;;  %v5499_v60 = vld [vmem:[%s5080_s6 + $0x160] sm:$0x3]  ;;  %v5502_v19 = vsel %vm1017_vm3, %v1048_v62, %v1049_v33 }
  0x42   : > { %4196 = vmatprep.mubr.msk.f32.mxu1 %vm431_vm2, %v5424_v39  ;;  %4422 = vmatprep.mubr.msk.f32.mxu0 %vm431_vm2, %v5432_v37  ;;  %6603 = vst [vmem:[#allocation29_spill] sm:$0xff] %v5458_v27  ;;  %v415_v39 = vrot.slane %v5440_v12, 1  ;;  %v5491_v37 = vsel %vm1017_vm3, %v1044_v13, %v1046_v44  ;;  %v5510_v44 = vld [vmem:[%s5080_s6 + $0x170] sm:$0xff]  ;;  %v5522_v13 = vsel %vm1017_vm3, %v1049_v33, %v1051_v34  ;;  %v422_v62 = vrot.slane %v5499_v60, 1 }
  0x43   : > { %6606 = vst [vmem:[#allocation32_spill] sm:$0xff] %v5491_v37  ;;  %6608 = vst [vmem:[#allocation34_spill] sm:$0xff] %v5510_v44  ;;  %v1058_v34 = vrot.slane %v5257_v3, 2  ;;  %v1059_v33 = vrot.slane %v5260_v7, 2 }
  0x44   : > { %6610 = vst [vmem:[#allocation36_spill] sm:$0xff] %v5522_v13 }
  0x45   : > { %4197 = vmatmul.mubr.msk.f32.gmra.mrb[22].mxu1 %vm431_vm2, %v5449_v0  ;;  %4423 = vmatmul.mubr.msk.f32.gmra.mrb[6].mxu0 %vm431_vm2, %v5452_v23  ;;  %v5494_v0 = vsel %vm348_vm1, %v414_v38, %v415_v39  ;;  %v419_v23 = vrot.slane %v5472_v20, 1  ;;  %v5519_v38 = vsel %vm348_vm1, %v415_v39, %v417_v41  ;;  %v5537_v39 = vsel %vm1017_vm3, %v1053_v57, %v1054_v61 }
  0x46   : > { %4199 = vmatprep.mubr.msk.f32.mxu1 %vm431_vm2, %v5458_v27  ;;  %4425 = vmatprep.mubr.msk.f32.mxu0 %vm431_vm2, %v5467_v40  ;;  %6607 = vst [vmem:[#allocation33_spill] sm:$0xff] %v5494_v0  ;;  %v420_v27 = vrot.slane %v5475_v54, 1  ;;  %v5507_v40 = vld [vmem:[%s5080_s6 + $0x168] sm:$0xff]  ;;  %6609 = vst [vmem:[#allocation35_spill] sm:$0xff] %v5519_v38 }
  0x48   : > { %v5528_v14 = vsel %vm348_vm1, %v419_v23, %v420_v27  ;;  %v427_v23 = vrot.slane %v5534_v48, 1 }
  0x49   : > { %4200 = vmatmul.mubr.msk.f32.gmra.mrb[24].mxu1 %vm431_vm2, %v5484_v49  ;;  %4426 = vmatmul.mubr.msk.f32.gmra.mrb[8].mxu0 %vm431_vm2, %v5491_v37  ;;  %6611 = vst [vmem:[#allocation37_spill] sm:$0xff] %v5528_v14  ;;  %v1056_v49 = vrot.slane %v5252_v2, 2  ;;  %v424_v37 = vrot.slane %v5507_v40, 1  ;;  %v5548_v2 = vsel %vm348_vm1, %v420_v27, %v422_v62  ;;  %v1064_v27 = vrot.slane %v5301_v29, 2 }
  0x4a   : > { %4202 = vmatprep.mubr.msk.f32.mxu1 %vm431_vm2, %v5494_v0  ;;  %4428 = vmatprep.mubr.msk.f32.mxu0 %vm431_vm2, %v5502_v19  ;;  %v425_v0 = vrot.slane %v5510_v44, 1  ;;  %6612 = vst [vmem:[#allocation38_spill] sm:$0xff] %v5548_v2  ;;  %v1068_v62 = vrot.slane %v5326_v53, 2 }
  0x4b   : > { %v5554_v41 = vsel %vm1017_vm3, %v1054_v61, %v1056_v49  ;;  %v1066_v49 = vrot.slane %v5318_v45, 2 }
  0x4c   : > { %v5557_v57 = vsel %vm348_vm1, %v424_v37, %v425_v0  ;;  %v5572_v37 = vsel %vm348_vm1, %v425_v0, %v427_v23  ;;  %v5607_v23 = vld [vmem:[%s6498_s1 + $0x6] sm:$0x3] }
  0x4d   : > { %4203 = vmatmul.mubr.msk.f32.gmra.mrb[26].mxu1 %vm431_vm2, %v5519_v38  ;;  %4429 = vmatmul.mubr.msk.f32.gmra.mrb[10].mxu0 %vm431_vm2, %v5522_v13  ;;  %6613 = vst [vmem:[#allocation39_spill] sm:$0xff] %v5557_v57  ;;  %v1061_v38 = vrot.slane %v5278_v17, 2  ;;  %v5561_v13 = vsel %vm1017_vm3, %v1058_v34, %v1059_v33  ;;  %6614 = vst [vmem:[#allocation40_spill] sm:$0xff] %v5572_v37  ;;  %v1069_v34 = vrot.slane %v5329_v55, 2 }
  0x4e   : > { %4205 = vmatprep.mubr.msk.f32.mxu1 %vm431_vm2, %v5528_v14  ;;  %4431 = vmatprep.mubr.msk.f32.mxu0 %vm431_vm2, %v5537_v39  ;;  %v1063_v14 = vrot.slane %v5298_v28, 2  ;;  %v5594_v45 = vsel %vm1017_vm3, %v1064_v27, %v1066_v49 }
  0x4f   : > { %v5577_v17 = vsel %vm1017_vm3, %v1059_v33, %v1061_v38  ;;  %v5598_v0 = vsel %vm1017_vm3, %v1068_v62, %v1069_v34  ;;  %v1073_v38 = vrot.slane %v5358_v22, 2  ;;  %v1074_v33 = vrot.slane %v5361_v24, 2 }
  0x50   : > { %v5581_v61 = vsel %vm1017_vm3, %v1063_v14, %v1064_v27  ;;  %v1071_v14 = vrot.slane %v5350_v16, 2  ;;  %v1076_v27 = vrot.slane %v5392_v56, 2  ;;  %v1078_v62 = vrot.slane %v5400_v8, 2 }
  0x51   : > { %4206 = vmatmul.mubr.msk.f32.gmra.mrb[28].mxu1 %vm431_vm2, %v5548_v2  ;;  %4432 = vmatmul.mubr.msk.f32.gmra.mrb[12].mxu0 %vm431_vm2, %v5554_v41  ;;  %v5622_v49 = vsel %vm1017_vm3, %v1073_v38, %v1074_v33  ;;  %v1083_v38 = vrot.slane %v5437_v46, 2  ;;  %v1094_v2 = vrot.slane %v5510_v44, 2 }
  0x52   : > { %4208 = vmatprep.mubr.msk.f32.mxu1 %vm431_vm2, %v5557_v57  ;;  %4434 = vmatprep.mubr.msk.f32.mxu0 %vm431_vm2, %v5561_v13  ;;  %v5618_v16 = vsel %vm1017_vm3, %v1069_v34, %v1071_v14  ;;  %6615 = vst [vmem:[#allocation41_spill] sm:$0xff] %v5622_v49  ;;  %v5637_v56 = vsel %vm1017_vm3, %v1074_v33, %v1076_v27  ;;  %v1081_v34 = vrot.slane %v5429_v52, 2  ;;  %v1086_v33 = vrot.slane %v5464_v36, 2 }
  0x53   : > { %v1089_v57 = vrot.slane %v5475_v54, 2 }
  0x55   : > { %4209 = vmatmul.mubr.msk.f32.gmra.mrb[30].mxu1 %vm431_vm2, %v5572_v37  ;;  %4435 = vmatmul.mubr.msk.f32.gmra.mrb[14].mxu0 %vm431_vm2, %v5577_v17  ;;  %v1084_v37 = vrot.slane %v5440_v12, 2 }
  0x56   : > { %4213 = vmatprep.mubr.msk.f32.mxu1 %vm431_vm2, %v5083_v4  ;;  %4437 = vmatprep.mubr.msk.f32.mxu0 %vm431_vm2, %v5581_v61 }
  0x57   : > { %v5658_v27 = vsel %vm1017_vm3, %v1083_v38, %v1084_v37  ;;  %v5671_v36 = vsel %vm1017_vm3, %v1084_v37, %v1086_v33  ;;  %v1093_v38 = vrot.slane %v5507_v40, 2  ;;  %v1096_v37 = vrot.slane %v5534_v48, 2 }
  0x58   : > { %6617 = vst [vmem:[#allocation43_spill] sm:$0xff] %v5658_v27  ;;  %6618 = vst [vmem:[#allocation44_spill] sm:$0xff] %v5671_v36 }
  0x59   : > { %4214 = vmatmul.mubr.msk.f32.vlgmr.msra.gmra.mrb[0].mxu1 %vm431_vm2, %v5086_v5  ;;  %4438 = vmatmul.mubr.msk.f32.gmra.mrb[16].mxu0 %vm431_vm2, %v5594_v45  ;;  %v5698_v33 = vsel %vm1017_vm3, %v1093_v38, %v1094_v2  ;;  %v5714_v48 = vsel %vm1017_vm3, %v1094_v2, %v1096_v37  ;;  %v1019_v38 = vrot.slane %v5086_v5, 2  ;;  %v1021_v37 = vrot.slane %v5098_v11, 2  ;;  %v6625_v5 = vld [vmem:[#allocation20_spill] sm:$0xff]  ;;  %v6626_v11 = vld [vmem:[#allocation22_spill] sm:$0xff] }
  0x5a   : > { %4262 = vmatpush3.msk.msra.mxu1 %vm496_vm0, %v5155_v35  ;;  %4216 = vmatprep.mubr.msk.f32.mxu1 %vm431_vm2, %v5089_v6  ;;  %v1079_v35 = vrot.slane %v5403_v10, 2  ;;  %v5685_v6 = vld [vmem:[%s5080_s6 + $0x188] sm:$0xff]  ;;  %6621 = vst [vmem:[#allocation47_spill] sm:$0xff] %v5698_v33  ;;  %6622 = vst [vmem:[#allocation48_spill] sm:$0xff] %v5714_v48 }
  0x5b   : > { %4440 = vmatprep.mubr.msk.f32.mxu0 %vm431_vm2, %v5598_v0  ;;  %4311 = vmatprep.subr.msk.mxu1 %vm496_vm0, %v5607_v23 }
  0x5c   : > { %v5641_v14 = vsel %vm1017_vm3, %v1078_v62, %v1079_v35  ;;  %v5654_v52 = vsel %vm1017_vm3, %v1079_v35, %v1081_v34  ;;  %v1088_v62 = vrot.slane %v5472_v20, 2  ;;  %v1091_v35 = vrot.slane %v5499_v60, 2 }
  0x5d   : > { %4217 = vmatmul.mubr.msk.f32.gmra.mrb[2].mxu1 %vm431_vm2, %v5094_v9  ;;  %4441 = vmatmul.mubr.msk.f32.gmra.mrb[18].mxu0 %vm431_vm2, %v5618_v16  ;;  %6616 = vst [vmem:[#allocation42_spill] sm:$0xff] %v5654_v52  ;;  %v5682_v9 = vld [vmem:[%s5080_s6 + $0x180] sm:$0xff] }
  0x5e   : > { %4219 = vmatprep.mubr.msk.f32.mxu1 %vm431_vm2, %v5106_v15  ;;  %4443 = vmatprep.mubr.msk.f32.mxu0 %vm431_vm2, %v5622_v49  ;;  %v5675_v34 = vsel %vm1017_vm3, %v1088_v62, %v1089_v57  ;;  %v5694_v60 = vsel %vm1017_vm3, %v1089_v57, %v1091_v35  ;;  %v1964_v62 = vrot.slane %v5682_v9, 2 }
  0x5f   : > { %6619 = vst [vmem:[#allocation45_spill] sm:$0xff] %v5675_v34  ;;  %6620 = vst [vmem:[#allocation46_spill] sm:$0xff] %v5694_v60 }
  0x61   : > { %4220 = vmatmul.mubr.msk.f32.gmra.mrb[4].mxu1 %vm431_vm2, %v5111_v18  ;;  %4444 = vmatmul.mubr.msk.f32.gmra.mrb[20].mxu0 %vm431_vm2, %v5637_v56 }
  0x62   : > { %4222 = vmatprep.mubr.msk.f32.mxu1 %vm431_vm2, %v5123_v25  ;;  %4446 = vmatprep.mubr.msk.f32.mxu0 %vm431_vm2, %v5641_v14 }
  0x65   : > { %4223 = vmatmul.mubr.msk.f32.gmra.mrb[6].mxu1 %vm431_vm2, %v5126_v26  ;;  %4447 = vmatmul.mubr.msk.f32.gmra.mrb[22].mxu0 %vm431_vm2, %v5654_v52  ;;  %v5703_v52 = vld [vmem:[%s5080_s6 + $0x190] sm:$0x3] }
  0x66   : > { %4225 = vmatprep.mubr.msk.f32.mxu1 %vm431_vm2, %v5137_v31  ;;  %4449 = vmatprep.mubr.msk.f32.mxu0 %vm431_vm2, %v5658_v27  ;;  %v1965_v27 = vrot.slane %v5685_v6, 2  ;;  %v1967_v57 = vrot.slane %v5703_v52, 2 }
  0x68   : > { %v5718_v35 = vsel %vm1017_vm3, %v1964_v62, %v1965_v27  ;;  %v5729_v2 = vsel %vm1017_vm3, %v1965_v27, %v1967_v57  ;;  %v5744_v27 = vld [vmem:[%s6498_s1 + $0x10] sm:$0x3]  ;;  %v6630_v57 = vld [vmem:[#allocation30_spill] sm:$0xff] }
  0x69   : > { %4226 = vmatmul.mubr.msk.f32.gmra.mrb[8].mxu1 %vm431_vm2, %v5140_v32  ;;  %4450 = vmatmul.mubr.msk.f32.gmra.mrb[24].mxu0 %vm431_vm2, %v5671_v36  ;;  %6623 = vst [vmem:[#allocation49_spill] sm:$0xff] %v5718_v35  ;;  %6624 = vst [vmem:[#allocation50_spill] sm:$0xff] %v5729_v2 }
  0x6a   : > { %4228 = vmatprep.mubr.msk.f32.mxu1 %vm431_vm2, %v5177_v42  ;;  %4452 = vmatprep.mubr.msk.f32.mxu0 %vm431_vm2, %v5675_v34 }
  0x6d   : > { %4229 = vmatmul.mubr.msk.f32.gmra.mrb[10].mxu1 %vm431_vm2, %v5180_v43  ;;  %4453 = vmatmul.mubr.msk.f32.gmra.mrb[26].mxu0 %vm431_vm2, %v5694_v60 }
  0x6e   : > { %4231 = vmatprep.mubr.msk.f32.mxu1 %vm431_vm2, %v5205_v50  ;;  %4455 = vmatprep.mubr.msk.f32.mxu0 %vm431_vm2, %v5698_v33 }
  0x71   : > { %4232 = vmatmul.mubr.msk.f32.gmra.mrb[12].mxu1 %vm431_vm2, %v5208_v51  ;;  %4456 = vmatmul.mubr.msk.f32.gmra.mrb[28].mxu0 %vm431_vm2, %v5714_v48 }
  0x72   : > { %4234 = vmatprep.mubr.msk.f32.mxu1 %vm431_vm2, %v5231_v58  ;;  %4458 = vmatprep.mubr.msk.f32.mxu0 %vm431_vm2, %v5718_v35  ;;  %v6635_v35 = vld [vmem:[#allocation6_spill] sm:$0xff] }
  0x75   : > { %4235 = vmatmul.mubr.msk.f32.gmra.mrb[14].mxu1 %vm431_vm2, %v5234_v59  ;;  %4459 = vmatmul.mubr.msk.f32.gmra.mrb[30].mxu0 %vm431_vm2, %v5729_v2  ;;  %v6634_v2 = vld [vmem:[#allocation5_spill] sm:$0xff] }
  0x76   : > { %4237 = vmatprep.mubr.msk.f32.mxu1 %vm431_vm2, %v5257_v3  ;;  %4463 = vmatprep.mubr.msk.f32.mxu0 %vm431_vm2, %v5106_v15 }
  0x79   : > { %4238 = vmatmul.mubr.msk.f32.gmra.mrb[16].mxu1 %vm431_vm2, %v5260_v7  ;;  %4464 = vmatmul.mubr.msk.f32.vlgmr.msra.gmra.mrb[0].mxu0 %vm431_vm2, %v5111_v18 }
  0x7a   : > { %4240 = vmatprep.mubr.msk.f32.mxu1 %vm431_vm2, %v5298_v28  ;;  %4512 = vmatpush3.msk.msra.mxu0 %vm496_vm0, %v5368_v30  ;;  %v1018_v30 = vrot.slane %v5083_v4, 2  ;;  %v1022_v4 = vsel %vm1017_vm3, %v1019_v38, %v1021_v37  ;;  %v6632_v37 = vld [vmem:[#allocation36_spill] sm:$0xff] }
  0x7b   : > { %4466 = vmatprep.mubr.msk.f32.mxu0 %vm431_vm2, %v5123_v25  ;;  %4561 = vmatprep.subr.msk.mxu0 %vm496_vm0, %v5744_v27 }
  0x7c   : > { %v1020_v62 = vsel %vm1017_vm3, %v1018_v30, %v1019_v38  ;;  %v6631_v30 = vld [vmem:[#allocation32_spill] sm:$0xff]  ;;  %v5868_v38 = vld [vmem:[%s5080_s6 + $0x198] sm:$0xff] }
  0x7d   : > { %4241 = vmatmul.mubr.msk.f32.gmra.mrb[18].mxu1 %vm431_vm2, %v5301_v29  ;;  %4467 = vmatmul.mubr.msk.f32.gmra.mrb[2].mxu0 %vm431_vm2, %v5126_v26 }
  0x7e   : > { %4243 = vmatprep.mubr.msk.f32.mxu1 %vm431_vm2, %v5326_v53  ;;  %4469 = vmatprep.mubr.msk.f32.mxu0 %vm431_vm2, %v5137_v31 }
  0x81   : > { %4244 = vmatmul.mubr.msk.f32.gmra.mrb[20].mxu1 %vm431_vm2, %v5329_v55  ;;  %4470 = vmatmul.mubr.msk.f32.gmra.mrb[4].mxu0 %vm431_vm2, %v5140_v32 }
  0x82   : > { %4246 = vmatprep.mubr.msk.f32.mxu1 %vm431_vm2, %v5358_v22  ;;  %4472 = vmatprep.mubr.msk.f32.mxu0 %vm431_vm2, %v5177_v42 }
  0x85   : > { %4247 = vmatmul.mubr.msk.f32.gmra.mrb[22].mxu1 %vm431_vm2, %v5361_v24  ;;  %4473 = vmatmul.mubr.msk.f32.gmra.mrb[6].mxu0 %vm431_vm2, %v5180_v43 }
  0x86   : > { %4249 = vmatprep.mubr.msk.f32.mxu1 %vm431_vm2, %v5400_v8  ;;  %4475 = vmatprep.mubr.msk.f32.mxu0 %vm431_vm2, %v5205_v50 }
  0x89   : > { %4250 = vmatmul.mubr.msk.f32.gmra.mrb[24].mxu1 %vm431_vm2, %v5403_v10  ;;  %4476 = vmatmul.mubr.msk.f32.gmra.mrb[8].mxu0 %vm431_vm2, %v5208_v51 }
  0x8a   : > { %4252 = vmatprep.mubr.msk.f32.mxu1 %vm431_vm2, %v5437_v46  ;;  %4478 = vmatprep.mubr.msk.f32.mxu0 %vm431_vm2, %v5231_v58 }
  0x8d   : > { %4253 = vmatmul.mubr.msk.f32.gmra.mrb[26].mxu1 %vm431_vm2, %v5440_v12  ;;  %4479 = vmatmul.mubr.msk.f32.gmra.mrb[10].mxu0 %vm431_vm2, %v5234_v59 }
  0x8e   : > { %4255 = vmatprep.mubr.msk.f32.mxu1 %vm431_vm2, %v5472_v20  ;;  %4481 = vmatprep.mubr.msk.f32.mxu0 %vm431_vm2, %v5257_v3 }
  0x91   : > { %4256 = vmatmul.mubr.msk.f32.gmra.mrb[28].mxu1 %vm431_vm2, %v5475_v54  ;;  %4482 = vmatmul.mubr.msk.f32.gmra.mrb[12].mxu0 %vm431_vm2, %v5260_v7 }
  0x92   : > { %4258 = vmatprep.mubr.msk.f32.mxu1 %vm431_vm2, %v5507_v40  ;;  %4484 = vmatprep.mubr.msk.f32.mxu0 %vm431_vm2, %v5298_v28 }
  0x95   : > { %4259 = vmatmul.mubr.msk.f32.gmra.mrb[30].mxu1 %vm431_vm2, %v5510_v44  ;;  %4485 = vmatmul.mubr.msk.f32.gmra.mrb[14].mxu0 %vm431_vm2, %v5301_v29 }
  0x96   : > { %4263 = vmatprep.mubr.msk.f32.mxu1 %vm431_vm2, %v1020_v62  ;;  %4487 = vmatprep.mubr.msk.f32.mxu0 %vm431_vm2, %v5326_v53  ;;  %v5879_v62 = vld [vmem:[%s5080_s6 + $0x1a0] sm:$0xff] }
  0x99   : > { %4264 = vmatmul.mubr.msk.f32.vlgmr.msra.gmra.mrb[0].mxu1 %vm431_vm2, %v1022_v4  ;;  %4488 = vmatmul.mubr.msk.f32.gmra.mrb[16].mxu0 %vm431_vm2, %v5329_v55  ;;  %v6633_v4 = vld [vmem:[#allocation4_spill] sm:$0xff] }
  0x9a   : > { %4312 = vmatpush3.msk.msra.mxu1 %vm496_vm0, %v5607_v23  ;;  %4266 = vmatprep.mubr.msk.f32.mxu1 %vm431_vm2, %v5321_v47  ;;  %v6627_v47 = vld [vmem:[#allocation24_spill] sm:$0xff] }
  0x9b   : > { %4490 = vmatprep.mubr.msk.f32.mxu0 %vm431_vm2, %v5358_v22  ;;  %4611 = vmatprep.subr.msk.mxu1 %vm496_vm0, %v5058_v1  ;;  %v6629_v23 = vld [vmem:[#allocation28_spill] sm:$0xff] }
  0x9d   : > { %4267 = vmatmul.mubr.msk.f32.gmra.mrb[2].mxu1 %vm431_vm2, %v5342_v63  ;;  %4491 = vmatmul.mubr.msk.f32.gmra.mrb[18].mxu0 %vm431_vm2, %v5361_v24  ;;  %v6628_v63 = vld [vmem:[#allocation26_spill] sm:$0xff] }
  0x9e   : > { %4269 = vmatprep.mubr.msk.f32.mxu1 %vm431_vm2, %v5353_v21  ;;  %4493 = vmatprep.mubr.msk.f32.mxu0 %vm431_vm2, %v5400_v8 }
  0xa1   : > { %4270 = vmatmul.mubr.msk.f32.gmra.mrb[4].mxu1 %vm431_vm2, %v6625_v5  ;;  %4494 = vmatmul.mubr.msk.f32.gmra.mrb[20].mxu0 %vm431_vm2, %v5403_v10 }
  0xa2   : > { %4272 = vmatprep.mubr.msk.f32.mxu1 %vm431_vm2, %v6626_v11  ;;  %4496 = vmatprep.mubr.msk.f32.mxu0 %vm431_vm2, %v5437_v46 }
  0xa5   : > { %4273 = vmatmul.mubr.msk.f32.gmra.mrb[6].mxu1 %vm431_vm2, %v6627_v47  ;;  %4497 = vmatmul.mubr.msk.f32.gmra.mrb[22].mxu0 %vm431_vm2, %v5440_v12 }
  0xa6   : > { %4275 = vmatprep.mubr.msk.f32.mxu1 %vm431_vm2, %v6628_v63  ;;  %4499 = vmatprep.mubr.msk.f32.mxu0 %vm431_vm2, %v5472_v20 }
  0xa9   : > { %4276 = vmatmul.mubr.msk.f32.gmra.mrb[8].mxu1 %vm431_vm2, %v6629_v23  ;;  %4500 = vmatmul.mubr.msk.f32.gmra.mrb[24].mxu0 %vm431_vm2, %v5475_v54 }
  0xaa   : > { %4278 = vmatprep.mubr.msk.f32.mxu1 %vm431_vm2, %v6630_v57  ;;  %4502 = vmatprep.mubr.msk.f32.mxu0 %vm431_vm2, %v5507_v40 }
  0xad   : > { %4279 = vmatmul.mubr.msk.f32.gmra.mrb[10].mxu1 %vm431_vm2, %v6631_v30  ;;  %4503 = vmatmul.mubr.msk.f32.gmra.mrb[26].mxu0 %vm431_vm2, %v5510_v44  ;;  %v6636_v44 = vld [vmem:[#allocation7_spill] sm:$0xff] }
  0xae   : > { %4281 = vmatprep.mubr.msk.f32.mxu1 %vm431_vm2, %v5502_v19  ;;  %4505 = vmatprep.mubr.msk.f32.mxu0 %vm431_vm2, %v5682_v9 }
  0xb1   : > { %4282 = vmatmul.mubr.msk.f32.gmra.mrb[12].mxu1 %vm431_vm2, %v6632_v37  ;;  %4506 = vmatmul.mubr.msk.f32.gmra.mrb[28].mxu0 %vm431_vm2, %v5685_v6 }
  0xb2   : > { %4284 = vmatprep.mubr.msk.f32.mxu1 %vm431_vm2, %v5537_v39  ;;  %4508 = vmatprep.mubr.msk.f32.mxu0 %vm431_vm2, %v5868_v38 }
  0xb5   : > { %4285 = vmatmul.mubr.msk.f32.gmra.mrb[14].mxu1 %vm431_vm2, %v5554_v41  ;;  %4509 = vmatmul.mubr.msk.f32.gmra.mrb[30].mxu0 %vm431_vm2, %v5879_v62 }
  0xb6   : > { %4287 = vmatprep.mubr.msk.f32.mxu1 %vm431_vm2, %v5561_v13  ;;  %4513 = vmatprep.mubr.msk.f32.mxu0 %vm431_vm2, %v6633_v4  ;;  %v6637_v4 = vld [vmem:[#allocation8_spill] sm:$0xff] }
  0xb9   : > { %4288 = vmatmul.mubr.msk.f32.gmra.mrb[16].mxu1 %vm431_vm2, %v5577_v17  ;;  %4514 = vmatmul.mubr.msk.f32.vlgmr.msra.gmra.mrb[0].mxu0 %vm431_vm2, %v6634_v2  ;;  %v6638_v2 = vld [vmem:[#allocation9_spill] sm:$0xff] }
  0xba   : > { %4290 = vmatprep.mubr.msk.f32.mxu1 %vm431_vm2, %v5581_v61  ;;  %4562 = vmatpush3.msk.msra.mxu0 %vm496_vm0, %v5744_v27  ;;  %v6641_v27 = vld [vmem:[#allocation12_spill] sm:$0xff] }
  0xbb   : > { %4516 = vmatprep.mubr.msk.f32.mxu0 %vm431_vm2, %v6635_v35  ;;  %v6639_v35 = vld [vmem:[#allocation10_spill] sm:$0xff] }
  0xbd   : > { %4291 = vmatmul.mubr.msk.f32.gmra.mrb[18].mxu1 %vm431_vm2, %v5594_v45  ;;  %4517 = vmatmul.mubr.msk.f32.gmra.mrb[2].mxu0 %vm431_vm2, %v6636_v44  ;;  %v6640_v44 = vld [vmem:[#allocation11_spill] sm:$0xff] }
  0xbe   : > { %4293 = vmatprep.mubr.msk.f32.mxu1 %vm431_vm2, %v5598_v0  ;;  %4519 = vmatprep.mubr.msk.f32.mxu0 %vm431_vm2, %v6637_v4  ;;  %v6642_v4 = vld [vmem:[#allocation42_spill] sm:$0xff] }
  0xc1   : > { %4294 = vmatmul.mubr.msk.f32.gmra.mrb[20].mxu1 %vm431_vm2, %v5618_v16  ;;  %4520 = vmatmul.mubr.msk.f32.gmra.mrb[4].mxu0 %vm431_vm2, %v6638_v2  ;;  %v6643_v2 = vld [vmem:[#allocation13_spill] sm:$0xff] }
  0xc2   : > { %4296 = vmatprep.mubr.msk.f32.mxu1 %vm431_vm2, %v5622_v49  ;;  %4522 = vmatprep.mubr.msk.f32.mxu0 %vm431_vm2, %v6639_v35  ;;  %v6644_v49 = vld [vmem:[#allocation43_spill] sm:$0xff]  ;;  %v6645_v35 = vld [vmem:[#allocation14_spill] sm:$0xff] }
  0xc5   : > { %4297 = vmatmul.mubr.msk.f32.gmra.mrb[22].mxu1 %vm431_vm2, %v5637_v56  ;;  %4523 = vmatmul.mubr.msk.f32.gmra.mrb[6].mxu0 %vm431_vm2, %v6640_v44  ;;  %v6646_v44 = vld [vmem:[#allocation15_spill] sm:$0xff] }
  0xc6   : > { %4299 = vmatprep.mubr.msk.f32.mxu1 %vm431_vm2, %v5641_v14  ;;  %4525 = vmatprep.mubr.msk.f32.mxu0 %vm431_vm2, %v6641_v27  ;;  %v6647_v27 = vld [vmem:[#allocation16_spill] sm:$0xff] }
  0xc9   : > { %4300 = vmatmul.mubr.msk.f32.gmra.mrb[24].mxu1 %vm431_vm2, %v6642_v4  ;;  %4526 = vmatmul.mubr.msk.f32.gmra.mrb[8].mxu0 %vm431_vm2, %v6643_v2  ;;  %v6648_v2 = vld [vmem:[#allocation17_spill] sm:$0xff] }
  0xca   : > { %4302 = vmatprep.mubr.msk.f32.mxu1 %vm431_vm2, %v6644_v49  ;;  %4528 = vmatprep.mubr.msk.f32.mxu0 %vm431_vm2, %v6645_v35  ;;  %v6649_v35 = vld [vmem:[#allocation18_spill] sm:$0xff] }
  0xcd   : > { %4303 = vmatmul.mubr.msk.f32.gmra.mrb[26].mxu1 %vm431_vm2, %v5671_v36  ;;  %4529 = vmatmul.mubr.msk.f32.gmra.mrb[10].mxu0 %vm431_vm2, %v6646_v44  ;;  %v6650_v44 = vld [vmem:[#allocation19_spill] sm:$0xff] }
  0xce   : > { %4305 = vmatprep.mubr.msk.f32.mxu1 %vm431_vm2, %v5675_v34  ;;  %4531 = vmatprep.mubr.msk.f32.mxu0 %vm431_vm2, %v6647_v27  ;;  %v6651_v34 = vld [vmem:[#allocation2_spill] sm:$0xff]  ;;  %v6652_v27 = vld [vmem:[#allocation21_spill] sm:$0xff]  ;;  %v6006_v36 = vld [vmem:[%s5080_s6 + $0x1a8] sm:$0x3] }
  0xd1   : > { %4306 = vmatmul.mubr.msk.f32.gmra.mrb[28].mxu1 %vm431_vm2, %v5694_v60  ;;  %4532 = vmatmul.mubr.msk.f32.gmra.mrb[12].mxu0 %vm431_vm2, %v6648_v2  ;;  %v6653_v60 = vld [vmem:[#allocation3_spill] sm:$0xff] }
  0xd2   : > { %4308 = vmatprep.mubr.msk.f32.mxu1 %vm431_vm2, %v5698_v33  ;;  %4534 = vmatprep.mubr.msk.f32.mxu0 %vm431_vm2, %v6649_v35  ;;  %v6654_v2 = vld [vmem:[#allocation23_spill] sm:$0xff]  ;;  %v6662_v33 = vld [vmem:[#allocation38_spill] sm:$0xff] }
  0xd5   : > { %4309 = vmatmul.mubr.msk.f32.gmra.mrb[30].mxu1 %vm431_vm2, %v5714_v48  ;;  %4535 = vmatmul.mubr.msk.f32.gmra.mrb[14].mxu0 %vm431_vm2, %v6650_v44  ;;  %v6655_v48 = vld [vmem:[#allocation25_spill] sm:$0xff] }
  0xd6   : > { %4313 = vmatprep.mubr.msk.f32.mxu1 %vm431_vm2, %v6651_v34  ;;  %4537 = vmatprep.mubr.msk.f32.mxu0 %vm431_vm2, %v6652_v27  ;;  %v6656_v34 = vld [vmem:[#allocation27_spill] sm:$0xff] }
  0xd9   : > { %4314 = vmatmul.mubr.msk.f32.vlgmr.msra.gmra.mrb[0].mxu1 %vm431_vm2, %v6653_v60  ;;  %4538 = vmatmul.mubr.msk.f32.gmra.mrb[16].mxu0 %vm431_vm2, %v6654_v2  ;;  %v6657_v60 = vld [vmem:[#allocation29_spill] sm:$0xff] }
  0xda   : > { %4612 = vmatpush3.msk.msra.mxu1 %vm496_vm0, %v5058_v1  ;;  %4316 = vmatprep.mubr.msk.f32.mxu1 %vm431_vm2, %v5106_v15  ;;  %v6658_v1 = vld [vmem:[#allocation31_spill] sm:$0xff]  ;;  %v6659_v15 = vld [vmem:[#allocation33_spill] sm:$0xff] }
  0xdb   : > { %4540 = vmatprep.mubr.msk.f32.mxu0 %vm431_vm2, %v6655_v48 }
  0xdd   : > { %4317 = vmatmul.mubr.msk.f32.gmra.mrb[2].mxu1 %vm431_vm2, %v5111_v18  ;;  %4541 = vmatmul.mubr.msk.f32.gmra.mrb[18].mxu0 %vm431_vm2, %v6656_v34  ;;  %v6660_v18 = vld [vmem:[#allocation35_spill] sm:$0xff] }
  0xde   : > { %4319 = vmatprep.mubr.msk.f32.mxu1 %vm431_vm2, %v5123_v25  ;;  %4543 = vmatprep.mubr.msk.f32.mxu0 %vm431_vm2, %v6657_v60  ;;  %v6661_v25 = vld [vmem:[#allocation37_spill] sm:$0xff] }
  0xe1   : > { %4320 = vmatmul.mubr.msk.f32.gmra.mrb[4].mxu1 %vm431_vm2, %v5126_v26  ;;  %4544 = vmatmul.mubr.msk.f32.gmra.mrb[20].mxu0 %vm431_vm2, %v6658_v1  ;;  %v1693_v26 = vrot.slane %v5682_v9, 1 }
  0xe2   : > { %4322 = vmatprep.mubr.msk.f32.mxu1 %vm431_vm2, %v5137_v31  ;;  %4546 = vmatprep.mubr.msk.f32.mxu0 %vm431_vm2, %v6659_v15  ;;  %v1694_v31 = vrot.slane %v5685_v6, 1 }
  0xe4   : > { %v6003_v15 = vsel %vm348_vm1, %v1693_v26, %v1694_v31 }
  0xe5   : > { %4323 = vmatmul.mubr.msk.f32.gmra.mrb[6].mxu1 %vm431_vm2, %v5140_v32  ;;  %4547 = vmatmul.mubr.msk.f32.gmra.mrb[22].mxu0 %vm431_vm2, %v6660_v18  ;;  %v6663_v32 = vld [vmem:[#allocation39_spill] sm:$0xff]  ;;  %v2505_v18 = vrot.slane %v5879_v62, 1 }
  0xe6   : > { %4325 = vmatprep.mubr.msk.f32.mxu1 %vm431_vm2, %v5177_v42  ;;  %4549 = vmatprep.mubr.msk.f32.mxu0 %vm431_vm2, %v6661_v25  ;;  %v1696_v42 = vrot.slane %v5703_v52, 1  ;;  %v2504_v25 = vrot.slane %v5868_v38, 1  ;;  %v2507_v52 = vrot.slane %v6006_v36, 1 }
  0xe8   : > { %v2506_v26 = vsel %vm348_vm1, %v2504_v25, %v2505_v18 }
  0xe9   : > { %4326 = vmatmul.mubr.msk.f32.gmra.mrb[8].mxu1 %vm431_vm2, %v5180_v43  ;;  %4550 = vmatmul.mubr.msk.f32.gmra.mrb[24].mxu0 %vm431_vm2, %v6662_v33  ;;  %v6664_v43 = vld [vmem:[#allocation40_spill] sm:$0xff] }
  0xea   : > { %4328 = vmatprep.mubr.msk.f32.mxu1 %vm431_vm2, %v5205_v50  ;;  %4552 = vmatprep.mubr.msk.f32.mxu0 %vm431_vm2, %v6663_v32  ;;  %v6017_v50 = vsel %vm348_vm1, %v1694_v31, %v1696_v42 }
  0xed   : > { %4329 = vmatmul.mubr.msk.f32.gmra.mrb[10].mxu1 %vm431_vm2, %v5208_v51  ;;  %4553 = vmatmul.mubr.msk.f32.gmra.mrb[26].mxu0 %vm431_vm2, %v6664_v43  ;;  %v2508_v51 = vsel %vm348_vm1, %v2505_v18, %v2507_v52 }
  0xee   : > { %4331 = vmatprep.mubr.msk.f32.mxu1 %vm431_vm2, %v5231_v58  ;;  %4555 = vmatprep.mubr.msk.f32.mxu0 %vm431_vm2, %v6003_v15  ;;  %v6668_v58 = vld [vmem:[#allocation33_spill] sm:$0xff] }
  0xf1   : > { %4332 = vmatmul.mubr.msk.f32.gmra.mrb[12].mxu1 %vm431_vm2, %v5234_v59  ;;  %4556 = vmatmul.mubr.msk.f32.gmra.mrb[28].mxu0 %vm431_vm2, %v6017_v50  ;;  %v6669_v59 = vld [vmem:[#allocation45_spill] sm:$0xff] }
  0xf2   : > { %4334 = vmatprep.mubr.msk.f32.mxu1 %vm431_vm2, %v5257_v3  ;;  %4558 = vmatprep.mubr.msk.f32.mxu0 %vm431_vm2, %v2506_v26  ;;  %v6670_v3 = vld [vmem:[#allocation35_spill] sm:$0xff] }
  0xf5   : > { %4335 = vmatmul.mubr.msk.f32.gmra.mrb[14].mxu1 %vm431_vm2, %v5260_v7  ;;  %4559 = vmatmul.mubr.msk.f32.gmra.mrb[30].mxu0 %vm431_vm2, %v2508_v51  ;;  %v6671_v7 = vld [vmem:[#allocation46_spill] sm:$0xff] }
  0xf6   : > { %4337 = vmatprep.mubr.msk.f32.mxu1 %vm431_vm2, %v5298_v28  ;;  %4563 = vmatprep.mubr.msk.f32.mxu0 %vm431_vm2, %v5353_v21  ;;  %v2775_v28 = vrot.slane %v5868_v38, 2  ;;  %v2778_v21 = vrot.slane %v6006_v36, 2 }
  0xf9   : > { %4338 = vmatmul.mubr.msk.f32.gmra.mrb[16].mxu1 %vm431_vm2, %v5301_v29  ;;  %4564 = vmatmul.mubr.msk.f32.vlgmr.msra.gmra.mrb[0].mxu0 %vm431_vm2, %v6625_v5  ;;  %v2776_v29 = vrot.slane %v5879_v62, 2 }
  0xfa   : > { %4340 = vmatprep.mubr.msk.f32.mxu1 %vm431_vm2, %v5326_v53  ;;  %4566 = vmatprep.mubr.msk.f32.mxu0 %vm431_vm2, %v6626_v11  ;;  %v6674_v53 = vld [vmem:[#allocation48_spill] sm:$0xff] }
  0xfd   : > { %4341 = vmatmul.mubr.msk.f32.gmra.mrb[18].mxu1 %vm431_vm2, %v5329_v55  ;;  %4567 = vmatmul.mubr.msk.f32.gmra.mrb[2].mxu0 %vm431_vm2, %v6627_v47  ;;  %v6675_v55 = vld [vmem:[#allocation49_spill] sm:$0xff]  ;;  %v6183_v47 = vld [vmem:[%s6500_s3] ss:$0 sm:$0xff] }
  0xfe   : > { %4343 = vmatprep.mubr.msk.f32.mxu1 %vm431_vm2, %v5358_v22  ;;  %4569 = vmatprep.mubr.msk.f32.mxu0 %vm431_vm2, %v6628_v63  ;;  %v6673_v22 = vld [vmem:[#allocation47_spill] sm:$0xff] }
 0x101   : > { %4344 = vmatmul.mubr.msk.f32.gmra.mrb[20].mxu1 %vm431_vm2, %v5361_v24  ;;  %4570 = vmatmul.mubr.msk.f32.gmra.mrb[4].mxu0 %vm431_vm2, %v6629_v23  ;;  %v2777_v24 = vsel %vm1017_vm3, %v2775_v28, %v2776_v29 }
 0x102   : > { %4346 = vmatprep.mubr.msk.f32.mxu1 %vm431_vm2, %v5400_v8  ;;  %4572 = vmatprep.mubr.msk.f32.mxu0 %vm431_vm2, %v6630_v57  ;;  %v6672_v8 = vld [vmem:[#allocation37_spill] sm:$0xff] }
 0x105   : > { %4347 = vmatmul.mubr.msk.f32.gmra.mrb[22].mxu1 %vm431_vm2, %v5403_v10  ;;  %4573 = vmatmul.mubr.msk.f32.gmra.mrb[6].mxu0 %vm431_vm2, %v6631_v30  ;;  %v6676_v10 = vld [vmem:[#allocation50_spill] sm:$0xff] }
 0x106   : > { %4349 = vmatprep.mubr.msk.f32.mxu1 %vm431_vm2, %v5437_v46  ;;  %4575 = vmatprep.mubr.msk.f32.mxu0 %vm431_vm2, %v5502_v19  ;;  %v6665_v46 = vld [vmem:[#allocation34_spill] sm:$0xff] }
 0x109   : > { %4350 = vmatmul.mubr.msk.f32.gmra.mrb[24].mxu1 %vm431_vm2, %v5440_v12  ;;  %4576 = vmatmul.mubr.msk.f32.gmra.mrb[8].mxu0 %vm431_vm2, %v6632_v37  ;;  %v2779_v12 = vsel %vm1017_vm3, %v2776_v29, %v2778_v21 }
 0x10a   : > { %4352 = vmatprep.mubr.msk.f32.mxu1 %vm431_vm2, %v5472_v20  ;;  %4578 = vmatprep.mubr.msk.f32.mxu0 %vm431_vm2, %v5537_v39 }
 0x10d   : > { %4353 = vmatmul.mubr.msk.f32.gmra.mrb[26].mxu1 %vm431_vm2, %v5475_v54  ;;  %4579 = vmatmul.mubr.msk.f32.gmra.mrb[10].mxu0 %vm431_vm2, %v5554_v41 }
 0x10e   : > { %4355 = vmatprep.mubr.msk.f32.mxu1 %vm431_vm2, %v5507_v40  ;;  %4581 = vmatprep.mubr.msk.f32.mxu0 %vm431_vm2, %v5561_v13 }
 0x111   : > { %4356 = vmatmul.mubr.msk.f32.gmra.mrb[28].mxu1 %vm431_vm2, %v6665_v46  ;;  %4582 = vmatmul.mubr.msk.f32.gmra.mrb[12].mxu0 %vm431_vm2, %v5577_v17 }
 0x112   : > { %4358 = vmatprep.mubr.msk.f32.mxu1 %vm431_vm2, %v5682_v9  ;;  %4584 = vmatprep.mubr.msk.f32.mxu0 %vm431_vm2, %v5581_v61  ;;  %v6666_v9 = vld [vmem:[#allocation41_spill] sm:$0xff] }
 0x115   : > { %4359 = vmatmul.mubr.msk.f32.gmra.mrb[30].mxu1 %vm431_vm2, %v5685_v6  ;;  %4585 = vmatmul.mubr.msk.f32.gmra.mrb[14].mxu0 %vm431_vm2, %v5594_v45  ;;  %v6667_v6 = vld [vmem:[#allocation44_spill] sm:$0xff] }
 0x116   : > { %4387 = vmatprep.mubr.msk.f32.mxu1 %vm431_vm2, %v6649_v35  ;;  %4587 = vmatprep.mubr.msk.f32.mxu0 %vm431_vm2, %v5598_v0 }
 0x119   : > { %4388 = vmatmul.mubr.msk.f32.vlgmr.msra.gmra.mrb[16].mxu1 %vm431_vm2, %v6650_v44  ;;  %4588 = vmatmul.mubr.msk.f32.gmra.mrb[16].mxu0 %vm431_vm2, %v5618_v16 }
 0x11a   : > { %4390 = vmatprep.mubr.msk.f32.mxu1 %vm431_vm2, %v6652_v27  ;;  %4590 = vmatprep.mubr.msk.f32.mxu0 %vm431_vm2, %v6666_v9 }
 0x11d   : > { %4391 = vmatmul.mubr.msk.f32.gmra.mrb[18].mxu1 %vm431_vm2, %v6654_v2  ;;  %4591 = vmatmul.mubr.msk.f32.gmra.mrb[18].mxu0 %vm431_vm2, %v5637_v56 }
 0x11e   : > { %4393 = vmatprep.mubr.msk.f32.mxu1 %vm431_vm2, %v6655_v48  ;;  %4593 = vmatprep.mubr.msk.f32.mxu0 %vm431_vm2, %v5641_v14  ;;  %v6178_v48 = vld [vmem:[%s6499_s2] ss:$0 sm:$0xff] }
 0x121   : > { %4394 = vmatmul.mubr.msk.f32.gmra.mrb[20].mxu1 %vm431_vm2, %v6656_v34  ;;  %4594 = vmatmul.mubr.msk.f32.gmra.mrb[20].mxu0 %vm431_vm2, %v6642_v4 }
 0x122   : > { %4396 = vmatprep.mubr.msk.f32.mxu1 %vm431_vm2, %v6657_v60  ;;  %4596 = vmatprep.mubr.msk.f32.mxu0 %vm431_vm2, %v6644_v49 }
 0x125   : > { %4397 = vmatmul.mubr.msk.f32.gmra.mrb[22].mxu1 %vm431_vm2, %v6658_v1  ;;  %4597 = vmatmul.mubr.msk.f32.gmra.mrb[22].mxu0 %vm431_vm2, %v6667_v6 }
 0x126   : > { %4399 = vmatprep.mubr.msk.f32.mxu1 %vm431_vm2, %v6668_v58  ;;  %4599 = vmatprep.mubr.msk.f32.mxu0 %vm431_vm2, %v6669_v59 }
 0x129   : > { %4400 = vmatmul.mubr.msk.f32.gmra.mrb[24].mxu1 %vm431_vm2, %v6670_v3  ;;  %4600 = vmatmul.mubr.msk.f32.gmra.mrb[24].mxu0 %vm431_vm2, %v6671_v7 }
 0x12a   : > { %4402 = vmatprep.mubr.msk.f32.mxu1 %vm431_vm2, %v6672_v8  ;;  %4602 = vmatprep.mubr.msk.f32.mxu0 %vm431_vm2, %v6673_v22 }
 0x12d   : > { %4403 = vmatmul.mubr.msk.f32.gmra.mrb[26].mxu1 %vm431_vm2, %v6662_v33  ;;  %4603 = vmatmul.mubr.msk.f32.gmra.mrb[26].mxu0 %vm431_vm2, %v6674_v53 }
 0x12e   : > { %4405 = vmatprep.mubr.msk.f32.mxu1 %vm431_vm2, %v6663_v32  ;;  %4605 = vmatprep.mubr.msk.f32.mxu0 %vm431_vm2, %v6675_v55 }
 0x131   : > { %4406 = vmatmul.mubr.msk.f32.gmra.mrb[28].mxu1 %vm431_vm2, %v6664_v43  ;;  %4606 = vmatmul.mubr.msk.f32.gmra.mrb[28].mxu0 %vm431_vm2, %v6676_v10 }
 0x132   : > { %4408 = vmatprep.mubr.msk.f32.mxu1 %vm431_vm2, %v6003_v15  ;;  %4608 = vmatprep.mubr.msk.f32.mxu0 %vm431_vm2, %v2777_v24 }
 0x135   : > { %4409 = vmatmul.mubr.msk.f32.gmra.mrb[30].mxu1 %vm431_vm2, %v6017_v50  ;;  %4609 = vmatmul.mubr.msk.f32.gmra.mrb[30].mxu0 %vm431_vm2, %v2779_v12 }
 0x1ac   : > { %v4315_v40 = vpop.f32.mrb[0].mxu1 }
 0x1ad   : > { %v1501_v20 = vpop.f32.mrb[1].mxu1 }
 0x1b0   : > { %v4318_v54 = vpop.f32.mrb[2].mxu1 }
 0x1b1   : > { %v1511_v19 = vpop.f32.mrb[3].mxu1 }
 0x1b4   : > { %v4321_v13 = vpop.f32.mrb[4].mxu1 }
 0x1b5   : > { %v1521_v39 = vpop.f32.mrb[5].mxu1 }
 0x1b8   : > { %v4324_v41 = vpop.f32.mrb[6].mxu1 }
 0x1b9   : > { %v1531_v17 = vpop.f32.mrb[7].mxu1 }
 0x1bc   : > { %v4327_v61 = vpop.f32.mrb[8].mxu1 }
 0x1bd   : > { %v1541_v45 = vpop.f32.mrb[9].mxu1 }
 0x1c0   : > { %v6163_v0 = vpop.f32.mrb[10].mxu1 }
 0x1c1   : > { %v6165_v16 = vpop.f32.mrb[11].mxu1 }
 0x1c4   : > { %v6167_v49 = vpop.f32.mrb[12].mxu1 }
 0x1c5   : > { %v6169_v56 = vpop.f32.mrb[13].mxu1 }
 0x1c8   : > { %v6171_v14 = vpop.f32.mrb[14].mxu1 }
 0x1c9   : > { %v6173_v36 = vpop.f32.mrb[15].mxu1 }
 0x1cc   : > { %v4565_v33 = vpop.f32.mrb[0].mxu0 }
 0x1cd   : > { %v4613_v5 = vadd.f32 %v4565_v33, %v4315_v40  ;;  %v2855_v11 = vpop.f32.mrb[1].mxu0 }
 0x1ce   : > { %v4614_v63 = vadd.f32 %v2855_v11, %v1501_v20 }
 0x1cf   : > { %v3054_v23 = vmul.f32 %v4613_v5, %v6178_v48 }
 0x1d0   : > { %v3053_v57 = vmul.f32 %v4614_v63, %v6178_v48  ;;  %v4568_v30 = vpop.f32.mrb[2].mxu0 }
 0x1d1   : > { %v6188_v38 = vadd.f32 %v6183_v47, %v3054_v23  ;;  %v4615_v37 = vadd.f32 %v4568_v30, %v4318_v54  ;;  %v2865_v62 = vpop.f32.mrb[3].mxu0 }
 0x1d2   : > { %v6191_v4 = vadd.f32 %v6183_v47, %v3053_v57  ;;  %v4616_v35 = vadd.f32 %v2865_v62, %v1511_v19 }
 0x1d3   : > { %v3829_v44 = vmul.f32 -1.442695, %v6188_v38  ;;  %v3056_v27 = vmul.f32 %v4615_v37, %v6178_v48 }
 0x1d4   : > { %v3828_v2 = vmul.f32 -1.442695, %v6191_v4  ;;  %v3055_v34 = vmul.f32 %v4616_v35, %v6178_v48  ;;  %v4571_v60 = vpop.f32.mrb[4].mxu0 }
 0x1d5   : > { %4878 = vpow2.f32 %v3829_v44  ;;  %v6198_v1 = vadd.f32 %v6183_v47, %v3056_v27  ;;  %v4617_v15 = vadd.f32 %v4571_v60, %v4321_v13  ;;  %v2875_v18 = vpop.f32.mrb[5].mxu0 }
 0x1d6   : > { %4880 = vpow2.f32 %v3828_v2  ;;  %v6201_v25 = vadd.f32 %v6183_v47, %v3055_v34  ;;  %v4618_v31 = vadd.f32 %v2875_v18, %v1521_v39 }
 0x1d7   : > { %v3831_v32 = vmul.f32 -1.442695, %v6198_v1  ;;  %v3058_v42 = vmul.f32 %v4617_v15, %v6178_v48 }
 0x1d8   : > { %v3830_v43 = vmul.f32 -1.442695, %v6201_v25  ;;  %v3057_v50 = vmul.f32 %v4618_v31, %v6178_v48  ;;  %v4574_v52 = vpop.f32.mrb[6].mxu0 }
 0x1d9   : > { %4882 = vpow2.f32 %v3831_v32  ;;  %v6208_v26 = vadd.f32 %v6183_v47, %v3058_v42  ;;  %v4619_v51 = vadd.f32 %v4574_v52, %v4324_v41  ;;  %v2885_v46 = vpop.f32.mrb[7].mxu0 }
 0x1da   : > { %4884 = vpow2.f32 %v3830_v43  ;;  %v6211_v9 = vadd.f32 %v6183_v47, %v3057_v50  ;;  %v4620_v6 = vadd.f32 %v2885_v46, %v1531_v17 }
 0x1db   : > { %v3833_v58 = vmul.f32 -1.442695, %v6208_v26  ;;  %v3060_v59 = vmul.f32 %v4619_v51, %v6178_v48 }
 0x1dc   : > { %v3832_v3 = vmul.f32 -1.442695, %v6211_v9  ;;  %v3059_v7 = vmul.f32 %v4620_v6, %v6178_v48  ;;  %v4577_v8 = vpop.f32.mrb[8].mxu0 }
 0x1dd   : > { %4886 = vpow2.f32 %v3833_v58  ;;  %v6218_v22 = vadd.f32 %v6183_v47, %v3060_v59  ;;  %v4621_v28 = vadd.f32 %v4577_v8, %v4327_v61  ;;  %v2895_v29 = vpop.f32.mrb[9].mxu0 }
 0x1de   : > { %4888 = vpow2.f32 %v3832_v3  ;;  %v6221_v53 = vadd.f32 %v6183_v47, %v3059_v7  ;;  %v4622_v55 = vadd.f32 %v2895_v29, %v1541_v45  ;;  %v3349_v7 = vld [vmem:[%s6257_s26 + $0x8] sm:$0xff] }
 0x1df   : > { %v4879_v21 = vpop.eup %4878  ;;  %v3835_v24 = vmul.f32 -1.442695, %v6218_v22  ;;  %v3062_v10 = vmul.f32 %v4621_v28, %v6178_v48 }
 0x1e0   : > { %v4881_v12 = vpop.eup %4880  ;;  %v3221_v40 = vadd.f32 1.0, %v4879_v21  ;;  %v3834_v20 = vmul.f32 -1.442695, %v6221_v53  ;;  %v3061_v54 = vmul.f32 %v4622_v55, %v6178_v48  ;;  %v4580_v19 = vpop.f32.mrb[10].mxu0 }
 0x1e1   : > { %v3220_v13 = vadd.f32 1.0, %v4881_v12  ;;  %4890 = vpow2.f32 %v3835_v24  ;;  %v6228_v39 = vadd.f32 %v6183_v47, %v3062_v10  ;;  %v4623_v41 = vadd.f32 %v4580_v19, %v6163_v0  ;;  %v2905_v17 = vpop.f32.mrb[11].mxu0  ;;  %v3348_v24 = vld [vmem:[%s6257_s26] sm:$0xff] }
 0x1e2   : > { %4892 = vrcp.f32 %v3221_v40  ;;  %v6232_v61 = vadd.f32 %v6183_v47, %v3061_v54  ;;  %v4624_v45 = vadd.f32 %v2905_v17, %v6165_v16 }
 0x1e3   : > { %v4883_v33 = vpop.eup %4882  ;;  %4894 = vrcp.f32 %v3220_v13  ;;  %v3837_v5 = vmul.f32 -1.442695, %v6228_v39  ;;  %v3064_v11 = vmul.f32 %v4623_v41, %v6178_v48 }
 0x1e4   : > { %v4885_v63 = vpop.eup %4884  ;;  %v3223_v23 = vadd.f32 1.0, %v4883_v33  ;;  %4896 = vpow2.f32 %v3834_v20  ;;  %v3836_v57 = vmul.f32 -1.442695, %v6232_v61  ;;  %v3063_v0 = vmul.f32 %v4624_v45, %v6178_v48  ;;  %v4583_v30 = vpop.f32.mrb[12].mxu0 }
 0x1e5   : > { %v3222_v37 = vadd.f32 1.0, %v4885_v63  ;;  %4898 = vpow2.f32 %v3837_v5  ;;  %v6240_v62 = vadd.f32 %v6183_v47, %v3064_v11  ;;  %v4625_v16 = vadd.f32 %v4583_v30, %v6167_v49  ;;  %v2915_v35 = vpop.f32.mrb[13].mxu0  ;;  %v3351_v63 = vld [vmem:[%s6257_s26 + $0x18] sm:$0xff] }
 0x1e6   : > { %4900 = vrcp.f32 %v3223_v23  ;;  %v6245_v44 = vadd.f32 %v6183_v47, %v3063_v0  ;;  %v4626_v27 = vadd.f32 %v2915_v35, %v6169_v56  ;;  %v3350_v35 = vld [vmem:[%s6257_s26 + $0x10] sm:$0xff] }
 0x1e7   : > { %v4887_v2 = vpop.eup %4886  ;;  %4902 = vrcp.f32 %v3222_v37  ;;  %v3839_v34 = vmul.f32 -1.442695, %v6240_v62  ;;  %v3066_v60 = vmul.f32 %v4625_v16, %v6178_v48 }
 0x1e8   : > { %v4889_v15 = vpop.eup %4888  ;;  %v3225_v18 = vadd.f32 1.0, %v4887_v2  ;;  %4904 = vpow2.f32 %v3836_v57  ;;  %v3838_v49 = vmul.f32 -1.442695, %v6245_v44  ;;  %v3065_v31 = vmul.f32 %v4626_v27, %v6178_v48  ;;  %v4586_v32 = vpop.f32.mrb[14].mxu0 }
 0x1e9   : > { %v3224_v56 = vadd.f32 1.0, %v4889_v15  ;;  %4906 = vpow2.f32 %v3839_v34  ;;  %v6260_v42 = vadd.f32 %v6183_v47, %v3066_v60  ;;  %v4627_v43 = vadd.f32 %v4586_v32, %v6171_v14  ;;  %v2925_v50 = vpop.f32.mrb[15].mxu0 }
 0x1ea   : > { %4908 = vrcp.f32 %v3225_v18  ;;  %v6264_v52 = vadd.f32 %v6183_v47, %v3065_v31  ;;  %v4628_v51 = vadd.f32 %v2925_v50, %v6173_v36 }
 0x1eb   : > { %v4891_v46 = vpop.eup %4890  ;;  %4910 = vrcp.f32 %v3224_v56  ;;  %v3841_v6 = vmul.f32 -1.442695, %v6260_v42  ;;  %v3068_v58 = vmul.f32 %v4627_v43, %v6178_v48 }
 0x1ec   : > { %v4389_v59 = vpop.f32.mrb[16].mxu1  ;;  %v4893_v3 = vpop.eup %4892  ;;  %v3227_v8 = vadd.f32 1.0, %v4891_v46  ;;  %4912 = vpow2.f32 %v3838_v49  ;;  %v3840_v14 = vmul.f32 -1.442695, %v6264_v52  ;;  %v3067_v28 = vmul.f32 %v4628_v51, %v6178_v48  ;;  %v3353_v46 = vld [vmem:[%s6257_s26 + $0x28] sm:$0xff] }
 0x1ed   : > { %v4589_v29 = vpop.f32.mrb[16].mxu0  ;;  %v1853_v55 = vpop.f32.mrb[17].mxu1  ;;  %v3317_v21 = vmul.f32 %v4893_v3, %v6188_v38  ;;  %4914 = vpow2.f32 %v3841_v6  ;;  %v6275_v10 = vadd.f32 %v6183_v47, %v3068_v58 }
 0x1ee   : > { %v4895_v36 = vpop.eup %4894  ;;  %v4629_v12 = vadd.f32 %v4589_v29, %v4389_v59  ;;  %v2935_v40 = vpop.f32.mrb[17].mxu0  ;;  %4916 = vrcp.f32 %v3227_v8  ;;  %v6286_v38 = vadd.f32 %v6183_v47, %v3067_v28  ;;  %v3352_v8 = vld [vmem:[%s6257_s26 + $0x20] sm:$0xff] }
 0x1ef   : > { %v4897_v20 = vpop.eup %4896  ;;  %v3316_v54 = vmul.f32 %v4895_v36, %v6191_v4  ;;  %v4630_v19 = vadd.f32 %v2935_v40, %v1853_v55  ;;  %v3381_v41 = vadd.f32 %v3349_v7, %v3317_v21  ;;  %4918 = vpow2.f32 %v3840_v14 }
 0x1f0   : > { %v4899_v13 = vpop.eup %4898  ;;  %v3226_v17 = vadd.f32 1.0, %v4897_v20  ;;  %v3843_v45 = vmul.f32 -1.442695, %v6275_v10  ;;  %v4392_v33 = vpop.f32.mrb[18].mxu1  ;;  %v3842_v4 = vmul.f32 -1.442695, %v6286_v38  ;;  %v3070_v57 = vmul.f32 %v4629_v12, %v6178_v48 }
 0x1f1   : > { %v4901_v5 = vpop.eup %4900  ;;  %v3380_v11 = vadd.f32 %v3348_v24, %v3316_v54  ;;  %v3229_v23 = vadd.f32 1.0, %v4899_v13  ;;  %v4592_v0 = vpop.f32.mrb[18].mxu0  ;;  %3413 = vst.msk [vmem:[%s6282_s29 + $0x8] sm:$0xff] %vm431_vm2, %v3381_v41  ;;  %v3069_v27 = vmul.f32 %v4630_v19, %v6178_v48  ;;  %v3355_v41 = vld [vmem:[%s6257_s26 + $0x38] sm:$0xff] }
 0x1f2   : > { %v1863_v30 = vpop.f32.mrb[19].mxu1  ;;  %v4903_v37 = vpop.eup %4902  ;;  %v3319_v16 = vmul.f32 %v4901_v5, %v6198_v1  ;;  %4920 = vrcp.f32 %v3226_v17  ;;  %v4631_v2 = vadd.f32 %v4592_v0, %v4392_v33  ;;  %v6301_v18 = vadd.f32 %v6183_v47, %v3070_v57 }
 0x1f3   : > { %v2945_v34 = vpop.f32.mrb[19].mxu0  ;;  %v4905_v60 = vpop.eup %4904  ;;  %3412 = vst.msk [vmem:[%s6282_s29] sm:$0xff] %vm431_vm2, %v3380_v11  ;;  %v3318_v15 = vmul.f32 %v4903_v37, %v6201_v25  ;;  %4922 = vrcp.f32 %v3229_v23  ;;  %v6304_v56 = vadd.f32 %v6183_v47, %v3069_v27 }
 0x1f4   : > { %v4632_v49 = vadd.f32 %v2945_v34, %v1863_v30  ;;  %v4907_v31 = vpop.eup %4906  ;;  %v3383_v1 = vadd.f32 %v3351_v63, %v3319_v16  ;;  %v3228_v32 = vadd.f32 1.0, %v4905_v60  ;;  %4924 = vpow2.f32 %v3843_v45  ;;  %v4395_v43 = vpop.f32.mrb[20].mxu1 }
 0x1f5   : > { %v4909_v50 = vpop.eup %4908  ;;  %v3382_v51 = vadd.f32 %v3350_v35, %v3318_v15  ;;  %v3231_v25 = vadd.f32 1.0, %v4907_v31  ;;  %4926 = vpow2.f32 %v3842_v4  ;;  %v3845_v6 = vmul.f32 -1.442695, %v6301_v18  ;;  %v4595_v58 = vpop.f32.mrb[20].mxu0  ;;  %v3354_v35 = vld [vmem:[%s6257_s26 + $0x30] sm:$0xff]  ;;  %v3357_v15 = vld [vmem:[%s6257_s26 + $0x48] sm:$0xff] }
 0x1f6   : > { %v1873_v59 = vpop.f32.mrb[21].mxu1  ;;  %v4911_v3 = vpop.eup %4910  ;;  %3415 = vst.msk [vmem:[%s6282_s29 + $0x18] sm:$0xff] %vm431_vm2, %v3383_v1  ;;  %v3321_v7 = vmul.f32 %v4909_v50, %v6208_v26  ;;  %4928 = vrcp.f32 %v3228_v32  ;;  %v3844_v14 = vmul.f32 -1.442695, %v6304_v56  ;;  %v3072_v28 = vmul.f32 %v4631_v2, %v6178_v48 }
 0x1f7   : > { %v2955_v29 = vpop.f32.mrb[21].mxu0  ;;  %v4913_v55 = vpop.eup %4912  ;;  %3414 = vst.msk [vmem:[%s6282_s29 + $0x10] sm:$0xff] %vm431_vm2, %v3382_v51  ;;  %v3320_v36 = vmul.f32 %v4911_v3, %v6211_v9  ;;  %4930 = vrcp.f32 %v3231_v25  ;;  %v3071_v21 = vmul.f32 %v4632_v49, %v6178_v48  ;;  %v4633_v24 = vadd.f32 %v4595_v58, %v4395_v43 }
 0x1f8   : > { %v4915_v12 = vpop.eup %4914  ;;  %v3385_v26 = vadd.f32 %v3353_v46, %v3321_v7  ;;  %v3230_v40 = vadd.f32 1.0, %v4913_v55  ;;  %4932 = vpow2.f32 %v3845_v6  ;;  %v6319_v20 = vadd.f32 %v6183_v47, %v3072_v28  ;;  %v4398_v54 = vpop.f32.mrb[22].mxu1 }
 0x1f9   : > { %v4917_v19 = vpop.eup %4916  ;;  %v3384_v13 = vadd.f32 %v3352_v8, %v3320_v36  ;;  %v3233_v17 = vadd.f32 1.0, %v4915_v12  ;;  %4934 = vpow2.f32 %v3844_v14  ;;  %v6323_v9 = vadd.f32 %v6183_v47, %v3071_v21  ;;  %v4598_v45 = vpop.f32.mrb[22].mxu0  ;;  %v3359_v21 = vld [vmem:[%s6257_s26 + $0x58] sm:$0xff] }
 0x1fa   : > { %v1883_v33 = vpop.f32.mrb[23].mxu1  ;;  %v4919_v5 = vpop.eup %4918  ;;  %3417 = vst.msk [vmem:[%s6282_s29 + $0x28] sm:$0xff] %vm431_vm2, %v3385_v26  ;;  %v3323_v11 = vmul.f32 %v4917_v19, %v6218_v22  ;;  %4936 = vrcp.f32 %v3230_v40  ;;  %v3847_v63 = vmul.f32 -1.442695, %v6319_v20  ;;  %v3074_v23 = vmul.f32 %v4633_v24, %v6178_v48 }
 0x1fb   : > { %v2965_v4 = vpop.f32.mrb[23].mxu0  ;;  %3416 = vst.msk [vmem:[%s6282_s29 + $0x20] sm:$0xff] %vm431_vm2, %v3384_v13  ;;  %4938 = vrcp.f32 %v3233_v17  ;;  %v3232_v57 = vadd.f32 1.0, %v4919_v5  ;;  %v3846_v0 = vmul.f32 -1.442695, %v6323_v9  ;;  %v4634_v30 = vadd.f32 %v2955_v29, %v1873_v59 }
 0x1fc   : > { %v4921_v37 = vpop.eup %4920  ;;  %v3387_v16 = vadd.f32 %v3355_v41, %v3323_v11  ;;  %4940 = vpow2.f32 %v3847_v63  ;;  %v6335_v22 = vadd.f32 %v6183_v47, %v3074_v23  ;;  %v4635_v27 = vadd.f32 %v4598_v45, %v4398_v54  ;;  %v4401_v2 = vpop.f32.mrb[24].mxu1  ;;  %v3358_v23 = vld [vmem:[%s6257_s26 + $0x50] sm:$0xff] }
 0x1fd   : > { %v4923_v34 = vpop.eup %4922  ;;  %v3322_v60 = vmul.f32 %v4921_v37, %v6221_v53  ;;  %4942 = vrcp.f32 %v3232_v57  ;;  %v3073_v49 = vmul.f32 %v4634_v30, %v6178_v48  ;;  %v4636_v31 = vadd.f32 %v2965_v4, %v1883_v33  ;;  %v4601_v1 = vpop.f32.mrb[24].mxu0  ;;  %v3361_v37 = vld [vmem:[%s6257_s26 + $0x68] sm:$0xff] }
 0x1fe   : > { %v1893_v32 = vpop.f32.mrb[25].mxu1  ;;  %v4925_v43 = vpop.eup %4924  ;;  %3419 = vst.msk [vmem:[%s6282_s29 + $0x38] sm:$0xff] %vm431_vm2, %v3387_v16  ;;  %v3325_v50 = vmul.f32 %v4923_v34, %v6228_v39  ;;  %4944 = vpow2.f32 %v3846_v0  ;;  %v3849_v51 = vmul.f32 -1.442695, %v6335_v22  ;;  %v3076_v46 = vmul.f32 %v4635_v27, %v6178_v48  ;;  %v3356_v39 = vld [vmem:[%s6257_s26 + $0x40] sm:$0xff] }
 0x1ff   : > { %v2975_v53 = vpop.f32.mrb[25].mxu0  ;;  %v4927_v25 = vpop.eup %4926  ;;  %v3386_v6 = vadd.f32 %v3354_v35, %v3322_v60  ;;  %v3235_v58 = vadd.f32 1.0, %v4925_v43  ;;  %v6346_v59 = vadd.f32 %v6183_v47, %v3073_v49  ;;  %v3075_v3 = vmul.f32 %v4636_v31, %v6178_v48  ;;  %v3360_v43 = vld [vmem:[%s6257_s26 + $0x60] sm:$0xff] }
 0x200   : > { %v4929_v7 = vpop.eup %4928  ;;  %v3389_v8 = vadd.f32 %v3357_v15, %v3325_v50  ;;  %v3234_v14 = vadd.f32 1.0, %v4927_v25  ;;  %4946 = vpow2.f32 %v3849_v51  ;;  %v6351_v28 = vadd.f32 %v6183_v47, %v3076_v46  ;;  %v4404_v29 = vpop.f32.mrb[26].mxu1 }
 0x201   : > { %v4931_v55 = vpop.eup %4930  ;;  %3418 = vst.msk [vmem:[%s6282_s29 + $0x30] sm:$0xff] %vm431_vm2, %v3386_v6  ;;  %v3324_v36 = vmul.f32 %v4929_v7, %v6232_v61  ;;  %4948 = vrcp.f32 %v3235_v58  ;;  %v3848_v24 = vmul.f32 -1.442695, %v6346_v59  ;;  %v6359_v12 = vadd.f32 %v6183_v47, %v3075_v3  ;;  %v4604_v26 = vpop.f32.mrb[26].mxu0 }
 0x202   : > { %v1903_v40 = vpop.f32.mrb[27].mxu1  ;;  %v4933_v54 = vpop.eup %4932  ;;  %3421 = vst.msk [vmem:[%s6282_s29 + $0x48] sm:$0xff] %vm431_vm2, %v3389_v8  ;;  %v3327_v19 = vmul.f32 %v4931_v55, %v6240_v62  ;;  %4950 = vrcp.f32 %v3234_v14  ;;  %v3851_v13 = vmul.f32 -1.442695, %v6351_v28  ;;  %v4637_v61 = vadd.f32 %v4601_v1, %v4401_v2 }
 0x203   : > { %v2985_v41 = vpop.f32.mrb[27].mxu0  ;;  %v4935_v17 = vpop.eup %4934  ;;  %v3388_v45 = vadd.f32 %v3356_v39, %v3324_v36  ;;  %v3237_v33 = vadd.f32 1.0, %v4933_v54  ;;  %4952 = vpow2.f32 %v3848_v24  ;;  %v3850_v5 = vmul.f32 -1.442695, %v6359_v12  ;;  %v3363_v24 = vld [vmem:[%s6257_s26 + $0x78] sm:$0xff] }
 0x204   : > { %v4937_v11 = vpop.eup %4936  ;;  %v3391_v63 = vadd.f32 %v3359_v21, %v3327_v19  ;;  %v3236_v4 = vadd.f32 1.0, %v4935_v17  ;;  %4954 = vpow2.f32 %v3851_v13  ;;  %v3078_v62 = vmul.f32 %v4637_v61, %v6178_v48  ;;  %v4407_v57 = vpop.f32.mrb[28].mxu1  ;;  %v3362_v61 = vld [vmem:[%s6257_s26 + $0x70] sm:$0xff] }
 0x205   : > { %v4939_v0 = vpop.eup %4938  ;;  %3420 = vst.msk [vmem:[%s6282_s29 + $0x40] sm:$0xff] %vm431_vm2, %v3388_v45  ;;  %v3326_v30 = vmul.f32 %v4937_v11, %v6245_v44  ;;  %4956 = vrcp.f32 %v3237_v33  ;;  %v4638_v16 = vadd.f32 %v2975_v53, %v1893_v32  ;;  %v4639_v35 = vadd.f32 %v4604_v26, %v4404_v29  ;;  %v4607_v27 = vpop.f32.mrb[28].mxu0 }
 0x206   : > { %v1913_v2 = vpop.f32.mrb[29].mxu1  ;;  %v4941_v34 = vpop.eup %4940  ;;  %3423 = vst.msk [vmem:[%s6282_s29 + $0x58] sm:$0xff] %vm431_vm2, %v3391_v63  ;;  %v3329_v60 = vmul.f32 %v4939_v0, %v6260_v42  ;;  %4958 = vrcp.f32 %v3236_v4  ;;  %v6376_v15 = vadd.f32 %v6183_v47, %v3078_v62  ;;  %v4640_v49 = vadd.f32 %v2985_v41, %v1903_v40 }
 0x207   : > { %v2995_v31 = vpop.f32.mrb[29].mxu0  ;;  %v4943_v44 = vpop.eup %4942  ;;  %v3390_v1 = vadd.f32 %v3358_v23, %v3326_v30  ;;  %v3239_v50 = vadd.f32 1.0, %v4941_v34  ;;  %4960 = vpow2.f32 %v3850_v5  ;;  %v3077_v32 = vmul.f32 %v4638_v16, %v6178_v48  ;;  %v3365_v30 = vld [vmem:[%s6257_s26 + $0x88] sm:$0xff] }
 0x208   : > { %v4945_v51 = vpop.eup %4944  ;;  %v3393_v46 = vadd.f32 %v3361_v37, %v3329_v60  ;;  %v3328_v53 = vmul.f32 %v4943_v44, %v6264_v52  ;;  %v3853_v42 = vmul.f32 -1.442695, %v6376_v15  ;;  %v3080_v25 = vmul.f32 %v4639_v35, %v6178_v48  ;;  %v4410_v6 = vpop.f32.mrb[30].mxu1 }
 0x209   : > { %3422 = vst.msk [vmem:[%s6282_s29 + $0x50] sm:$0xff] %vm431_vm2, %v3390_v1  ;;  %4962 = vrcp.f32 %v3239_v50  ;;  %v3238_v58 = vadd.f32 1.0, %v4945_v51  ;;  %v6386_v3 = vadd.f32 %v6183_v47, %v3077_v32  ;;  %v3079_v7 = vmul.f32 %v4640_v49, %v6178_v48  ;;  %v4610_v8 = vpop.f32.mrb[30].mxu0  ;;  %v1923_v39 = vpop.f32.mrb[31].mxu1  ;;  %v3367_v51 = vld [vmem:[%s6257_s26 + $0x98] sm:$0xff] }
 0x20a   : > { %v4947_v14 = vpop.eup %4946  ;;  %3425 = vst.msk [vmem:[%s6282_s29 + $0x68] sm:$0xff] %vm431_vm2, %v3393_v46  ;;  %v3392_v52 = vadd.f32 %v3360_v43, %v3328_v53  ;;  %4964 = vpow2.f32 %v3853_v42  ;;  %v6392_v29 = vadd.f32 %v6183_v47, %v3080_v25  ;;  %v4641_v55 = vadd.f32 %v4607_v27, %v4407_v57  ;;  %v3005_v36 = vpop.f32.mrb[31].mxu0  ;;  %v3364_v27 = vld [vmem:[%s6257_s26 + $0x80] sm:$0xff] }
 0x20b   : > { %v4949_v21 = vpop.eup %4948  ;;  %4966 = vrcp.f32 %v3238_v58  ;;  %v3241_v26 = vadd.f32 1.0, %v4947_v14  ;;  %v3852_v40 = vmul.f32 -1.442695, %v6386_v3  ;;  %v6397_v54 = vadd.f32 %v6183_v47, %v3079_v7  ;;  %v3366_v58 = vld [vmem:[%s6257_s26 + $0x90] sm:$0xff]  ;;  %v3369_v14 = vld [vmem:[%s6257_s26 + $0xa8] sm:$0xff] }
 0x20c   : > { %v4951_v19 = vpop.eup %4950  ;;  %3424 = vst.msk [vmem:[%s6282_s29 + $0x60] sm:$0xff] %vm431_vm2, %v3392_v52  ;;  %v3331_v13 = vmul.f32 %v4949_v21, %v6275_v10  ;;  %v3855_v41 = vmul.f32 -1.442695, %v6392_v29  ;;  %v3082_v17 = vmul.f32 %v4641_v55, %v6178_v48  ;;  %v4642_v45 = vadd.f32 %v2995_v31, %v1913_v2 }
 0x20d   : > { %v4953_v33 = vpop.eup %4952  ;;  %v3330_v5 = vmul.f32 %v4951_v19, %v6286_v38  ;;  %4968 = vrcp.f32 %v3241_v26  ;;  %v3854_v11 = vmul.f32 -1.442695, %v6397_v54  ;;  %v4643_v63 = vadd.f32 %v4610_v8, %v4410_v6 }
 0x20e   : > { %v4955_v23 = vpop.eup %4954  ;;  %v3395_v4 = vadd.f32 %v3363_v24, %v3331_v13  ;;  %v3240_v62 = vadd.f32 1.0, %v4953_v33  ;;  %4970 = vpow2.f32 %v3852_v40  ;;  %v6408_v10 = vadd.f32 %v6183_v47, %v3082_v17  ;;  %v3368_v40 = vld [vmem:[%s6257_s26 + $0xa0] sm:$0xff] }
 0x20f   : > { %v4957_v57 = vpop.eup %4956  ;;  %v3394_v0 = vadd.f32 %v3362_v61, %v3330_v5  ;;  %v3243_v37 = vadd.f32 1.0, %v4955_v23  ;;  %4972 = vpow2.f32 %v3855_v41  ;;  %v3081_v38 = vmul.f32 %v4642_v45, %v6178_v48  ;;  %v3371_v41 = vld [vmem:[%s6257_s26 + $0xb8] sm:$0xff]  ;;  %v3370_v23 = vld [vmem:[%s6257_s26 + $0xb0] sm:$0xff] }
 0x210   : > { %v4959_v16 = vpop.eup %4958  ;;  %3427 = vst.msk [vmem:[%s6282_s29 + $0x78] sm:$0xff] %vm431_vm2, %v3395_v4  ;;  %v3333_v35 = vmul.f32 %v4957_v57, %v6301_v18  ;;  %4974 = vrcp.f32 %v3240_v62  ;;  %v3857_v2 = vmul.f32 -1.442695, %v6408_v10  ;;  %v3084_v34 = vmul.f32 %v4643_v63, %v6178_v48 }
 0x211   : > { %v4961_v60 = vpop.eup %4960  ;;  %3426 = vst.msk [vmem:[%s6282_s29 + $0x70] sm:$0xff] %vm431_vm2, %v3394_v0  ;;  %v3332_v49 = vmul.f32 %v4959_v16, %v6304_v56  ;;  %4976 = vrcp.f32 %v3243_v37  ;;  %v6422_v31 = vadd.f32 %v6183_v47, %v3081_v38  ;;  %v4644_v44 = vadd.f32 %v3005_v36, %v1923_v39  ;;  %v3373_v37 = vld [vmem:[%s6257_s26 + $0xc8] sm:$0xff] }
 0x212   : > { %v3397_v1 = vadd.f32 %v3365_v30, %v3333_v35  ;;  %v3242_v18 = vadd.f32 1.0, %v4961_v60  ;;  %4978 = vpow2.f32 %v3854_v11  ;;  %v6425_v43 = vadd.f32 %v6183_v47, %v3084_v34  ;;  %v3372_v34 = vld [vmem:[%s6257_s26 + $0xc0] sm:$0xff] }
 0x213   : > { %v4963_v50 = vpop.eup %4962  ;;  %v3396_v32 = vadd.f32 %v3364_v27, %v3332_v49  ;;  %4980 = vpow2.f32 %v3857_v2  ;;  %v3856_v46 = vmul.f32 -1.442695, %v6422_v31  ;;  %v3083_v56 = vmul.f32 %v4644_v44, %v6178_v48 }
 0x214   : > { %v4965_v53 = vpop.eup %4964  ;;  %3429 = vst.msk [vmem:[%s6282_s29 + $0x88] sm:$0xff] %vm431_vm2, %v3397_v1  ;;  %v3335_v42 = vmul.f32 %v4963_v50, %v6319_v20  ;;  %4982 = vrcp.f32 %v3242_v18  ;;  %v3859_v25 = vmul.f32 -1.442695, %v6425_v43 }
 0x215   : > { %v4967_v6 = vpop.eup %4966  ;;  %3428 = vst.msk [vmem:[%s6282_s29 + $0x80] sm:$0xff] %vm431_vm2, %v3396_v32  ;;  %v3245_v7 = vadd.f32 1.0, %v4965_v53  ;;  %4984 = vpow2.f32 %v3856_v46  ;;  %v6438_v8 = vadd.f32 %v6183_v47, %v3083_v56  ;;  %v3374_v32 = vld [vmem:[%s6257_s26 + $0xd0] sm:$0xff]  ;;  %v3377_v56 = vld [vmem:[%s6257_s26 + $0xe8] sm:$0xff] }
 0x216   : > { %v3399_v48 = vadd.f32 %v3367_v51, %v3335_v42  ;;  %v3334_v39 = vmul.f32 %v4967_v6, %v6323_v9  ;;  %4986 = vpow2.f32 %v3859_v25  ;;  %v3376_v42 = vld [vmem:[%s6257_s26 + $0xe0] sm:$0xff] }
 0x217   : > { %v4969_v20 = vpop.eup %4968  ;;  %4988 = vrcp.f32 %v3245_v7  ;;  %v3858_v52 = vmul.f32 -1.442695, %v6438_v8  ;;  %v3379_v7 = vld [vmem:[%s6257_s26 + $0xf8] sm:$0xff] }
 0x218   : > { %v4971_v55 = vpop.eup %4970  ;;  %3431 = vst.msk [vmem:[%s6282_s29 + $0x98] sm:$0xff] %vm431_vm2, %v3399_v48  ;;  %v3398_v36 = vadd.f32 %v3366_v58, %v3334_v39  ;;  %v3337_v47 = vmul.f32 %v4969_v20, %v6335_v22 }
 0x219   : > { %v4973_v21 = vpop.eup %4972  ;;  %v3244_v24 = vadd.f32 1.0, %v4971_v55  ;;  %4990 = vpow2.f32 %v3858_v52 }
 0x21a   : > { %v4975_v26 = vpop.eup %4974  ;;  %3430 = vst.msk [vmem:[%s6282_s29 + $0x90] sm:$0xff] %vm431_vm2, %v3398_v36  ;;  %v3401_v9 = vadd.f32 %v3369_v14, %v3337_v47  ;;  %v3247_v19 = vadd.f32 1.0, %v4973_v21 }
 0x21b   : > { %v4977_v13 = vpop.eup %4976  ;;  %v3336_v61 = vmul.f32 %v4975_v26, %v6346_v59  ;;  %4992 = vrcp.f32 %v3244_v24 }
 0x21c   : > { %v4979_v17 = vpop.eup %4978  ;;  %3433 = vst.msk [vmem:[%s6282_s29 + $0xa8] sm:$0xff] %vm431_vm2, %v3401_v9  ;;  %v3339_v22 = vmul.f32 %v4977_v13, %v6351_v28  ;;  %4994 = vrcp.f32 %v3247_v19 }
 0x21d   : > { %v4981_v45 = vpop.eup %4980  ;;  %v3400_v33 = vadd.f32 %v3368_v40, %v3336_v61  ;;  %v3246_v5 = vadd.f32 1.0, %v4979_v17 }
 0x21e   : > { %v4983_v11 = vpop.eup %4982  ;;  %v3403_v63 = vadd.f32 %v3371_v41, %v3339_v22  ;;  %v3249_v4 = vadd.f32 1.0, %v4981_v45 }
 0x21f   : > { %v4985_v62 = vpop.eup %4984  ;;  %3432 = vst.msk [vmem:[%s6282_s29 + $0xa0] sm:$0xff] %vm431_vm2, %v3400_v33  ;;  %v3338_v59 = vmul.f32 %v4983_v11, %v6359_v12  ;;  %4996 = vrcp.f32 %v3246_v5 }
 0x220   : > { %v4987_v57 = vpop.eup %4986  ;;  %3435 = vst.msk [vmem:[%s6282_s29 + $0xb8] sm:$0xff] %vm431_vm2, %v3403_v63  ;;  %4998 = vrcp.f32 %v3249_v4  ;;  %v3248_v28 = vadd.f32 1.0, %v4985_v62 }
 0x221   : > { %v4989_v0 = vpop.eup %4988  ;;  %v3402_v30 = vadd.f32 %v3370_v23, %v3338_v59  ;;  %v3251_v38 = vadd.f32 1.0, %v4987_v57 }
 0x222   : > { %v3341_v16 = vmul.f32 %v4989_v0, %v6376_v15  ;;  %5000 = vrcp.f32 %v3248_v28  ;;  %v3375_v15 = vld [vmem:[%s6257_s26 + $0xd8] sm:$0xff] }
 0x223   : > { %v4991_v35 = vpop.eup %4990  ;;  %3434 = vst.msk [vmem:[%s6282_s29 + $0xb0] sm:$0xff] %vm431_vm2, %v3402_v30  ;;  %5002 = vrcp.f32 %v3251_v38 }
 0x224   : > { %v3405_v12 = vadd.f32 %v3373_v37, %v3341_v16  ;;  %v3250_v27 = vadd.f32 1.0, %v4991_v35 }
 0x225   : > { %v4993_v2 = vpop.eup %4992 }
 0x226   : > { %v4995_v60 = vpop.eup %4994  ;;  %3437 = vst.msk [vmem:[%s6282_s29 + $0xc8] sm:$0xff] %vm431_vm2, %v3405_v12  ;;  %v3340_v49 = vmul.f32 %v4993_v2, %v6386_v3  ;;  %5004 = vrcp.f32 %v3250_v27 }
 0x227   : > { %v3343_v44 = vmul.f32 %v4995_v60, %v6392_v29 }
 0x228   : > { %v3404_v1 = vadd.f32 %v3372_v34, %v3340_v49 }
 0x229   : > { %v4997_v18 = vpop.eup %4996  ;;  %v3407_v50 = vadd.f32 %v3375_v15, %v3343_v44 }
 0x22a   : > { %v4999_v51 = vpop.eup %4998  ;;  %3436 = vst.msk [vmem:[%s6282_s29 + $0xc0] sm:$0xff] %vm431_vm2, %v3404_v1  ;;  %v3342_v46 = vmul.f32 %v4997_v18, %v6397_v54 }
 0x22b   : > { %3439 = vst.msk [vmem:[%s6282_s29 + $0xd8] sm:$0xff] %vm431_vm2, %v3407_v50  ;;  %v3345_v3 = vmul.f32 %v4999_v51, %v6408_v10  ;;  %v3378_v10 = vld [vmem:[%s6257_s26 + $0xf0] sm:$0xff] }
 0x22c   : > { %v5001_v29 = vpop.eup %5000  ;;  %v3406_v53 = vadd.f32 %v3374_v32, %v3342_v46 }
 0x22d   : > { %v5003_v25 = vpop.eup %5002  ;;  %v3409_v6 = vadd.f32 %v3377_v56, %v3345_v3  ;;  %v3344_v58 = vmul.f32 %v5001_v29, %v6422_v31 }
 0x22e   : > { %3438 = vst.msk [vmem:[%s6282_s29 + $0xd0] sm:$0xff] %vm431_vm2, %v3406_v53  ;;  %v3347_v54 = vmul.f32 %v5003_v25, %v6425_v43 }
 0x22f   : > { %3441 = vst.msk [vmem:[%s6282_s29 + $0xe8] sm:$0xff] %vm431_vm2, %v3409_v6  ;;  %v3408_v48 = vadd.f32 %v3376_v42, %v3344_v58 }
 0x230   : > { %v5005_v39 = vpop.eup %5004  ;;  %v3411_v20 = vadd.f32 %v3379_v7, %v3347_v54 }
 0x231   : > { %3440 = vst.msk [vmem:[%s6282_s29 + $0xe0] sm:$0xff] %vm431_vm2, %v3408_v48  ;;  %v3346_v14 = vmul.f32 %v5005_v39, %v6438_v8 }
 0x232   : > { %3443 = vst.msk [vmem:[%s6282_s29 + $0xf8] sm:$0xff] %vm431_vm2, %v3411_v20 }
 0x233   : > { %v3410_v52 = vadd.f32 %v3378_v10, %v3346_v14 }
 0x235   : > { %3442 = vst.msk [vmem:[%s6282_s29 + $0xf0] sm:$0xff] %vm431_vm2, %v3410_v52 }
 0x236 PF: > { %s15_s18 = sadd.s32 1, %s5012_s18  }
 0x237   : > { %p12_p4 = scmp.ge.s32.totalorder %s15_s18, 4  }
 0x239   :  { %14 = sbr.rel (!%p12_p4) target bundleno = 1 (0x1), region = 81 }

</bundles_post_ra>
